<compile_context>
chip_gen: v7x
topology: tpu7x:2x2x1
jax: 0.10.0
libtpu: 0.0.40
codegen_flags: <defaults>
</compile_context>

<pallas_src>
import functools

import jax
import jax.numpy as jnp
from jax import lax
from jax.experimental import pallas as pl
from jax.experimental.pallas import tpu as pltpu

_MIB = 1024 * 1024


def _vmem_limit_bytes():
    """~40 MiB on 64-MiB parts (v7x), ~96 MiB on 128-MiB parts (v5e/v6e)."""
    try:
        cap = int(pltpu.get_tpu_info().vmem_capacity_bytes)
    except Exception:
        cap = 64 * _MIB
    return 40 * _MIB if cap <= 64 * _MIB else 96 * _MIB


def _pick_row_tile(N, Ho, Wo, Cout, acc_budget_bytes=8 * _MIB):
    """Output-row tile th: must divide Ho and give legal block shapes."""
    def legal(t):
        return Ho % t == 0 and (t == Ho or (t % 8 == 0 and (t * Wo) % 128 == 0))
    cand = [t for t in range(1, Ho + 1) if legal(t)]
    fit = [t for t in cand if t * Wo * Cout * 4 <= acc_budget_bytes]
    th = max(fit) if fit else Ho  # TODO(synk): halo-tile W too for very large feature maps
    # v7x megacore / pipelining: prefer >= 2 grid steps when possible.
    if N * (Ho // th) < 2:
        smaller = [t for t in fit if t < Ho]
        if smaller:
            th = max(smaller)
    return th


# ---------------------------------------------------------------------------
# Kernel 1: implicit-GEMM conv (bf16 MXU operands, f32 accumulation) + per-tile
#           per-channel statistics.  Grid = (batch, output-row tiles).
# ---------------------------------------------------------------------------
def _conv_stats_kernel(x_ref, w_ref, out_ref, psum_ref, pssq_ref, *,
                       kh, kw, stride, dilation, th, Wo, Cin):
    # x_ref    : (Hp, Wp, Cin)      padded NHWC image of this batch (bf16, resident)
    # w_ref    : (kh*kw, Cin, Cout) weights (bf16, resident across the whole grid)
    # out_ref  : (th*Wo, Cout)      conv output tile (bf16 intermediate)
    # psum/pssq: (1, Cout)          per-tile channel sum / sum-of-squares (f32)
    hb = pl.program_id(1)
    r0 = hb * (th * stride)                 # input-row origin of this output-row tile
    acc = None
    for i in range(kh):                     # static unroll over the kh*kw taps
        for j in range(kw):
            h0 = r0 + i * dilation
            w0 = j * dilation
            if stride == 1:
                win = x_ref[pl.ds(h0, th), pl.ds(w0, Wo), :]
            else:
                # TODO(synk): strided in-VMEM gather path (stride>1) is untested here.
                win = x_ref[pl.ds(h0, th, stride=stride),
                            pl.ds(w0, Wo, stride=stride), :]
            lhs = win.reshape(th * Wo, Cin)                  # implicit-GEMM rows
            part = jnp.dot(lhs, w_ref[i * kw + j],
                           preferred_element_type=jnp.float32)
            acc = part if acc is None else acc + part
    out_ref[...] = acc.astype(out_ref.dtype)                 # bf16 writeback
    psum_ref[...] = jnp.sum(acc, axis=0, keepdims=True)      # stats from f32 acc
    pssq_ref[...] = jnp.sum(acc * acc, axis=0, keepdims=True)


# ---------------------------------------------------------------------------
# Kernel 2: fused BN affine + NHWC->NCHW transpose via diag(scale) @ y^T (MXU).
# ---------------------------------------------------------------------------
def _bn_apply_kernel(y_ref, dscale_ref, bias_ref, out_ref):
    # y_ref     : (th*Wo, Cout) bf16 conv tile
    # dscale_ref: (Cout, Cout)  diag(gamma * rsqrt(var + eps))
    # bias_ref  : (Cout, 1)     beta - mean * scale
    # out_ref   : (Cout, th*Wo) channel-major f32 output tile
    y = y_ref[...].astype(jnp.float32)
    yt = lax.dot_general(dscale_ref[...], y,
                         dimension_numbers=(((1,), (1,)), ((), ())),
                         preferred_element_type=jnp.float32)
    out_ref[...] = yt + bias_ref[...]


# ---------------------------------------------------------------------------
# Wrapper
# ---------------------------------------------------------------------------
def basic_conv2d(x_nchw, weight_oihw, gamma, beta,
                 stride=1, padding=0, dilation=1, eps=1e-5):
    N, Cin, H, W = x_nchw.shape
    Cout, _, kh, kw = weight_oihw.shape
    Ho = (H + 2 * padding - dilation * (kh - 1) - 1) // stride + 1
    Wo = (W + 2 * padding - dilation * (kw - 1) - 1) // stride + 1
    Hp, Wp = H + 2 * padding, W + 2 * padding

    # One cheap copy of the input: NCHW -> padded NHWC bf16 (no im2col blowup).
    x_nhwc = jnp.transpose(x_nchw, (0, 2, 3, 1)).astype(jnp.bfloat16)
    xp = jnp.pad(x_nhwc, ((0, 0), (padding, padding), (padding, padding), (0, 0)))

    # OIHW -> (kh*kw, Cin, Cout), matching the tap loop order in the kernel.
    w_r = jnp.transpose(weight_oihw.astype(jnp.bfloat16),
                        (2, 3, 1, 0)).reshape(kh * kw, Cin, Cout)

    th = _pick_row_tile(N, Ho, Wo, Cout)
    n_h = Ho // th
    vmem_limit = _vmem_limit_bytes()

    conv_kernel = functools.partial(_conv_stats_kernel, kh=kh, kw=kw, stride=stride,
                                    dilation=dilation, th=th, Wo=Wo, Cin=Cin)
    conv_bf16, psum, pssq = pl.pallas_call(
        conv_kernel,
        out_shape=(
            jax.ShapeDtypeStruct((N, Ho * Wo, Cout), jnp.bfloat16),
            jax.ShapeDtypeStruct((N, n_h, 1, Cout), jnp.float32),
            jax.ShapeDtypeStruct((N, n_h, 1, Cout), jnp.float32),
        ),
        grid_spec=pltpu.PrefetchScalarGridSpec(
            num_scalar_prefetch=0,
            grid=(N, n_h),
            in_specs=[
                # Whole padded image of batch n; resident across the hb axis.
                # TODO(synk): halo-tile H with manual DMA for very large feature maps.
                pl.BlockSpec((None, Hp, Wp, Cin), lambda n, hb: (n, 0, 0, 0)),
                # Full weight, resident across the whole grid (fetched once).
                pl.BlockSpec((kh * kw, Cin, Cout), lambda n, hb: (0, 0, 0)),
            ],
            out_specs=[
                pl.BlockSpec((None, th * Wo, Cout), lambda n, hb: (n, hb, 0)),
                pl.BlockSpec((None, None, 1, Cout), lambda n, hb: (n, hb, 0, 0)),
                pl.BlockSpec((None, None, 1, Cout), lambda n, hb: (n, hb, 0, 0)),
            ],
        ),
        compiler_params=pltpu.CompilerParams(
            dimension_semantics=("parallel", "parallel"),
            vmem_limit_bytes=vmem_limit,
        ),
    )(xp, w_r)

    # BatchNorm2d (training mode): batch mean / biased variance over (N, H, W),
    # folded into a single per-channel affine (var clamped vs f32 cancellation).
    M = float(N * Ho * Wo)
    mean = jnp.sum(psum, axis=(0, 1, 2)) / M
    var = jnp.maximum(jnp.sum(pssq, axis=(0, 1, 2)) / M - mean * mean, 0.0)
    scale = gamma.astype(jnp.float32) * lax.rsqrt(var + eps)
    bias = beta.astype(jnp.float32) - mean * scale
    dscale = jnp.diag(scale)               # (Cout, Cout) for the fused scale+transpose matmul
    bias_col = bias.reshape(Cout, 1)

    y_flat = pl.pallas_call(
        _bn_apply_kernel,
        out_shape=jax.ShapeDtypeStruct((N, Cout, Ho * Wo), jnp.float32),
        grid_spec=pltpu.PrefetchScalarGridSpec(
            num_scalar_prefetch=0,
            grid=(N, n_h),
            in_specs=[
                pl.BlockSpec((None, th * Wo, Cout), lambda n, hb: (n, hb, 0)),
                pl.BlockSpec((Cout, Cout), lambda n, hb: (0, 0)),
                pl.BlockSpec((Cout, 1), lambda n, hb: (0, 0)),
            ],
            out_specs=pl.BlockSpec((None, Cout, th * Wo), lambda n, hb: (n, 0, hb)),
        ),
        compiler_params=pltpu.CompilerParams(
            dimension_semantics=("parallel", "parallel"),
            vmem_limit_bytes=vmem_limit,
        ),
    )(conv_bf16, dscale, bias_col)

    # (N, Cout, Ho*Wo) -> (N, Cout, Ho, Wo) is a free row-major dim split.
    return y_flat.reshape(N, Cout, Ho, Wo)


# ---------------------------------------------------------------------------
# Demo / correctness check
# ---------------------------------------------------------------------------
if __name__ == "__main__":
    # BasicConv2d(in_planes=4, out_planes=8, kernel_size=3, stride=1, padding=1)
    N, Cin, H, W = 2, 4, 16, 16
    Cout, ksize, stride, padding, dilation = 8, 3, 1, 1, 1
    eps = 1e-5

    key = jax.random.PRNGKey(0)
    kx, kw_, kg, kb = jax.random.split(key, 4)
    x = jax.random.normal(kx, (N, Cin, H, W), dtype=jnp.float32)
    weight = 0.1 * jax.random.normal(kw_, (Cout, Cin, ksize, ksize), dtype=jnp.float32)
    gamma = 1.0 + 0.1 * jax.random.normal(kg, (Cout,), dtype=jnp.float32)
    beta = 0.1 * jax.random.normal(kb, (Cout,), dtype=jnp.float32)

    run = jax.jit(functools.partial(basic_conv2d, stride=stride, padding=padding,
                                    dilation=dilation, eps=eps))
    out = jax.block_until_ready(run(x, weight, gamma, beta))

    # Pure-JAX reference: bf16 MXU operands with f32 accumulation, training-mode
    # BatchNorm (batch mean / biased batch variance), bf16 conv intermediate as
    # in the kernel.
    ref_conv = lax.conv_general_dilated(
        x.astype(jnp.bfloat16), weight.astype(jnp.bfloat16),
        window_strides=(stride, stride),
        padding=[(padding, padding), (padding, padding)],
        rhs_dilation=(dilation, dilation),
        dimension_numbers=("NCHW", "OIHW", "NCHW"),
        preferred_element_type=jnp.float32)
    mean = ref_conv.mean(axis=(0, 2, 3), keepdims=True)
    var = ref_conv.var(axis=(0, 2, 3), keepdims=True)       # biased variance
    y_q = ref_conv.astype(jnp.bfloat16).astype(jnp.float32)  # bf16 intermediate
    ref = ((y_q - mean) * lax.rsqrt(var + eps)
           * gamma.reshape(1, Cout, 1, 1) + beta.reshape(1, Cout, 1, 1))

    assert out.shape == (N, Cout, H, W), out.shape
    err = float(jnp.abs(out - ref).max())
    assert err < 5e-2, err
    print("KERNEL_OK")
</pallas_src>

<mosaic_0001>
module attributes {stable_mosaic.version = 11 : i64} {
  func.func @_conv_stats_kernel(%arg0: i32, %arg1: i32, %arg2: memref<1x18x18x4xbf16, #tpu.memory_space<vmem>>, %arg3: memref<9x4x8xbf16, #tpu.memory_space<vmem>>, %arg4: memref<1x256x8xbf16, #tpu.memory_space<vmem>>, %arg5: memref<1x1x1x8xf32, #tpu.memory_space<vmem>>, %arg6: memref<1x1x1x8xf32, #tpu.memory_space<vmem>>) attributes {dimension_semantics = [#tpu.dimension_semantics<parallel>, #tpu.dimension_semantics<parallel>], iteration_bounds = array<i64: 2, 1>, scalar_prefetch = 0 : i64, scratch_operands = 0 : i64, tpu.core_type = #tpu.core_type<tc>, window_params = [{transform_indices = @transform_0, window_bounds = array<i64: 1, 18, 18, 4>}, {pipeline_mode = #tpu.pipeline_mode<synchronous>, transform_indices = @transform_1, window_bounds = array<i64: 9, 4, 8>}, {transform_indices = @transform_2, window_bounds = array<i64: 1, 256, 8>}, {transform_indices = @transform_3, window_bounds = array<i64: 1, 1, 1, 8>}, {transform_indices = @transform_4, window_bounds = array<i64: 1, 1, 1, 8>}]} {
    %c16_i32 = arith.constant 16 : i32
    %0 = arith.muli %arg1, %c16_i32 : i32
    %c0_i32 = arith.constant 0 : i32
    %1 = arith.addi %0, %c0_i32 : i32
    %c0 = arith.constant 0 : index
    %2 = arith.index_cast %1 : i32 to index
    %c0_0 = arith.constant 0 : index
    %c0_1 = arith.constant 0 : index
    %3 = vector.load %arg2[%c0, %2, %c0_0, %c0_1] : memref<1x18x18x4xbf16, #tpu.memory_space<vmem>>, vector<1x16x16x4xbf16>
    %4 = vector.shape_cast %3 : vector<1x16x16x4xbf16> to vector<16x16x4xbf16>
    %5 = vector.shape_cast %4 : vector<16x16x4xbf16> to vector<256x4xbf16>
    %c0_2 = arith.constant 0 : index
    %c0_3 = arith.constant 0 : index
    %c0_4 = arith.constant 0 : index
    %6 = vector.load %arg3[%c0_2, %c0_3, %c0_4] : memref<9x4x8xbf16, #tpu.memory_space<vmem>>, vector<1x4x8xbf16>
    %7 = vector.shape_cast %6 : vector<1x4x8xbf16> to vector<4x8xbf16>
    %cst = arith.constant dense<0.000000e+00> : vector<256x8xf32>
    %8 = tpu.matmul %5, %7, %cst {dimension_numbers = #tpu.dot_dimension_numbers<[1], [0], [0], [1], [0, 0, 1, 1], [], []>} : vector<256x4xbf16>, vector<4x8xbf16>, vector<256x8xf32> -> vector<256x8xf32>
    %c0_i32_5 = arith.constant 0 : i32
    %9 = arith.addi %0, %c0_i32_5 : i32
    %c0_6 = arith.constant 0 : index
    %10 = arith.index_cast %9 : i32 to index
    %c1 = arith.constant 1 : index
    %c0_7 = arith.constant 0 : index
    %11 = vector.load %arg2[%c0_6, %10, %c1, %c0_7] : memref<1x18x18x4xbf16, #tpu.memory_space<vmem>>, vector<1x16x16x4xbf16>
    %12 = vector.shape_cast %11 : vector<1x16x16x4xbf16> to vector<16x16x4xbf16>
    %13 = vector.shape_cast %12 : vector<16x16x4xbf16> to vector<256x4xbf16>
    %c1_8 = arith.constant 1 : index
    %c0_9 = arith.constant 0 : index
    %c0_10 = arith.constant 0 : index
    %14 = vector.load %arg3[%c1_8, %c0_9, %c0_10] : memref<9x4x8xbf16, #tpu.memory_space<vmem>>, vector<1x4x8xbf16>
    %15 = vector.shape_cast %14 : vector<1x4x8xbf16> to vector<4x8xbf16>
    %cst_11 = arith.constant dense<0.000000e+00> : vector<256x8xf32>
    %16 = tpu.matmul %13, %15, %cst_11 {dimension_numbers = #tpu.dot_dimension_numbers<[1], [0], [0], [1], [0, 0, 1, 1], [], []>} : vector<256x4xbf16>, vector<4x8xbf16>, vector<256x8xf32> -> vector<256x8xf32>
    %17 = arith.addf %8, %16 : vector<256x8xf32>
    %c0_i32_12 = arith.constant 0 : i32
    %18 = arith.addi %0, %c0_i32_12 : i32
    %c0_13 = arith.constant 0 : index
    %19 = arith.index_cast %18 : i32 to index
    %c2 = arith.constant 2 : index
    %c0_14 = arith.constant 0 : index
    %20 = vector.load %arg2[%c0_13, %19, %c2, %c0_14] : memref<1x18x18x4xbf16, #tpu.memory_space<vmem>>, vector<1x16x16x4xbf16>
    %21 = vector.shape_cast %20 : vector<1x16x16x4xbf16> to vector<16x16x4xbf16>
    %22 = vector.shape_cast %21 : vector<16x16x4xbf16> to vector<256x4xbf16>
    %c2_15 = arith.constant 2 : index
    %c0_16 = arith.constant 0 : index
    %c0_17 = arith.constant 0 : index
    %23 = vector.load %arg3[%c2_15, %c0_16, %c0_17] : memref<9x4x8xbf16, #tpu.memory_space<vmem>>, vector<1x4x8xbf16>
    %24 = vector.shape_cast %23 : vector<1x4x8xbf16> to vector<4x8xbf16>
    %cst_18 = arith.constant dense<0.000000e+00> : vector<256x8xf32>
    %25 = tpu.matmul %22, %24, %cst_18 {dimension_numbers = #tpu.dot_dimension_numbers<[1], [0], [0], [1], [0, 0, 1, 1], [], []>} : vector<256x4xbf16>, vector<4x8xbf16>, vector<256x8xf32> -> vector<256x8xf32>
    %26 = arith.addf %17, %25 : vector<256x8xf32>
    %c1_i32 = arith.constant 1 : i32
    %27 = arith.addi %0, %c1_i32 : i32
    %c0_19 = arith.constant 0 : index
    %28 = arith.index_cast %27 : i32 to index
    %c0_20 = arith.constant 0 : index
    %c0_21 = arith.constant 0 : index
    %29 = vector.load %arg2[%c0_19, %28, %c0_20, %c0_21] : memref<1x18x18x4xbf16, #tpu.memory_space<vmem>>, vector<1x16x16x4xbf16>
    %30 = vector.shape_cast %29 : vector<1x16x16x4xbf16> to vector<16x16x4xbf16>
    %31 = vector.shape_cast %30 : vector<16x16x4xbf16> to vector<256x4xbf16>
    %c3 = arith.constant 3 : index
    %c0_22 = arith.constant 0 : index
    %c0_23 = arith.constant 0 : index
    %32 = vector.load %arg3[%c3, %c0_22, %c0_23] : memref<9x4x8xbf16, #tpu.memory_space<vmem>>, vector<1x4x8xbf16>
    %33 = vector.shape_cast %32 : vector<1x4x8xbf16> to vector<4x8xbf16>
    %cst_24 = arith.constant dense<0.000000e+00> : vector<256x8xf32>
    %34 = tpu.matmul %31, %33, %cst_24 {dimension_numbers = #tpu.dot_dimension_numbers<[1], [0], [0], [1], [0, 0, 1, 1], [], []>} : vector<256x4xbf16>, vector<4x8xbf16>, vector<256x8xf32> -> vector<256x8xf32>
    %35 = arith.addf %26, %34 : vector<256x8xf32>
    %c1_i32_25 = arith.constant 1 : i32
    %36 = arith.addi %0, %c1_i32_25 : i32
    %c0_26 = arith.constant 0 : index
    %37 = arith.index_cast %36 : i32 to index
    %c1_27 = arith.constant 1 : index
    %c0_28 = arith.constant 0 : index
    %38 = vector.load %arg2[%c0_26, %37, %c1_27, %c0_28] : memref<1x18x18x4xbf16, #tpu.memory_space<vmem>>, vector<1x16x16x4xbf16>
    %39 = vector.shape_cast %38 : vector<1x16x16x4xbf16> to vector<16x16x4xbf16>
    %40 = vector.shape_cast %39 : vector<16x16x4xbf16> to vector<256x4xbf16>
    %c4 = arith.constant 4 : index
    %c0_29 = arith.constant 0 : index
    %c0_30 = arith.constant 0 : index
    %41 = vector.load %arg3[%c4, %c0_29, %c0_30] : memref<9x4x8xbf16, #tpu.memory_space<vmem>>, vector<1x4x8xbf16>
    %42 = vector.shape_cast %41 : vector<1x4x8xbf16> to vector<4x8xbf16>
    %cst_31 = arith.constant dense<0.000000e+00> : vector<256x8xf32>
    %43 = tpu.matmul %40, %42, %cst_31 {dimension_numbers = #tpu.dot_dimension_numbers<[1], [0], [0], [1], [0, 0, 1, 1], [], []>} : vector<256x4xbf16>, vector<4x8xbf16>, vector<256x8xf32> -> vector<256x8xf32>
    %44 = arith.addf %35, %43 : vector<256x8xf32>
    %c1_i32_32 = arith.constant 1 : i32
    %45 = arith.addi %0, %c1_i32_32 : i32
    %c0_33 = arith.constant 0 : index
    %46 = arith.index_cast %45 : i32 to index
    %c2_34 = arith.constant 2 : index
    %c0_35 = arith.constant 0 : index
    %47 = vector.load %arg2[%c0_33, %46, %c2_34, %c0_35] : memref<1x18x18x4xbf16, #tpu.memory_space<vmem>>, vector<1x16x16x4xbf16>
    %48 = vector.shape_cast %47 : vector<1x16x16x4xbf16> to vector<16x16x4xbf16>
    %49 = vector.shape_cast %48 : vector<16x16x4xbf16> to vector<256x4xbf16>
    %c5 = arith.constant 5 : index
    %c0_36 = arith.constant 0 : index
    %c0_37 = arith.constant 0 : index
    %50 = vector.load %arg3[%c5, %c0_36, %c0_37] : memref<9x4x8xbf16, #tpu.memory_space<vmem>>, vector<1x4x8xbf16>
    %51 = vector.shape_cast %50 : vector<1x4x8xbf16> to vector<4x8xbf16>
    %cst_38 = arith.constant dense<0.000000e+00> : vector<256x8xf32>
    %52 = tpu.matmul %49, %51, %cst_38 {dimension_numbers = #tpu.dot_dimension_numbers<[1], [0], [0], [1], [0, 0, 1, 1], [], []>} : vector<256x4xbf16>, vector<4x8xbf16>, vector<256x8xf32> -> vector<256x8xf32>
    %53 = arith.addf %44, %52 : vector<256x8xf32>
    %c2_i32 = arith.constant 2 : i32
    %54 = arith.addi %0, %c2_i32 : i32
    %c0_39 = arith.constant 0 : index
    %55 = arith.index_cast %54 : i32 to index
    %c0_40 = arith.constant 0 : index
    %c0_41 = arith.constant 0 : index
    %56 = vector.load %arg2[%c0_39, %55, %c0_40, %c0_41] : memref<1x18x18x4xbf16, #tpu.memory_space<vmem>>, vector<1x16x16x4xbf16>
    %57 = vector.shape_cast %56 : vector<1x16x16x4xbf16> to vector<16x16x4xbf16>
    %58 = vector.shape_cast %57 : vector<16x16x4xbf16> to vector<256x4xbf16>
    %c6 = arith.constant 6 : index
    %c0_42 = arith.constant 0 : index
    %c0_43 = arith.constant 0 : index
    %59 = vector.load %arg3[%c6, %c0_42, %c0_43] : memref<9x4x8xbf16, #tpu.memory_space<vmem>>, vector<1x4x8xbf16>
    %60 = vector.shape_cast %59 : vector<1x4x8xbf16> to vector<4x8xbf16>
    %cst_44 = arith.constant dense<0.000000e+00> : vector<256x8xf32>
    %61 = tpu.matmul %58, %60, %cst_44 {dimension_numbers = #tpu.dot_dimension_numbers<[1], [0], [0], [1], [0, 0, 1, 1], [], []>} : vector<256x4xbf16>, vector<4x8xbf16>, vector<256x8xf32> -> vector<256x8xf32>
    %62 = arith.addf %53, %61 : vector<256x8xf32>
    %c2_i32_45 = arith.constant 2 : i32
    %63 = arith.addi %0, %c2_i32_45 : i32
    %c0_46 = arith.constant 0 : index
    %64 = arith.index_cast %63 : i32 to index
    %c1_47 = arith.constant 1 : index
    %c0_48 = arith.constant 0 : index
    %65 = vector.load %arg2[%c0_46, %64, %c1_47, %c0_48] : memref<1x18x18x4xbf16, #tpu.memory_space<vmem>>, vector<1x16x16x4xbf16>
    %66 = vector.shape_cast %65 : vector<1x16x16x4xbf16> to vector<16x16x4xbf16>
    %67 = vector.shape_cast %66 : vector<16x16x4xbf16> to vector<256x4xbf16>
    %c7 = arith.constant 7 : index
    %c0_49 = arith.constant 0 : index
    %c0_50 = arith.constant 0 : index
    %68 = vector.load %arg3[%c7, %c0_49, %c0_50] : memref<9x4x8xbf16, #tpu.memory_space<vmem>>, vector<1x4x8xbf16>
    %69 = vector.shape_cast %68 : vector<1x4x8xbf16> to vector<4x8xbf16>
    %cst_51 = arith.constant dense<0.000000e+00> : vector<256x8xf32>
    %70 = tpu.matmul %67, %69, %cst_51 {dimension_numbers = #tpu.dot_dimension_numbers<[1], [0], [0], [1], [0, 0, 1, 1], [], []>} : vector<256x4xbf16>, vector<4x8xbf16>, vector<256x8xf32> -> vector<256x8xf32>
    %71 = arith.addf %62, %70 : vector<256x8xf32>
    %c2_i32_52 = arith.constant 2 : i32
    %72 = arith.addi %0, %c2_i32_52 : i32
    %c0_53 = arith.constant 0 : index
    %73 = arith.index_cast %72 : i32 to index
    %c2_54 = arith.constant 2 : index
    %c0_55 = arith.constant 0 : index
    %74 = vector.load %arg2[%c0_53, %73, %c2_54, %c0_55] : memref<1x18x18x4xbf16, #tpu.memory_space<vmem>>, vector<1x16x16x4xbf16>
    %75 = vector.shape_cast %74 : vector<1x16x16x4xbf16> to vector<16x16x4xbf16>
    %76 = vector.shape_cast %75 : vector<16x16x4xbf16> to vector<256x4xbf16>
    %c8 = arith.constant 8 : index
    %c0_56 = arith.constant 0 : index
    %c0_57 = arith.constant 0 : index
    %77 = vector.load %arg3[%c8, %c0_56, %c0_57] : memref<9x4x8xbf16, #tpu.memory_space<vmem>>, vector<1x4x8xbf16>
    %78 = vector.shape_cast %77 : vector<1x4x8xbf16> to vector<4x8xbf16>
    %cst_58 = arith.constant dense<0.000000e+00> : vector<256x8xf32>
    %79 = tpu.matmul %76, %78, %cst_58 {dimension_numbers = #tpu.dot_dimension_numbers<[1], [0], [0], [1], [0, 0, 1, 1], [], []>} : vector<256x4xbf16>, vector<4x8xbf16>, vector<256x8xf32> -> vector<256x8xf32>
    %80 = arith.addf %71, %79 : vector<256x8xf32>
    %81 = arith.truncf %80 : vector<256x8xf32> to vector<256x8xbf16>
    %c0_59 = arith.constant 0 : index
    %c0_60 = arith.constant 0 : index
    %c0_61 = arith.constant 0 : index
    %82 = vector.load %arg4[%c0_59, %c0_60, %c0_61] : memref<1x256x8xbf16, #tpu.memory_space<vmem>>, vector<1x256x8xbf16>
    %83 = vector.shape_cast %82 : vector<1x256x8xbf16> to vector<256x8xbf16>
    %84 = vector.shape_cast %81 : vector<256x8xbf16> to vector<1x256x8xbf16>
    tpu.vector_store %arg4[%c0_59, %c0_60, %c0_61], %84 {strides = array<i32>} : memref<1x256x8xbf16, #tpu.memory_space<vmem>>, vector<1x256x8xbf16>,
    %cst_62 = arith.constant dense<0.000000e+00> : vector<8xf32>
    %85 = vector.multi_reduction <add>, %80, %cst_62 [0] : vector<256x8xf32> to vector<8xf32>
    %86 = vector.shape_cast %85 : vector<8xf32> to vector<1x8xf32>
    %c0_63 = arith.constant 0 : index
    %c0_64 = arith.constant 0 : index
    %c0_65 = arith.constant 0 : index
    %c0_66 = arith.constant 0 : index
    %87 = vector.load %arg5[%c0_63, %c0_64, %c0_65, %c0_66] : memref<1x1x1x8xf32, #tpu.memory_space<vmem>>, vector<1x1x1x8xf32>
    %88 = vector.shape_cast %87 : vector<1x1x1x8xf32> to vector<1x8xf32>
    %89 = vector.shape_cast %86 : vector<1x8xf32> to vector<1x1x1x8xf32>
    tpu.vector_store %arg5[%c0_63, %c0_64, %c0_65, %c0_66], %89 {strides = array<i32>} : memref<1x1x1x8xf32, #tpu.memory_space<vmem>>, vector<1x1x1x8xf32>,
    %90 = arith.mulf %80, %80 : vector<256x8xf32>
    %cst_67 = arith.constant dense<0.000000e+00> : vector<8xf32>
    %91 = vector.multi_reduction <add>, %90, %cst_67 [0] : vector<256x8xf32> to vector<8xf32>
    %92 = vector.shape_cast %91 : vector<8xf32> to vector<1x8xf32>
    %c0_68 = arith.constant 0 : index
    %c0_69 = arith.constant 0 : index
    %c0_70 = arith.constant 0 : index
    %c0_71 = arith.constant 0 : index
    %93 = vector.load %arg6[%c0_68, %c0_69, %c0_70, %c0_71] : memref<1x1x1x8xf32, #tpu.memory_space<vmem>>, vector<1x1x1x8xf32>
    %94 = vector.shape_cast %93 : vector<1x1x1x8xf32> to vector<1x8xf32>
    %95 = vector.shape_cast %92 : vector<1x8xf32> to vector<1x1x1x8xf32>
    tpu.vector_store %arg6[%c0_68, %c0_69, %c0_70, %c0_71], %95 {strides = array<i32>} : memref<1x1x1x8xf32, #tpu.memory_space<vmem>>, vector<1x1x1x8xf32>,
    return
  }
  func.func @transform_0(%arg0: i32, %arg1: i32) -> (i32, i32, i32, i32) {
    %c0_i32 = arith.constant 0 : i32
    %c0_i32_0 = arith.constant 0 : i32
    %c0_i32_1 = arith.constant 0 : i32
    %c0_i32_2 = arith.constant 0 : i32
    return %arg0, %c0_i32, %c0_i32_0, %c0_i32_1 : i32, i32, i32, i32
  }
  func.func @transform_1(%arg0: i32, %arg1: i32) -> (i32, i32, i32) {
    %c0_i32 = arith.constant 0 : i32
    %c0_i32_0 = arith.constant 0 : i32
    %c0_i32_1 = arith.constant 0 : i32
    %c0_i32_2 = arith.constant 0 : i32
    return %c0_i32, %c0_i32_0, %c0_i32_1 : i32, i32, i32
  }
  func.func @transform_2(%arg0: i32, %arg1: i32) -> (i32, i32, i32) {
    %c0_i32 = arith.constant 0 : i32
    %c0_i32_0 = arith.constant 0 : i32
    return %arg0, %arg1, %c0_i32 : i32, i32, i32
  }
  func.func @transform_3(%arg0: i32, %arg1: i32) -> (i32, i32, i32, i32) {
    %c0_i32 = arith.constant 0 : i32
    %c0_i32_0 = arith.constant 0 : i32
    %c0_i32_1 = arith.constant 0 : i32
    return %arg0, %arg1, %c0_i32, %c0_i32_0 : i32, i32, i32, i32
  }
  func.func @transform_4(%arg0: i32, %arg1: i32) -> (i32, i32, i32, i32) {
    %c0_i32 = arith.constant 0 : i32
    %c0_i32_0 = arith.constant 0 : i32
    %c0_i32_1 = arith.constant 0 : i32
    return %arg0, %arg1, %c0_i32, %c0_i32_0 : i32, i32, i32, i32
  }
}

module attributes {stable_mosaic.version = 11 : i64} {
  func.func @_bn_apply_kernel(%arg0: i32, %arg1: i32, %arg2: memref<1x256x8xbf16, #tpu.memory_space<vmem>>, %arg3: memref<8x8xf32, #tpu.memory_space<vmem>>, %arg4: memref<8x1xf32, #tpu.memory_space<vmem>>, %arg5: memref<1x8x256xf32, #tpu.memory_space<vmem>>) attributes {dimension_semantics = [#tpu.dimension_semantics<parallel>, #tpu.dimension_semantics<parallel>], iteration_bounds = array<i64: 2, 1>, scalar_prefetch = 0 : i64, scratch_operands = 0 : i64, tpu.core_type = #tpu.core_type<tc>, window_params = [{transform_indices = @transform_0, window_bounds = array<i64: 1, 256, 8>}, {pipeline_mode = #tpu.pipeline_mode<synchronous>, transform_indices = @transform_1, window_bounds = array<i64: 8, 8>}, {pipeline_mode = #tpu.pipeline_mode<synchronous>, transform_indices = @transform_2, window_bounds = array<i64: 8, 1>}, {transform_indices = @transform_3, window_bounds = array<i64: 1, 8, 256>}]} {
    %c0 = arith.constant 0 : index
    %c0_0 = arith.constant 0 : index
    %c0_1 = arith.constant 0 : index
    %0 = vector.load %arg2[%c0, %c0_0, %c0_1] : memref<1x256x8xbf16, #tpu.memory_space<vmem>>, vector<1x256x8xbf16>
    %1 = vector.shape_cast %0 : vector<1x256x8xbf16> to vector<256x8xbf16>
    %2 = arith.extf %1 : vector<256x8xbf16> to vector<256x8xf32>
    %c0_2 = arith.constant 0 : index
    %c0_3 = arith.constant 0 : index
    %3 = vector.load %arg3[%c0_2, %c0_3] : memref<8x8xf32, #tpu.memory_space<vmem>>, vector<8x8xf32>
    %cst = arith.constant dense<0.000000e+00> : vector<8x256xf32>
    %4 = tpu.matmul %3, %2, %cst {dimension_numbers = #tpu.dot_dimension_numbers<[1], [1], [0], [0], [0, 0, 1, 0], [], []>} : vector<8x8xf32>, vector<256x8xf32>, vector<8x256xf32> -> vector<8x256xf32>
    %c0_4 = arith.constant 0 : index
    %c0_5 = arith.constant 0 : index
    %5 = vector.load %arg4[%c0_4, %c0_5] : memref<8x1xf32, #tpu.memory_space<vmem>>, vector<8x1xf32>
    %6 = vector.broadcast %5 : vector<8x1xf32> to vector<8x256xf32>
    %7 = arith.addf %4, %6 : vector<8x256xf32>
    %c0_6 = arith.constant 0 : index
    %c0_7 = arith.constant 0 : index
    %c0_8 = arith.constant 0 : index
    %8 = vector.load %arg5[%c0_6, %c0_7, %c0_8] : memref<1x8x256xf32, #tpu.memory_space<vmem>>, vector<1x8x256xf32>
    %9 = vector.shape_cast %8 : vector<1x8x256xf32> to vector<8x256xf32>
    %10 = vector.shape_cast %7 : vector<8x256xf32> to vector<1x8x256xf32>
    tpu.vector_store %arg5[%c0_6, %c0_7, %c0_8], %10 {strides = array<i32>} : memref<1x8x256xf32, #tpu.memory_space<vmem>>, vector<1x8x256xf32>,
    return
  }
  func.func @transform_0(%arg0: i32, %arg1: i32) -> (i32, i32, i32) {
    %c0_i32 = arith.constant 0 : i32
    %c0_i32_0 = arith.constant 0 : i32
    return %arg0, %arg1, %c0_i32 : i32, i32, i32
  }
  func.func @transform_1(%arg0: i32, %arg1: i32) -> (i32, i32) {
    %c0_i32 = arith.constant 0 : i32
    %c0_i32_0 = arith.constant 0 : i32
    %c0_i32_1 = arith.constant 0 : i32
    return %c0_i32, %c0_i32_0 : i32, i32
  }
  func.func @transform_2(%arg0: i32, %arg1: i32) -> (i32, i32) {
    %c0_i32 = arith.constant 0 : i32
    %c0_i32_0 = arith.constant 0 : i32
    %c0_i32_1 = arith.constant 0 : i32
    return %c0_i32, %c0_i32_0 : i32, i32
  }
  func.func @transform_3(%arg0: i32, %arg1: i32) -> (i32, i32, i32) {
    %c0_i32 = arith.constant 0 : i32
    %c0_i32_0 = arith.constant 0 : i32
    return %arg0, %c0_i32, %arg1 : i32, i32, i32
  }
}

</mosaic_0001>

<bundles_post_ra>
// kernel: basic_conv2d.3
= control target key start
LH: loop header
LB: loop body
LE: loop exit
PB: predicated region body
PF: predicated region fallthrough
CT: control target
= control target key end

     0   :  { %s819_s12 = smov 0   ;;  %s821_s13 = smov 0   ;;  %s920_s0 = inlined_call_operand.vmem [shape: bf16[2,256,8], index: 0, kind: input, shape index: {}]   ;;  %s921_s1 = inlined_call_operand.vmem [shape: f32[8,8], index: 1, kind: input, shape index: {}]   ;;  %s922_s2 = inlined_call_operand.vmem [shape: f32[8,1], index: 2, kind: input, shape index: {}]   ;;  %s923_s3 = inlined_call_operand.vmem [shape: f32[2,8,256], index: 3, kind: output, shape index: {}]  }
   0x1   :  { %s823_s14 = smov 0  }
   0x2 LB: > { %s25_s15 = sadd.s32 1, %s792_s13  ;;  %p545_p0 = scmp.ge.s32.totalorder %s796_s14, 1  ;;  %s796_s14 = sphi %s823_s14, %s13_s14   ;;  %s792_s13 = sphi %s821_s13, %s927_s13   ;;  %s788_s12 = sphi %s819_s12, %s926_s12  }
   0x3   : > { %p27_p1 = scmp.ge.s32.totalorder %s25_s15, 2  ;;  %p158_p2 = scmp.lt.s32.totalorder %s796_s14, 3 }
   0x5   : > { %s929_s15 = smov (%p27_p1, %s25_s15), 0  ;;  %p159_p3 = pnand %p545_p0, %p158_p2 }
   0x6   : > { %p191_p4 = scmp.lt.s32.totalorder (!%p159_p3), %s788_s12, 1  ;;  %vm281_vm0 = vcmask (!%p159_p3), 64512   ;;  %v274_v0 = vld [vmem:[%s921_s1] sm:$0xff] (!%p159_p3)  ;;  %v798_v2 = vmov (!%p159_p3), 0  }
   0x7   : > { %162 = sbr.rel (%p159_p3) target bundleno = 298 (0x12a), region = 32  ;;  %v275_v1 = vld [vmem:[%s922_s2] sm:$0xff] (!%p159_p3)  ;;  %698 = vmatprep.mubr.msk.f32.mxu0 (!%p159_p3), %vm281_vm0, %v274_v0  ;;  %773 = vset.pattern.permute.xlu0 (!%p159_p3), %v798_v2  ;;  %vm849_vm1 = vmpackc.low (!%p159_p3), %vm281_vm0, %vm281_vm0 }
   0x8   : > { %278 = vperm.xlu0 (!%p159_p3), %773, %v275_v1  }
   0xe   : > { %s931_s12 = smov (!%p191_p4, %s788_s12), 1 }
   0xf   : > { %s585_s20 = sshll.u32 %s931_s12, 7  ;;  %s586_s24 = sshll.u32 %s931_s12, 4 }
  0x10   : > { %s856_s23 = scalar_lea.vmem %s920_s0, %s585_s20  ;;  %s208_s27 = scalar_lea.vmem %s923_s3, %s586_s24 }
  0x11   : > { %v658_v4 = vld [vmem:[%s856_s23 + $0x40] sm:$0xff]   ;;  %v659_v6 = vld [vmem:[%s856_s23 + $0x48] sm:$0xff]   ;;  %v660_v8 = vld [vmem:[%s856_s23 + $0x50] sm:$0xff]  }
  0x12   : > { %v588_v5 = vld [vmem:[%s856_s23] sm:$0xff]   ;;  %702 = vmatprep.subr.msk.bf16.mxu0 %vm849_vm1, %v658_v4  ;;  %v651_v7 = vld [vmem:[%s856_s23 + $0x8] sm:$0xff]   ;;  %v652_v9 = vld [vmem:[%s856_s23 + $0x10] sm:$0xff]  }
  0x13   : > { %705 = vmatpush3.bf16.xpose.msk.msra.mxu0 %vm849_vm1, %v588_v5  ;;  %v661_v10 = vld [vmem:[%s856_s23 + $0x58] sm:$0xff]   ;;  %v662_v12 = vld [vmem:[%s856_s23 + $0x60] sm:$0xff]   ;;  %v663_v14 = vld [vmem:[%s856_s23 + $0x68] sm:$0xff]  }
  0x14   : > { %708 = vmatprep.subr.msk.bf16.mxu0 %vm849_vm1, %v659_v6  ;;  %v653_v11 = vld [vmem:[%s856_s23 + $0x18] sm:$0xff]   ;;  %v654_v13 = vld [vmem:[%s856_s23 + $0x20] sm:$0xff]   ;;  %v655_v15 = vld [vmem:[%s856_s23 + $0x28] sm:$0xff]  }
  0x15   : > { %v664_v16 = vld [vmem:[%s856_s23 + $0x70] sm:$0xff]   ;;  %v665_v18 = vld [vmem:[%s856_s23 + $0x78] sm:$0xff]  }
  0x16   : > { %v656_v17 = vld [vmem:[%s856_s23 + $0x30] sm:$0xff]   ;;  %v657_v19 = vld [vmem:[%s856_s23 + $0x38] sm:$0xff]  }
  0x1b   : > { %711 = vmatpush3.bf16.xpose.msk.msra.mxu0 %vm849_vm1, %v651_v7 }
  0x1c   : > { %714 = vmatprep.subr.msk.bf16.mxu0 %vm849_vm1, %v660_v8 }
  0x23   : > { %717 = vmatpush3.bf16.xpose.msk.msra.mxu0 %vm849_vm1, %v652_v9 }
  0x24   : > { %720 = vmatprep.subr.msk.bf16.mxu0 %vm849_vm1, %v661_v10 }
  0x2b   : > { %723 = vmatpush3.bf16.xpose.msk.msra.mxu0 %vm849_vm1, %v653_v11 }
  0x2c   : > { %726 = vmatprep.subr.msk.bf16.mxu0 %vm849_vm1, %v662_v12 }
  0x33   : > { %729 = vmatpush3.bf16.xpose.msk.msra.mxu0 %vm849_vm1, %v654_v13 }
  0x34   : > { %732 = vmatprep.subr.msk.bf16.mxu0 %vm849_vm1, %v663_v14 }
  0x3b   : > { %735 = vmatpush3.bf16.xpose.msk.msra.mxu0 %vm849_vm1, %v655_v15 }
  0x3c   : > { %738 = vmatprep.subr.msk.bf16.mxu0 %vm849_vm1, %v664_v16 }
  0x43   : > { %741 = vmatpush3.bf16.xpose.msk.msra.mxu0 %vm849_vm1, %v656_v17 }
  0x44   : > { %744 = vmatprep.subr.msk.bf16.mxu0 %vm849_vm1, %v665_v18 }
  0x4b   : > { %747 = vmatpush3.bf16.xpose.msk.msra.mxu0 %vm849_vm1, %v657_v19 }
  0x52   : > { %699 = vmatmul.mubr.msk.f32.vlgmr.msra.gmra.mrb[0].mxu0 %vm281_vm0, %v274_v0 }
  0x87   : > { %v279_v20 = vpop.permute.xlu0 %278 }
 0x125   : > { %v447_v21 = vpop.f32.mrb[0].mxu0 }
 0x126   : > { %v448_v22 = vadd.f32 %v447_v21, %v279_v20  ;;  %v449_v23 = vpop.f32.mrb[1].mxu0 }
 0x127   : > { %v450_v24 = vadd.f32 %v449_v23, %v279_v20 }
 0x128   : > { %452 = vst [vmem:[%s208_s27] sm:$0xff] %v448_v22 }
 0x129   : > { %453 = vst [vmem:[%s208_s27 + $0x8] sm:$0xff] %v450_v24 }
 0x12a PF: > { %s13_s14 = sadd.s32 1, %s796_s14   ;;  %s926_s12 = smov %s792_s13 }
 0x12b   : > { %p10_p5 = scmp.ge.s32.totalorder %s13_s14, 4   ;;  %s927_s13 = smov %s929_s15 }
 0x12d   :  { %12 = sbr.rel (!%p10_p5) target bundleno = 2 (0x2), region = 62 }

// kernel: basic_conv2d.2
= control target key start
LH: loop header
LB: loop body
LE: loop exit
PB: predicated region body
PF: predicated region fallthrough
CT: control target
= control target key end

     0   :  { %s6837_s15 = smov 0   ;;  %s6839_s16 = smov 0   ;;  %s8733_s0 = inlined_call_operand.vmem [shape: bf16[2,18,18,4], index: 0, kind: input, shape index: {}]   ;;  %s8734_s1 = inlined_call_operand.vmem [shape: bf16[9,4,8], index: 1, kind: input, shape index: {}]   ;;  %s8735_s2 = inlined_call_operand.vmem [shape: bf16[2,256,8], index: 2, kind: output, shape index: {0}]   ;;  %s8736_s3 = inlined_call_operand.vmem [shape: f32[2,1,1,8], index: 3, kind: output, shape index: {1}]   ;;  %s8737_s4 = inlined_call_operand.vmem [shape: f32[2,1,1,8], index: 4, kind: output, shape index: {2}]  }
   0x1   :  { %s6841_s17 = smov 0  }
   0x2 LB: > { %s27_s18 = sadd.s32 1, %s6806_s16  ;;  %p5324_p0 = scmp.ge.s32.totalorder %s6810_s17, 1  ;;  %s6810_s17 = sphi %s6841_s17, %s15_s17   ;;  %s6806_s16 = sphi %s6839_s16, %s8806_s16   ;;  %s6802_s15 = sphi %s6837_s15, %s8805_s15  }
   0x3   : > { %p29_p1 = scmp.ge.s32.totalorder %s27_s18, 2  ;;  %p185_p2 = scmp.lt.s32.totalorder %s6810_s17, 3 }
   0x5   : > { %s8808_s18 = smov (%p29_p1, %s27_s18), 0  ;;  %p186_p3 = pnand %p5324_p0, %p185_p2 }
   0x7   : > { %189 = sbr.rel (%p186_p3) target bundleno = 607 (0x25f), region = 28 }
   0xe   : > { %v5328_v0 = vld [vmem:[%s8734_s1 + $0x2] sm:$0x3]  ;;  %vm794_vm0 = vcmask 1041408   ;;  %v5555_v1 = vld [vmem:[%s8734_s1 + $0x8] sm:$0x3]  ;;  %p227_p4 = scmp.lt.s32.totalorder %s6802_s15, 1 }
   0xf   : > { %6648 = vmatprep.subr.msk.bf16.mxu1 %vm794_vm0, %v5328_v0  ;;  %6652 = vmatprep.subr.msk.bf16.mxu0 %vm794_vm0, %v5555_v1  ;;  %v796_v2 = vsel %vm794_vm0, %v5328_v0, 0  ;;  %v6865_v3 = vsel %vm794_vm0, %v5555_v1, 0  ;;  %v291_v4 = vld [vmem:[%s8734_s1] sm:$0x3]  ;;  %v5620_v5 = vld [vmem:[%s8734_s1 + $0xa] sm:$0x3] }
  0x10   : > { %8751 = vst [vmem:[#allocation2_spill] sm:$0xff] %v6865_v3  ;;  %6085 = vmatpush3.bf16.msra.mxu1 %v796_v2  ;;  %6221 = vmatpush3.bf16.msra.mxu0 %v6865_v3  ;;  %s8810_s15 = smov (!%p227_p4, %s6802_s15), 1  ;;  %vm308_vm1 = vsmask.f32 3328  ;;  %vm309_vm2 = vsmask.f32 7440 }
  0x11   : > { %6649 = vmatprep.subr.msk.bf16.mxu1 %vm794_vm0, %v291_v4  ;;  %6654 = vmatprep.subr.msk.bf16.mxu0 %vm794_vm0, %v5620_v5  ;;  %s6658_s27 = smul.u32 216, %s8810_s15  ;;  %vm745_vm3 = vcmask 31744   ;;  %v6895_v17 = vsel %vm794_vm0, %v291_v4, 0  ;;  %v6901_v26 = vld [vmem:[%s8734_s1 + $0xc] sm:$0x3]  ;;  %vm6908_vm4 = vmor %vm308_vm1, %vm309_vm2  ;;  %v6914_v37 = vsel %vm794_vm0, %v5620_v5, 0  ;;  %s247_s29 = scalar_lea.vmem %s8736_s3, %s8810_s15 }
  0x12   : > { %v6918_v41 = vsel %vm794_vm0, %v6901_v26, 0  ;;  %vm1299_vm5 = vcmask 1042432   ;;  %vm1300_vm6 = vcmask 1046532   ;;  %s5898_s23 = sshll.u32 %s8810_s15, 7  ;;  %vm4952_vm8 = vcmask 60416   ;;  %s253_s6 = scalar_lea.vmem %s8737_s4, %s8810_s15 }
  0x13   : > { %s6882_s30 = scalar_lea.vmem %s8733_s0, %s6658_s27  ;;  %vm7134_vm7 = vmor %vm1299_vm5, %vm1300_vm6  ;;  %s8578_s26 = scalar_lea.vmem %s8735_s2, %s5898_s23  ;;  %vm4985_vm9 = vcmask 64512   ;;  %vm5055_vm10 = vcmask 57344  }
  0x14   : > { %v259_v6 = vld [vmem:[%s6882_s30] sm:$0xf]  ;;  %v260_v7 = vld [vmem:[%s6882_s30 + $0x4] sm:$0xf]  ;;  %v292_v8 = vld [vmem:[%s6882_s30 + $0x8] sm:$0x1] }
  0x15   : > { %v312_v9 = vshrl.u32 %v259_v6, 16  ;;  %v315_v10 = vshll.u32 %v259_v6, 16  ;;  %v321_v11 = vshll.u32 %v260_v7, 16  ;;  %v325_v12 = vshrl.u32 %v260_v7, 16  ;;  %v5507_v13 = vld [vmem:[%s6882_s30 + $0xc] sm:$0xf] }
  0x16   : > { %v331_v14 = vshll.u32 %v292_v8, 16  ;;  %v6889_v15 = vld [vmem:[%s6882_s30 + $0x10] sm:$0xf]  ;;  %v6892_v16 = vld [vmem:[%s6882_s30 + $0x14] sm:$0x1]  ;;  %v2119_v23 = vshrl.u32 %v5507_v13, 16 }
  0x17   : > { %v314_v18 = vrot.slane %v312_v9, 4  ;;  %v317_v19 = vrot.slane %v315_v10, 5  ;;  %v323_v20 = vrot.slane %v321_v11, 5  ;;  %v327_v21 = vrot.slane %v325_v12, 4  ;;  %v261_v31 = vld [vmem:[%s6882_s30 + $0xc] sm:$0xf] }
  0x18   : > { %v333_v22 = vrot.slane %v331_v14, 5  ;;  %v2122_v24 = vshll.u32 %v5507_v13, 16  ;;  %v2128_v25 = vshll.u32 %v6889_v15, 16  ;;  %v2132_v29 = vshrl.u32 %v6889_v15, 16  ;;  %v262_v36 = vld [vmem:[%s6882_s30 + $0x10] sm:$0xf] }
  0x19   : > { %v318_v27 = vor.u32 %v317_v19, %v314_v18  ;;  %v328_v28 = vor.u32 %v327_v21, %v323_v20  ;;  %v2138_v30 = vshll.u32 %v6892_v16, 16  ;;  %v2121_v33 = vrot.slane %v2119_v23, 4  ;;  %v293_v44 = vld [vmem:[%s6882_s30 + $0x14] sm:$0x1]  ;;  %v5510_v55 = vld [vmem:[%s6882_s30 + $0x18] sm:$0xf] }
  0x1a   : > { %v2124_v34 = vrot.slane %v2122_v24, 5  ;;  %v2130_v35 = vrot.slane %v2128_v25, 5  ;;  %v2134_v40 = vrot.slane %v2132_v29, 4  ;;  %v336_v45 = vshrl.u32 %v261_v31, 16  ;;  %v6927_v60 = vld [vmem:[%s6882_s30 + $0x1c] sm:$0xf] }
  0x1b   : > { %v319_v38 = vrot.slane %v318_v27, 4  ;;  %v329_v39 = vrot.slane %v328_v28, 4  ;;  %v2140_v43 = vrot.slane %v2138_v30, 5  ;;  %v339_v46 = vshll.u32 %v261_v31, 16  ;;  %v6935_v1 = vld [vmem:[%s6882_s30 + $0x20] sm:$0x1] }
  0x1c   : > { %v2125_v42 = vor.u32 %v2124_v34, %v2121_v33  ;;  %v2135_v49 = vor.u32 %v2134_v40, %v2130_v35  ;;  %v345_v50 = vshll.u32 %v262_v36, 16  ;;  %v338_v53 = vrot.slane %v336_v45, 4  ;;  %v263_v18 = vld [vmem:[%s6882_s30 + $0x18] sm:$0xf]  ;;  %v264_v23 = vld [vmem:[%s6882_s30 + $0x1c] sm:$0xf] }
  0x1d   : > { %v324_v47 = vsel %vm6908_vm4, %v319_v38, %v323_v20  ;;  %v334_v48 = vsel %vm6908_vm4, %v329_v39, %v333_v22  ;;  %v341_v54 = vrot.slane %v339_v46, 5  ;;  %v349_v58 = vshrl.u32 %v262_v36, 16  ;;  %v294_v31 = vld [vmem:[%s6882_s30 + $0x20] sm:$0x1]  ;;  %v5513_v40 = vld [vmem:[%s6882_s30 + $0x24] sm:$0xf] }
  0x1e   : > { %v5329_v51 = vcombine.low %v324_v47, %v334_v48  ;;  %v2126_v52 = vrot.slane %v2125_v42, 4  ;;  %v2136_v56 = vrot.slane %v2135_v49, 4  ;;  %v347_v57 = vrot.slane %v345_v50, 5  ;;  %v6958_v46 = vld [vmem:[%s6882_s30 + $0x28] sm:$0xf] }
  0x1f   : > { %v355_v59 = vshll.u32 %v293_v44, 16  ;;  %v2862_v62 = vrot.slane %v6889_v15, 5  ;;  %v2865_v63 = vrot.slane %v6892_v16, 5  ;;  %v342_v0 = vor.u32 %v341_v54, %v338_v53  ;;  %v6967_v54 = vld [vmem:[%s6882_s30 + $0x2c] sm:$0x1] }
  0x20   : > { %6086 = vmatprep.mubr.msk.bf16.mxu1 %vm745_vm3, %v5329_v51  ;;  %v2131_v61 = vsel %vm6908_vm4, %v2126_v52, %v2130_v35  ;;  %v2141_v2 = vsel %vm6908_vm4, %v2136_v56, %v2140_v43  ;;  %v351_v4 = vrot.slane %v349_v58, 4  ;;  %v2143_v6 = vshrl.u32 %v5510_v55, 16  ;;  %v5409_v51 = vld [vmem:[%s8734_s1 + $0x4] sm:$0x3]  ;;  %v7167_v16 = vld [vmem:[%s6882_s30 + $0x7c] sm:$0xf] }
  0x21   : > { %v357_v5 = vrot.slane %v355_v59, 5  ;;  %v5556_v7 = vcombine.low %v2131_v61, %v2141_v2  ;;  %v343_v8 = vrot.slane %v342_v0, 4  ;;  %v2146_v9 = vshll.u32 %v5510_v55, 16  ;;  %v265_v0 = vld [vmem:[%s6882_s30 + $0x24] sm:$0xf] }
  0x22   : > { %v2152_v10 = vshll.u32 %v6927_v60, 16  ;;  %v352_v11 = vor.u32 %v351_v4, %v347_v57  ;;  %v2145_v12 = vrot.slane %v2143_v6, 4  ;;  %v2156_v13 = vshrl.u32 %v6927_v60, 16 }
  0x23   : > { %v2162_v14 = vshll.u32 %v6935_v1, 16  ;;  %6222 = vmatprep.mubr.msk.bf16.mxu0 %vm745_vm3, %v5556_v7  ;;  %v348_v19 = vsel %vm6908_vm4, %v343_v8, %v347_v57  ;;  %v2148_v20 = vrot.slane %v2146_v9, 5  ;;  %v2869_v22 = vrot.slane %v6927_v60, 5  ;;  %v266_v7 = vld [vmem:[%s6882_s30 + $0x28] sm:$0xf] }
  0x24   : > { %v2154_v21 = vrot.slane %v2152_v10, 5  ;;  %v353_v24 = vrot.slane %v352_v11, 4  ;;  %v2158_v25 = vrot.slane %v2156_v13, 4  ;;  %v2872_v28 = vrot.slane %v6935_v1, 5  ;;  %v295_v13 = vld [vmem:[%s6882_s30 + $0x2c] sm:$0x1] }
  0x25   : > { %v2164_v27 = vrot.slane %v2162_v14, 5  ;;  %v2149_v29 = vor.u32 %v2148_v20, %v2145_v12  ;;  %v6951_v30 = vrot.slane %v2869_v22, 4  ;;  %v360_v33 = vshrl.u32 %v263_v18, 16 }
  0x26   : > { %v363_v34 = vshll.u32 %v263_v18, 16  ;;  %v358_v35 = vsel %vm6908_vm4, %v353_v24, %v357_v5  ;;  %v2159_v36 = vor.u32 %v2158_v25, %v2154_v21  ;;  %v369_v38 = vshll.u32 %v264_v23, 16  ;;  %v5516_v24 = vld [vmem:[%s6882_s30 + $0x30] sm:$0xf] }
  0x27   : > { %v373_v39 = vshrl.u32 %v264_v23, 16  ;;  %v5330_v42 = vcombine.low %v348_v19, %v358_v35  ;;  %v2150_v43 = vrot.slane %v2149_v29, 4  ;;  %v362_v44 = vrot.slane %v360_v33, 4  ;;  %v6987_v33 = vld [vmem:[%s6882_s30 + $0x34] sm:$0xf] }
  0x28   : > { %v365_v45 = vrot.slane %v363_v34, 5  ;;  %v2160_v47 = vrot.slane %v2159_v36, 4  ;;  %v371_v48 = vrot.slane %v369_v38, 5  ;;  %v379_v50 = vshll.u32 %v294_v31, 16 }
  0x29   : > { %v375_v49 = vrot.slane %v373_v39, 4  ;;  %6087 = vmatmul.mubr.msk.bf16.vlgmr.msra.gmra.mrb[0].mxu1 %vm745_vm3, %v5330_v42  ;;  %v2155_v52 = vsel %vm6908_vm4, %v2150_v43, %v2154_v21  ;;  %v2167_v55 = vshrl.u32 %v5513_v40, 16  ;;  %v2170_v56 = vshll.u32 %v5513_v40, 16  ;;  %v6995_v40 = vld [vmem:[%s6882_s30 + $0x38] sm:$0x1] }
  0x2a   : > { %v366_v53 = vor.u32 %v365_v45, %v362_v44  ;;  %6119 = vmatpush3.bf16.msra.mxu1 %v6895_v17  ;;  %v2165_v57 = vsel %vm6908_vm4, %v2160_v47, %v2164_v27  ;;  %v381_v59 = vrot.slane %v379_v50, 5  ;;  %v2176_v61 = vshll.u32 %v6958_v46, 16 }
  0x2b   : > { %v376_v58 = vor.u32 %v375_v49, %v371_v48  ;;  %v5557_v2 = vcombine.low %v2155_v52, %v2165_v57  ;;  %v2169_v5 = vrot.slane %v2167_v55, 4  ;;  %v2172_v6 = vrot.slane %v2170_v56, 5  ;;  %6650 = vmatprep.subr.msk.bf16.mxu1 %vm794_vm0, %v5409_v51  ;;  %v267_v52 = vld [vmem:[%s6882_s30 + $0x30] sm:$0xf] }
  0x2c   : > { %v367_v4 = vrot.slane %v366_v53, 4  ;;  %v2178_v9 = vrot.slane %v2176_v61, 5  ;;  %v2180_v17 = vshrl.u32 %v6958_v46, 16  ;;  %v2186_v10 = vshll.u32 %v6967_v54, 16 }
  0x2d   : > { %v377_v8 = vrot.slane %v376_v58, 4  ;;  %6223 = vmatmul.mubr.msk.bf16.vlgmr.msra.gmra.mrb[0].mxu0 %vm745_vm3, %v5557_v2  ;;  %v2173_v12 = vor.u32 %v2172_v6, %v2169_v5  ;;  %v384_v14 = vshrl.u32 %v265_v0, 16  ;;  %v387_v18 = vshll.u32 %v265_v0, 16  ;;  %v268_v58 = vld [vmem:[%s6882_s30 + $0x34] sm:$0xf] }
  0x2e   : > { %v372_v11 = vsel %vm6908_vm4, %v367_v4, %v371_v48  ;;  %6255 = vmatpush3.bf16.msra.mxu0 %v6914_v37  ;;  %v2182_v20 = vrot.slane %v2180_v17, 4  ;;  %v2188_v21 = vrot.slane %v2186_v10, 5  ;;  %v393_v23 = vshll.u32 %v266_v7, 16  ;;  %v296_v4 = vld [vmem:[%s6882_s30 + $0x38] sm:$0x1] }
  0x2f   : > { %v382_v19 = vsel %vm6908_vm4, %v377_v8, %v381_v59  ;;  %v2174_v27 = vrot.slane %v2173_v12, 4  ;;  %v386_v29 = vrot.slane %v384_v14, 4  ;;  %v389_v31 = vrot.slane %v387_v18, 5  ;;  %6655 = vmatprep.subr.msk.bf16.mxu0 %vm794_vm0, %v6901_v26  ;;  %v5519_v12 = vld [vmem:[%s6882_s30 + $0x3c] sm:$0xf] }
  0x30   : > { %v5331_v25 = vcombine.low %v372_v11, %v382_v19  ;;  %v2183_v34 = vor.u32 %v2182_v20, %v2178_v9  ;;  %v395_v35 = vrot.slane %v393_v23, 5  ;;  %v397_v37 = vshrl.u32 %v266_v7, 16  ;;  %v7012_v20 = vld [vmem:[%s6882_s30 + $0x40] sm:$0xf] }
  0x31   : > { %v403_v36 = vshll.u32 %v295_v13, 16  ;;  %v2179_v38 = vsel %vm6908_vm4, %v2174_v27, %v2178_v9  ;;  %v390_v39 = vor.u32 %v389_v31, %v386_v29  ;;  %v2191_v42 = vshrl.u32 %v5516_v24, 16 }
  0x32   : > { %6090 = vmatprep.mubr.msk.bf16.mxu1 %vm745_vm3, %v5331_v25  ;;  %v2194_v43 = vshll.u32 %v5516_v24, 16  ;;  %v2184_v44 = vrot.slane %v2183_v34, 4  ;;  %v399_v45 = vrot.slane %v397_v37, 4  ;;  %v2200_v26 = vshll.u32 %v6987_v33, 16  ;;  %v7017_v34 = vld [vmem:[%s6882_s30 + $0x44] sm:$0x1] }
  0x33   : > { %v405_v47 = vrot.slane %v403_v36, 5  ;;  %v391_v48 = vrot.slane %v390_v39, 4  ;;  %v2193_v49 = vrot.slane %v2191_v42, 4  ;;  %v2204_v51 = vshrl.u32 %v6987_v33, 16  ;;  %v269_v42 = vld [vmem:[%s6882_s30 + $0x3c] sm:$0xf] }
  0x34   : > { %v2196_v50 = vrot.slane %v2194_v43, 5  ;;  %v2189_v53 = vsel %vm6908_vm4, %v2184_v44, %v2188_v21  ;;  %v400_v55 = vor.u32 %v399_v45, %v395_v35  ;;  %v2202_v56 = vrot.slane %v2200_v26, 5  ;;  %v270_v26 = vld [vmem:[%s6882_s30 + $0x40] sm:$0xf] }
  0x35   : > { %v2210_v57 = vshll.u32 %v6995_v40, 16  ;;  %v5558_v59 = vcombine.low %v2179_v38, %v2189_v53  ;;  %v396_v61 = vsel %vm6908_vm4, %v391_v48, %v395_v35  ;;  %v2206_v2 = vrot.slane %v2204_v51, 4 }
  0x36   : > { %v2197_v0 = vor.u32 %v2196_v50, %v2193_v49  ;;  %v401_v5 = vrot.slane %v400_v55, 4  ;;  %v408_v7 = vshrl.u32 %v267_v52, 16  ;;  %v411_v8 = vshll.u32 %v267_v52, 16 }
  0x37   : > { %v2212_v6 = vrot.slane %v2210_v57, 5  ;;  %6226 = vmatprep.mubr.msk.bf16.mxu0 %vm745_vm3, %v5558_v59  ;;  %v2207_v17 = vor.u32 %v2206_v2, %v2202_v56  ;;  %v417_v10 = vshll.u32 %v268_v58, 16  ;;  %v421_v11 = vshrl.u32 %v268_v58, 16  ;;  %v5522_v2 = vld [vmem:[%s6882_s30 + $0x48] sm:$0xf] }
  0x38   : > { %v2198_v9 = vrot.slane %v2197_v0, 4  ;;  %v406_v13 = vsel %vm6908_vm4, %v401_v5, %v405_v47  ;;  %v410_v14 = vrot.slane %v408_v7, 4  ;;  %v413_v18 = vrot.slane %v411_v8, 5  ;;  %v7035_v8 = vld [vmem:[%s6882_s30 + $0x4c] sm:$0xf] }
  0x39   : > { %v427_v19 = vshll.u32 %v296_v4, 16  ;;  %v5332_v21 = vcombine.low %v396_v61, %v406_v13  ;;  %v2208_v24 = vrot.slane %v2207_v17, 4  ;;  %v419_v25 = vrot.slane %v417_v10, 5  ;;  %v297_v61 = vld [vmem:[%s6882_s30 + $0x44] sm:$0x1] }
  0x3a   : > { %v2203_v23 = vsel %vm6908_vm4, %v2198_v9, %v2202_v56  ;;  %v414_v27 = vor.u32 %v413_v18, %v410_v14  ;;  %v423_v29 = vrot.slane %v421_v11, 4  ;;  %v2215_v35 = vshrl.u32 %v5519_v12, 16 }
  0x3b   : > { %v429_v31 = vrot.slane %v427_v19, 5  ;;  %6091 = vmatmul.mubr.msk.bf16.gmra.mrb[4].mxu1 %vm745_vm3, %v5332_v21  ;;  %v2213_v37 = vsel %vm6908_vm4, %v2208_v24, %v2212_v6  ;;  %v2218_v36 = vshll.u32 %v5519_v12, 16  ;;  %v2224_v38 = vshll.u32 %v7012_v20, 16 }
  0x3c   : > { %v2228_v39 = vshrl.u32 %v7012_v20, 16  ;;  %v5559_v43 = vcombine.low %v2203_v23, %v2213_v37  ;;  %v415_v44 = vrot.slane %v414_v27, 4  ;;  %v424_v45 = vor.u32 %v423_v29, %v419_v25  ;;  %v7043_v23 = vld [vmem:[%s6882_s30 + $0x50] sm:$0x1]  ;;  %v7047_v27 = vld [vmem:[%s6882_s30 + $0x48] sm:$0xf] }
  0x3d   : > { %v2217_v47 = vrot.slane %v2215_v35, 4  ;;  %v2220_v48 = vrot.slane %v2218_v36, 5  ;;  %v2226_v49 = vrot.slane %v2224_v38, 5  ;;  %v2234_v51 = vshll.u32 %v7017_v34, 16  ;;  %v7050_v36 = vld [vmem:[%s6882_s30 + $0x4c] sm:$0xf] }
  0x3e   : > { %v2230_v50 = vrot.slane %v2228_v39, 4  ;;  %6227 = vmatmul.mubr.msk.bf16.gmra.mrb[4].mxu0 %vm745_vm3, %v5559_v43  ;;  %v420_v52 = vsel %vm6908_vm4, %v415_v44, %v419_v25  ;;  %v425_v53 = vrot.slane %v424_v45, 4  ;;  %v432_v55 = vshrl.u32 %v269_v42, 16 }
  0x3f   : > { %v435_v56 = vshll.u32 %v269_v42, 16  ;;  %v2221_v57 = vor.u32 %v2220_v48, %v2217_v47  ;;  %v2236_v59 = vrot.slane %v2234_v51, 5  ;;  %v441_v0 = vshll.u32 %v270_v26, 16 }
  0x40   : > { %v2231_v58 = vor.u32 %v2230_v50, %v2226_v49  ;;  %v430_v4 = vsel %vm6908_vm4, %v425_v53, %v429_v31  ;;  %v434_v5 = vrot.slane %v432_v55, 4  ;;  %v445_v7 = vshrl.u32 %v270_v26, 16  ;;  %v298_v26 = vld [vmem:[%s6882_s30 + $0x50] sm:$0x1]  ;;  %v5525_v53 = vld [vmem:[%s6882_s30 + $0x54] sm:$0xf] }
  0x41   : > { %v437_v6 = vrot.slane %v435_v56, 5  ;;  %v5333_v9 = vcombine.low %v420_v52, %v430_v4  ;;  %v2222_v17 = vrot.slane %v2221_v57, 4  ;;  %v443_v11 = vrot.slane %v441_v0, 5  ;;  %v7066_v4 = vld [vmem:[%s6882_s30 + $0x58] sm:$0xf] }
  0x42   : > { %v2232_v10 = vrot.slane %v2231_v58, 4  ;;  %v447_v13 = vrot.slane %v445_v7, 4  ;;  %v451_v14 = vshll.u32 %v297_v61, 16  ;;  %v2239_v18 = vshrl.u32 %v5522_v2, 16 }
  0x43   : > { %v438_v12 = vor.u32 %v437_v6, %v434_v5  ;;  %6094 = vmatprep.mubr.msk.bf16.mxu1 %vm745_vm3, %v5333_v9  ;;  %v2227_v19 = vsel %vm6908_vm4, %v2222_v17, %v2226_v49  ;;  %v2242_v24 = vshll.u32 %v5522_v2, 16  ;;  %v2248_v25 = vshll.u32 %v7035_v8, 16 }
  0x44   : > { %v2237_v21 = vsel %vm6908_vm4, %v2232_v10, %v2236_v59  ;;  %v448_v35 = vor.u32 %v447_v13, %v443_v11  ;;  %v453_v37 = vrot.slane %v451_v14, 5  ;;  %v2241_v38 = vrot.slane %v2239_v18, 4 }
  0x45   : > { %v5560_v29 = vcombine.low %v2227_v19, %v2237_v21  ;;  %v439_v31 = vrot.slane %v438_v12, 4  ;;  %v2244_v39 = vrot.slane %v2242_v24, 5  ;;  %v2250_v42 = vrot.slane %v2248_v25, 5  ;;  %v7072_v12 = vld [vmem:[%s6882_s30 + $0x5c] sm:$0x1] }
  0x46   : > { %v2252_v43 = vshrl.u32 %v7035_v8, 16  ;;  %v449_v45 = vrot.slane %v448_v35, 4  ;;  %v2258_v47 = vshll.u32 %v7043_v23, 16  ;;  %v456_v48 = vshrl.u32 %v7047_v27, 16  ;;  %v7076_v24 = vld [vmem:[%s6882_s30 + $0x54] sm:$0xf] }
  0x47   : > { %6230 = vmatprep.mubr.msk.bf16.mxu0 %vm745_vm3, %v5560_v29  ;;  %v444_v44 = vsel %vm6908_vm4, %v439_v31, %v443_v11  ;;  %v2245_v49 = vor.u32 %v2244_v39, %v2241_v38  ;;  %v459_v51 = vshll.u32 %v7047_v27, 16  ;;  %v465_v52 = vshll.u32 %v7050_v36, 16 }
  0x48   : > { %v2254_v50 = vrot.slane %v2252_v43, 4  ;;  %v454_v55 = vsel %vm6908_vm4, %v449_v45, %v453_v37  ;;  %v2260_v56 = vrot.slane %v2258_v47, 5  ;;  %v458_v57 = vrot.slane %v456_v48, 4  ;;  %v7082_v37 = vld [vmem:[%s6882_s30 + $0x58] sm:$0xf] }
  0x49   : > { %v469_v58 = vshrl.u32 %v7050_v36, 16  ;;  %v5334_v59 = vcombine.low %v444_v44, %v454_v55  ;;  %v2246_v61 = vrot.slane %v2245_v49, 4  ;;  %v461_v2 = vrot.slane %v459_v51, 5 }
  0x4a   : > { %v2255_v0 = vor.u32 %v2254_v50, %v2250_v42  ;;  %v467_v5 = vrot.slane %v465_v52, 5  ;;  %v475_v7 = vshll.u32 %v298_v26, 16  ;;  %v2263_v9 = vshrl.u32 %v5525_v53, 16  ;;  %v299_v26 = vld [vmem:[%s6882_s30 + $0x5c] sm:$0x1] }
  0x4b   : > { %v471_v6 = vrot.slane %v469_v58, 4  ;;  %6095 = vmatmul.mubr.msk.bf16.gmra.mrb[8].mxu1 %vm745_vm3, %v5334_v59  ;;  %v2251_v17 = vsel %vm6908_vm4, %v2246_v61, %v2250_v42  ;;  %v462_v11 = vor.u32 %v461_v2, %v458_v57  ;;  %v2266_v13 = vshll.u32 %v5525_v53, 16  ;;  %v5528_v53 = vld [vmem:[%s6882_s30 + $0x60] sm:$0xf]  ;;  %v7096_v59 = vld [vmem:[%s6882_s30 + $0x64] sm:$0xf] }
  0x4c   : > { %v2256_v10 = vrot.slane %v2255_v0, 4  ;;  %v477_v18 = vrot.slane %v475_v7, 5  ;;  %v2265_v19 = vrot.slane %v2263_v9, 4  ;;  %v2272_v21 = vshll.u32 %v7066_v4, 16  ;;  %v7103_v9 = vld [vmem:[%s6882_s30 + $0x68] sm:$0x1] }
  0x4d   : > { %v472_v14 = vor.u32 %v471_v6, %v467_v5  ;;  %v463_v29 = vrot.slane %v462_v11, 4  ;;  %v2268_v31 = vrot.slane %v2266_v13, 5  ;;  %v2276_v35 = vshrl.u32 %v7066_v4, 16 }
  0x4e   : > { %v2261_v25 = vsel %vm6908_vm4, %v2256_v10, %v2260_v56  ;;  %v2274_v42 = vrot.slane %v2272_v21, 5  ;;  %v2282_v43 = vshll.u32 %v7072_v12, 16  ;;  %v480_v48 = vshrl.u32 %v7076_v24, 16 }
  0x4f   : > { %v5561_v38 = vcombine.low %v2251_v17, %v2261_v25  ;;  %v473_v39 = vrot.slane %v472_v14, 4  ;;  %v468_v44 = vsel %vm6908_vm4, %v463_v29, %v467_v5  ;;  %v2269_v45 = vor.u32 %v2268_v31, %v2265_v19  ;;  %v7107_v19 = vld [vmem:[%s6882_s30 + $0x60] sm:$0xf] }
  0x50   : > { %v2278_v47 = vrot.slane %v2276_v35, 4  ;;  %v2284_v50 = vrot.slane %v2282_v43, 5  ;;  %v483_v51 = vshll.u32 %v7076_v24, 16  ;;  %v489_v52 = vshll.u32 %v7082_v37, 16  ;;  %v7113_v35 = vld [vmem:[%s6882_s30 + $0x64] sm:$0xf] }
  0x51   : > { %6231 = vmatmul.mubr.msk.bf16.gmra.mrb[8].mxu0 %vm745_vm3, %v5561_v38  ;;  %v478_v49 = vsel %vm6908_vm4, %v473_v39, %v477_v18  ;;  %v2270_v56 = vrot.slane %v2269_v45, 4  ;;  %v482_v58 = vrot.slane %v480_v48, 4  ;;  %v493_v2 = vshrl.u32 %v7082_v37, 16 }
  0x52   : > { %v5335_v55 = vcombine.low %v468_v44, %v478_v49  ;;  %v2279_v57 = vor.u32 %v2278_v47, %v2274_v42  ;;  %v485_v61 = vrot.slane %v483_v51, 5  ;;  %v491_v0 = vrot.slane %v489_v52, 5 }
  0x53   : > { %v499_v5 = vshll.u32 %v299_v26, 16  ;;  %v2275_v6 = vsel %vm6908_vm4, %v2270_v56, %v2274_v42  ;;  %v2287_v17 = vshrl.u32 %v5528_v53, 16  ;;  %v2290_v10 = vshll.u32 %v5528_v53, 16 }
  0x54   : > { %6098 = vmatprep.mubr.msk.bf16.mxu1 %vm745_vm3, %v5335_v55  ;;  %v2280_v7 = vrot.slane %v2279_v57, 4  ;;  %v486_v11 = vor.u32 %v485_v61, %v482_v58  ;;  %v495_v13 = vrot.slane %v493_v2, 4  ;;  %v2296_v18 = vshll.u32 %v7096_v59, 16  ;;  %v5588_v58 = vld [vmem:[%s6882_s30 + $0xc] sm:$0xe] }
  0x55   : > { %v501_v14 = vrot.slane %v499_v5, 5  ;;  %v2289_v25 = vrot.slane %v2287_v17, 4  ;;  %v2292_v29 = vrot.slane %v2290_v10, 5  ;;  %v2300_v31 = vshrl.u32 %v7096_v59, 16 }
  0x56   : > { %v2285_v21 = vsel %vm6908_vm4, %v2280_v7, %v2284_v50  ;;  %v487_v39 = vrot.slane %v486_v11, 4  ;;  %v496_v42 = vor.u32 %v495_v13, %v491_v0  ;;  %v2298_v43 = vrot.slane %v2296_v18, 5  ;;  %v300_v50 = vld [vmem:[%s6882_s30 + $0x68] sm:$0x1] }
  0x57   : > { %v5562_v38 = vcombine.low %v2275_v6, %v2285_v21  ;;  %v2293_v44 = vor.u32 %v2292_v29, %v2289_v25  ;;  %v2302_v45 = vrot.slane %v2300_v31, 4  ;;  %v2306_v47 = vshll.u32 %v7103_v9, 16  ;;  %v7141_v29 = vld [vmem:[%s6882_s30 + $0x70] sm:$0xf] }
  0x58   : > { %v504_v26 = vshrl.u32 %v7107_v19, 16  ;;  %v492_v48 = vsel %vm6908_vm4, %v487_v39, %v491_v0  ;;  %v497_v49 = vrot.slane %v496_v42, 4  ;;  %v507_v51 = vshll.u32 %v7107_v19, 16  ;;  %v7128_v0 = vld [vmem:[%s6882_s30 + $0x6c] sm:$0xf] }
  0x59   : > { %6234 = vmatprep.mubr.msk.bf16.mxu0 %vm745_vm3, %v5562_v38  ;;  %v513_v52 = vshll.u32 %v7113_v35, 16  ;;  %v2294_v53 = vrot.slane %v2293_v44, 4  ;;  %v2303_v55 = vor.u32 %v2302_v45, %v2298_v43  ;;  %v2308_v56 = vrot.slane %v2306_v47, 5 }
  0x5a   : > { %v506_v57 = vrot.slane %v504_v26, 4  ;;  %v502_v61 = vsel %vm6908_vm4, %v497_v49, %v501_v14  ;;  %v509_v2 = vrot.slane %v507_v51, 5  ;;  %v517_v6 = vshrl.u32 %v7113_v35, 16  ;;  %v301_v26 = vld [vmem:[%s6882_s30 + $0x74] sm:$0x1] }
  0x5b   : > { %v515_v5 = vrot.slane %v513_v52, 5  ;;  %v5336_v7 = vcombine.low %v492_v48, %v502_v61  ;;  %v2299_v17 = vsel %vm6908_vm4, %v2294_v53, %v2298_v43  ;;  %v2304_v10 = vrot.slane %v2303_v55, 4  ;;  %v5589_v48 = vld [vmem:[%s6882_s30 + $0x18] sm:$0xe] }
  0x5c   : > { %v523_v11 = vshll.u32 %v300_v50, 16  ;;  %v510_v14 = vor.u32 %v509_v2, %v506_v57  ;;  %v519_v18 = vrot.slane %v517_v6, 4  ;;  %v5604_v21 = vrot.slane %v5588_v58, 9  ;;  %v7160_v53 = vld [vmem:[%s6882_s30 + $0x78] sm:$0xf] }
  0x5d   : > { %v2864_v25 = vrot.slane %v2862_v62, 4  ;;  %6099 = vmatmul.mubr.msk.bf16.gmra.mrb[12].mxu1 %vm745_vm3, %v5336_v7  ;;  %v2309_v31 = vsel %vm6908_vm4, %v2304_v10, %v2308_v56  ;;  %v528_v39 = vshrl.u32 %v7128_v0, 16  ;;  %v531_v42 = vshll.u32 %v7128_v0, 16  ;;  %v302_v57 = vld [vmem:[%s6882_s30 + $0x80] sm:$0x1] }
  0x5e   : > { %v525_v38 = vrot.slane %v523_v11, 5  ;;  %v5563_v43 = vcombine.low %v2299_v17, %v2309_v31  ;;  %v511_v44 = vrot.slane %v510_v14, 4  ;;  %v520_v45 = vor.u32 %v519_v18, %v515_v5  ;;  %v5590_v10 = vld [vmem:[%s6882_s30 + $0x24] sm:$0xe] }
  0x5f   : > { %v2863_v47 = vsel %vm7134_vm7, %v5604_v21, %v2862_v62  ;;  %v2866_v49 = vsel %vm7134_vm7, %v2864_v25, %v2865_v63  ;;  %v530_v50 = vrot.slane %v528_v39, 4  ;;  %v533_v51 = vrot.slane %v531_v42, 5  ;;  %v7186_v39 = vld [vmem:[%s6882_s30 + $0x84] sm:$0xf] }
  0x60   : > { %v537_v52 = vshll.u32 %v7141_v29, 16  ;;  %6235 = vmatmul.mubr.msk.bf16.gmra.mrb[12].mxu0 %vm745_vm3, %v5563_v43  ;;  %v516_v15 = vsel %vm6908_vm4, %v511_v44, %v515_v5  ;;  %v521_v62 = vrot.slane %v520_v45, 4  ;;  %v5621_v55 = vcombine.low %v2863_v47, %v2866_v49  ;;  %v7194_v43 = vld [vmem:[%s6882_s30 + $0x88] sm:$0xf] }
  0x61   : > { %v541_v56 = vshrl.u32 %v7141_v29, 16  ;;  %v534_v63 = vor.u32 %v533_v51, %v530_v50  ;;  %v547_v61 = vshll.u32 %v301_v26, 16  ;;  %v5605_v2 = vrot.slane %v5589_v48, 9 }
  0x62   : > { %v539_v58 = vrot.slane %v537_v52, 5  ;;  %v526_v6 = vsel %vm6908_vm4, %v521_v62, %v525_v38  ;;  %6256 = vmatprep.mubr.msk.bf16.mxu0 %vm745_vm3, %v5621_v55  ;;  %v2873_v5 = vsel %vm7134_vm7, %v6951_v30, %v2872_v28  ;;  %v552_v17 = vshrl.u32 %v7160_v53, 16  ;;  %v303_v52 = vld [vmem:[%s6882_s30 + $0x8c] sm:$0x1] }
  0x63   : > { %v543_v7 = vrot.slane %v541_v56, 4  ;;  %v5337_v11 = vcombine.low %v516_v15, %v526_v6  ;;  %v535_v14 = vrot.slane %v534_v63, 4  ;;  %v549_v18 = vrot.slane %v547_v61, 5 }
  0x64   : > { %v2870_v21 = vsel %vm7134_vm7, %v5605_v2, %v2869_v22  ;;  %v554_v38 = vrot.slane %v552_v17, 4  ;;  %v555_v1 = vshll.u32 %v7160_v53, 16  ;;  %v561_v30 = vshll.u32 %v7167_v16, 16  ;;  %v7199_v22 = vld [vmem:[%s8734_s1 + $0xe] sm:$0x3] }
  0x65   : > { %v544_v25 = vor.u32 %v543_v7, %v539_v58  ;;  %v5622_v31 = vcombine.low %v2870_v21, %v2873_v5  ;;  %6102 = vmatprep.mubr.msk.bf16.mxu1 %vm745_vm3, %v5337_v11  ;;  %v540_v28 = vsel %vm6908_vm4, %v535_v14, %v539_v58  ;;  %v565_v60 = vshrl.u32 %v7167_v16, 16  ;;  %v7218_v5 = vld [vmem:[%s6882_s30 + $0x90] sm:$0xf] }
  0x66   : > { %v571_v42 = vshll.u32 %v302_v57, 16  ;;  %v557_v45 = vrot.slane %v555_v1, 5  ;;  %v5606_v47 = vrot.slane %v5590_v10, 9  ;;  %v2876_v26 = vrot.slane %v6958_v46, 5  ;;  %v5591_v57 = vld [vmem:[%s6882_s30 + $0x30] sm:$0xe] }
  0x67   : > { %v545_v44 = vrot.slane %v544_v25, 4  ;;  %v563_v48 = vrot.slane %v561_v30, 5  ;;  %v567_v49 = vrot.slane %v565_v60, 4  ;;  %v2879_v51 = vrot.slane %v6967_v54, 5  ;;  %v7230_v30 = vld [vmem:[%s6882_s30 + $0x94] sm:$0xf] }
  0x68   : > { %v573_v50 = vrot.slane %v571_v42, 5  ;;  %6257 = vmatmul.mubr.msk.bf16.vlgmr.msra.gmra.mrb[0].mxu0 %vm745_vm3, %v5622_v31  ;;  %v558_v62 = vor.u32 %v557_v45, %v554_v38  ;;  %v2877_v55 = vsel %vm7134_vm7, %v5606_v47, %v2876_v26  ;;  %v2878_v56 = vrot.slane %v2876_v26, 4  ;;  %v304_v60 = vld [vmem:[%s6882_s30 + $0x98] sm:$0x1]  ;;  %v5592_v26 = vld [vmem:[%s6882_s30 + $0x3c] sm:$0xe] }
  0x69   : > { %v550_v15 = vsel %vm6908_vm4, %v545_v44, %v549_v18  ;;  %6289 = vmatpush3.bf16.msra.mxu0 %v6918_v41  ;;  %v568_v46 = vor.u32 %v567_v49, %v563_v48  ;;  %v576_v58 = vshrl.u32 %v7186_v39, 16  ;;  %v579_v54 = vshll.u32 %v7186_v39, 16 }
  0x6a   : > { %v5338_v63 = vcombine.low %v540_v28, %v550_v15  ;;  %v559_v61 = vrot.slane %v558_v62, 4  ;;  %v2880_v2 = vsel %vm7134_vm7, %v2878_v56, %v2879_v51  ;;  %v585_v6 = vshll.u32 %v7194_v43, 16  ;;  %6656 = vmatprep.subr.msk.bf16.mxu0 %vm794_vm0, %v7199_v22 }
  0x6b   : > { %v589_v7 = vshrl.u32 %v7194_v43, 16  ;;  %v569_v41 = vrot.slane %v568_v46, 4  ;;  %v5623_v17 = vcombine.low %v2877_v55, %v2880_v2  ;;  %v578_v10 = vrot.slane %v576_v58, 4  ;;  %v7250_v46 = vld [vmem:[%s6882_s30 + $0xa0] sm:$0xf] }
  0x6c   : > { %6103 = vmatmul.mubr.msk.bf16.gmra.mrb[16].mxu1 %vm745_vm3, %v5338_v63  ;;  %v581_v11 = vrot.slane %v579_v54, 5  ;;  %v564_v14 = vsel %vm6908_vm4, %v559_v61, %v563_v48  ;;  %v587_v18 = vrot.slane %v585_v6, 5  ;;  %v595_v25 = vshll.u32 %v303_v52, 16  ;;  %v7239_v52 = vld [vmem:[%s6882_s30 + $0x9c] sm:$0xf] }
  0x6d   : > { %v591_v21 = vrot.slane %v589_v7, 4  ;;  %v574_v31 = vsel %vm6908_vm4, %v569_v41, %v573_v50  ;;  %6260 = vmatprep.mubr.msk.bf16.mxu0 %vm745_vm3, %v5623_v17  ;;  %v5607_v1 = vrot.slane %v5591_v57, 9  ;;  %v2883_v28 = vrot.slane %v6987_v33, 5 }
  0x6e   : > { %v582_v38 = vor.u32 %v581_v11, %v578_v10  ;;  %v5339_v42 = vcombine.low %v564_v14, %v574_v31  ;;  %v597_v45 = vrot.slane %v595_v25, 5  ;;  %v2886_v47 = vrot.slane %v6995_v40, 5  ;;  %v305_v10 = vld [vmem:[%s6882_s30 + $0xa4] sm:$0x1]  ;;  %v5593_v11 = vld [vmem:[%s6882_s30 + $0x48] sm:$0xe] }
  0x6f   : > { %v592_v44 = vor.u32 %v591_v21, %v587_v18  ;;  %v2884_v49 = vsel %vm7134_vm7, %v5607_v1, %v2883_v28  ;;  %v2885_v50 = vrot.slane %v2883_v28, 4  ;;  %v600_v51 = vshrl.u32 %v7218_v5, 16 }
  0x70   : > { %v583_v48 = vrot.slane %v582_v38, 4  ;;  %6106 = vmatprep.mubr.msk.bf16.mxu1 %vm745_vm3, %v5339_v42  ;;  %v603_v15 = vshll.u32 %v7218_v5, 16  ;;  %v609_v62 = vshll.u32 %v7230_v30, 16  ;;  %v613_v40 = vshrl.u32 %v7230_v30, 16 }
  0x71   : > { %v593_v33 = vrot.slane %v592_v44, 4  ;;  %v2887_v56 = vsel %vm7134_vm7, %v2885_v50, %v2886_v47  ;;  %v602_v57 = vrot.slane %v600_v51, 4  ;;  %v619_v63 = vshll.u32 %v304_v60, 16 }
  0x72   : > { %v588_v55 = vsel %vm6908_vm4, %v583_v48, %v587_v18  ;;  %v5624_v54 = vcombine.low %v2884_v49, %v2887_v56  ;;  %v605_v61 = vrot.slane %v603_v15, 5  ;;  %v611_v2 = vrot.slane %v609_v62, 5  ;;  %v7276_v56 = vld [vmem:[%s6882_s30 + $0xac] sm:$0xf] }
  0x73   : > { %v598_v58 = vsel %vm6908_vm4, %v593_v33, %v597_v45  ;;  %v615_v7 = vrot.slane %v613_v40, 4  ;;  %v621_v41 = vrot.slane %v619_v63, 5  ;;  %v5608_v17 = vrot.slane %v5592_v26, 9  ;;  %v7271_v33 = vld [vmem:[%s6882_s30 + $0xa8] sm:$0xf] }
  0x74   : > { %v5340_v6 = vcombine.low %v588_v55, %v598_v58  ;;  %6261 = vmatmul.mubr.msk.bf16.gmra.mrb[4].mxu0 %vm745_vm3, %v5624_v54  ;;  %v606_v14 = vor.u32 %v605_v61, %v602_v57  ;;  %v2890_v18 = vrot.slane %v7012_v20, 5  ;;  %v2893_v21 = vrot.slane %v7017_v34, 5  ;;  %v306_v61 = vld [vmem:[%s6882_s30 + $0xb0] sm:$0x1] }
  0x75   : > { %v624_v25 = vshrl.u32 %v7239_v52, 16  ;;  %v616_v31 = vor.u32 %v615_v7, %v611_v2  ;;  %v627_v38 = vshll.u32 %v7239_v52, 16  ;;  %v633_v1 = vshll.u32 %v7250_v46, 16 }
  0x76   : > { %6107 = vmatmul.mubr.msk.bf16.gmra.mrb[20].mxu1 %vm745_vm3, %v5340_v6  ;;  %v637_v28 = vshrl.u32 %v7250_v46, 16  ;;  %v607_v60 = vrot.slane %v606_v14, 4  ;;  %v2891_v42 = vsel %vm7134_vm7, %v5608_v17, %v2890_v18  ;;  %v2892_v20 = vrot.slane %v2890_v18, 4  ;;  %v7291_v14 = vld [vmem:[%s6882_s30 + $0xb4] sm:$0xf] }
  0x77   : > { %v626_v44 = vrot.slane %v624_v25, 4  ;;  %v617_v34 = vrot.slane %v616_v31, 4  ;;  %v629_v45 = vrot.slane %v627_v38, 5  ;;  %v635_v47 = vrot.slane %v633_v1, 5 }
  0x78   : > { %v639_v26 = vrot.slane %v637_v28, 4  ;;  %v612_v48 = vsel %vm6908_vm4, %v607_v60, %v611_v2  ;;  %v2894_v49 = vsel %vm7134_vm7, %v2892_v20, %v2893_v21  ;;  %v643_v50 = vshll.u32 %v305_v10, 16  ;;  %v5594_v2 = vld [vmem:[%s6882_s30 + $0x54] sm:$0xe] }
  0x79   : > { %v5609_v51 = vrot.slane %v5593_v11, 9  ;;  %v622_v15 = vsel %vm6908_vm4, %v617_v34, %v621_v41  ;;  %v5625_v62 = vcombine.low %v2891_v42, %v2894_v49  ;;  %v630_v40 = vor.u32 %v629_v45, %v626_v44  ;;  %v7300_v42 = vld [vmem:[%s6882_s30 + $0xb8] sm:$0xf]  ;;  %v307_v49 = vld [vmem:[%s6882_s30 + $0xbc] sm:$0x1] }
  0x7a   : > { %v640_v55 = vor.u32 %v639_v26, %v635_v47  ;;  %v5341_v57 = vcombine.low %v612_v48, %v622_v15  ;;  %v645_v63 = vrot.slane %v643_v50, 5  ;;  %v2897_v58 = vrot.slane %v7035_v8, 5 }
  0x7b   : > { %v2900_v54 = vrot.slane %v7043_v23, 5  ;;  %6264 = vmatprep.mubr.msk.bf16.mxu0 %vm745_vm3, %v5625_v62  ;;  %v631_v6 = vrot.slane %v630_v40, 4  ;;  %v648_v41 = vshrl.u32 %v7271_v33, 16  ;;  %v651_v17 = vshll.u32 %v7271_v33, 16 }
  0x7c   : > { %v641_v7 = vrot.slane %v640_v55, 4  ;;  %6110 = vmatprep.mubr.msk.bf16.mxu1 %vm745_vm3, %v5341_v57  ;;  %v2898_v10 = vsel %vm7134_vm7, %v5609_v51, %v2897_v58  ;;  %v2899_v11 = vrot.slane %v2897_v58, 4  ;;  %v657_v8 = vshll.u32 %v7276_v56, 16  ;;  %v5595_v55 = vld [vmem:[%s6882_s30 + $0x60] sm:$0xe] }
  0x7d   : > { %v661_v23 = vshrl.u32 %v7276_v56, 16  ;;  %v636_v18 = vsel %vm6908_vm4, %v631_v6, %v635_v47  ;;  %v650_v25 = vrot.slane %v648_v41, 4  ;;  %v653_v31 = vrot.slane %v651_v17, 5  ;;  %v5596_v6 = vld [vmem:[%s6882_s30 + $0x6c] sm:$0xe] }
  0x7e   : > { %v646_v21 = vsel %vm6908_vm4, %v641_v7, %v645_v63  ;;  %v2901_v1 = vsel %vm7134_vm7, %v2899_v11, %v2900_v54  ;;  %v659_v28 = vrot.slane %v657_v8, 5  ;;  %v667_v34 = vshll.u32 %v306_v61, 16  ;;  %v5532_v11 = vld [vmem:[%s6882_s30 + $0x70] sm:$0xf]  ;;  %v5533_v8 = vld [vmem:[%s6882_s30 + $0x74] sm:$0x1] }
  0x7f   : > { %v5342_v38 = vcombine.low %v636_v18, %v646_v21  ;;  %v663_v60 = vrot.slane %v661_v23, 4  ;;  %v5626_v20 = vcombine.low %v2898_v10, %v2901_v1  ;;  %v654_v44 = vor.u32 %v653_v31, %v650_v25 }
  0x80   : > { %v5610_v45 = vrot.slane %v5594_v2, 9  ;;  %v2904_v26 = vrot.slane %v7066_v4, 5  ;;  %v2907_v48 = vrot.slane %v7072_v12, 5  ;;  %v672_v50 = vshrl.u32 %v7291_v14, 16 }
  0x81   : > { %6111 = vmatmul.mubr.msk.bf16.gmra.mrb[24].mxu1 %vm745_vm3, %v5342_v38  ;;  %v664_v47 = vor.u32 %v663_v60, %v659_v28  ;;  %6265 = vmatmul.mubr.msk.bf16.gmra.mrb[8].mxu0 %vm745_vm3, %v5626_v20  ;;  %v655_v51 = vrot.slane %v654_v44, 4  ;;  %v669_v15 = vrot.slane %v667_v34, 5  ;;  %v675_v62 = vshll.u32 %v7291_v14, 16 }
  0x82   : > { %v681_v40 = vshll.u32 %v7300_v42, 16  ;;  %v2905_v4 = vsel %vm7134_vm7, %v5610_v45, %v2904_v26  ;;  %v2906_v12 = vrot.slane %v2904_v26, 4  ;;  %v674_v63 = vrot.slane %v672_v50, 4 }
  0x83   : > { %v665_v57 = vrot.slane %v664_v47, 4  ;;  %v660_v58 = vsel %vm6908_vm4, %v655_v51, %v659_v28  ;;  %v677_v54 = vrot.slane %v675_v62, 5  ;;  %v685_v2 = vshrl.u32 %v7300_v42, 16  ;;  %v5597_v47 = vld [vmem:[%s6882_s30 + $0x78] sm:$0xe] }
  0x84   : > { %v683_v61 = vrot.slane %v681_v40, 5  ;;  %v2908_v41 = vsel %vm7134_vm7, %v2906_v12, %v2907_v48  ;;  %v691_v17 = vshll.u32 %v307_v49, 16  ;;  %v5611_v10 = vrot.slane %v5595_v55, 9  ;;  %v6731_v51 = vld [vmem:[%s6882_s30] sm:$0xf] }
  0x85   : > { %v670_v7 = vsel %vm6908_vm4, %v665_v57, %v669_v15  ;;  %v5627_v18 = vcombine.low %v2905_v4, %v2908_v41  ;;  %v678_v21 = vor.u32 %v677_v54, %v674_v63  ;;  %v687_v25 = vrot.slane %v685_v2, 4  ;;  %v7338_v15 = vld [vmem:[%s6882_s30 + $0x4] sm:$0xf]  ;;  %v7342_v40 = vld [vmem:[%s6882_s30 + $0x7c] sm:$0xf] }
  0x86   : > { %v5343_v23 = vcombine.low %v660_v58, %v670_v7  ;;  %v693_v31 = vrot.slane %v691_v17, 5  ;;  %v2911_v38 = vrot.slane %v7096_v59, 5  ;;  %v2914_v1 = vrot.slane %v7103_v9, 5  ;;  %v7345_v55 = vld [vmem:[%s6882_s30 + $0x80] sm:$0x1] }
  0x87   : > { %v5612_v28 = vrot.slane %v5596_v6, 9  ;;  %6268 = vmatprep.mubr.msk.bf16.mxu0 %vm745_vm3, %v5627_v18  ;;  %v679_v60 = vrot.slane %v678_v21, 4  ;;  %v688_v20 = vor.u32 %v687_v25, %v683_v61  ;;  %v2918_v44 = vrot.slane %v5532_v11, 5  ;;  %v5538_v57 = vld [vmem:[%s6882_s30 + $0x88] sm:$0xf] }
  0x88   : > { %6114 = vmatprep.mubr.msk.bf16.mxu1 %vm745_vm3, %v5343_v23  ;;  %v2921_v34 = vrot.slane %v5533_v8, 5  ;;  %v2912_v45 = vsel %vm7134_vm7, %v5611_v10, %v2911_v38  ;;  %v2913_v59 = vrot.slane %v2911_v38, 4  ;;  %v5361_v62 = vcombine.low %v6731_v51, %v7338_v15  ;;  %v5539_v54 = vld [vmem:[%s6882_s30 + $0x8c] sm:$0x1]  ;;  %v5541_v17 = vld [vmem:[%s6882_s30 + $0x94] sm:$0xf] }
  0x89   : > { %v684_v9 = vsel %vm6908_vm4, %v679_v60, %v683_v61  ;;  %v689_v26 = vrot.slane %v688_v20, 4  ;;  %v2919_v48 = vsel %vm7134_vm7, %v5612_v28, %v2918_v44  ;;  %v2920_v49 = vrot.slane %v2918_v44, 4  ;;  %v5598_v61 = vld [vmem:[%s6882_s30 + $0x84] sm:$0xe]  ;;  %v5599_v23 = vld [vmem:[%s6882_s30 + $0x90] sm:$0xe] }
  0x8a   : > { %v2915_v50 = vsel %vm7134_vm7, %v2913_v59, %v2914_v1  ;;  %v5613_v58 = vrot.slane %v5597_v47, 9  ;;  %v2925_v7 = vrot.slane %v7342_v40, 5  ;;  %v2928_v41 = vrot.slane %v7345_v55, 5  ;;  %v5542_v25 = vld [vmem:[%s6882_s30 + $0x98] sm:$0x1] }
  0x8b   : > { %v694_v4 = vsel %vm6908_vm4, %v689_v26, %v693_v31  ;;  %v5628_v12 = vcombine.low %v2912_v45, %v2915_v50  ;;  %v2922_v63 = vsel %vm7134_vm7, %v2920_v49, %v2921_v34  ;;  %v5614_v10 = vrot.slane %v5598_v61, 9  ;;  %v5544_v31 = vld [vmem:[%s6882_s30 + $0xa0] sm:$0xf]  ;;  %v5545_v60 = vld [vmem:[%s6882_s30 + $0xa4] sm:$0x1] }
  0x8c   : > { %v5344_v2 = vcombine.low %v684_v9, %v694_v4  ;;  %v5629_v6 = vcombine.low %v2919_v48, %v2922_v63  ;;  %v2932_v11 = vrot.slane %v5538_v57, 5  ;;  %v2935_v8 = vrot.slane %v5539_v54, 5  ;;  %v5600_v20 = vld [vmem:[%s6882_s30 + $0x9c] sm:$0xe]  ;;  %v6733_v44 = vld [vmem:[%s6882_s30 + $0xc] sm:$0xf] }
  0x8d   : > { %6269 = vmatmul.mubr.msk.bf16.gmra.mrb[12].mxu0 %vm745_vm3, %v5628_v12  ;;  %v2926_v18 = vsel %vm7134_vm7, %v5613_v58, %v2925_v7  ;;  %v2927_v21 = vrot.slane %v2925_v7, 4  ;;  %v2939_v28 = vrot.slane %v5541_v17, 5  ;;  %v7372_v34 = vld [vmem:[%s6882_s30 + $0x10] sm:$0xf]  ;;  %v6735_v47 = vld [vmem:[%s6882_s30 + $0x18] sm:$0xf] }
  0x8e   : > { %6115 = vmatmul.mubr.msk.bf16.gmra.mrb[28].mxu1 %vm745_vm3, %v5344_v2  ;;  %6272 = vmatprep.mubr.msk.bf16.mxu0 %vm745_vm3, %v5629_v6  ;;  %v2933_v38 = vsel %vm7134_vm7, %v5614_v10, %v2932_v11  ;;  %v2934_v1 = vrot.slane %v2932_v11, 4  ;;  %v5362_v45 = vcombine.low %v6733_v44, %v7372_v34  ;;  %v7379_v9 = vld [vmem:[%s6882_s30 + $0x1c] sm:$0xf]  ;;  %v5615_v48 = vrot.slane %v5599_v23, 9  ;;  %v5547_v57 = vld [vmem:[%s6882_s30 + $0xac] sm:$0xf] }
  0x8f   : > { %6120 = vmatprep.mubr.msk.bf16.mxu1 %vm745_vm3, %v5361_v62  ;;  %v2929_v59 = vsel %vm7134_vm7, %v2927_v21, %v2928_v41  ;;  %v5363_v26 = vcombine.low %v6735_v47, %v7379_v9  ;;  %v2941_v51 = vrot.slane %v2939_v28, 4  ;;  %v2942_v62 = vrot.slane %v5542_v25, 5  ;;  %v6737_v54 = vld [vmem:[%s8734_s1 + $0x4] sm:$0x3]  ;;  %v5550_v2 = vld [vmem:[%s6882_s30 + $0xb8] sm:$0xf] }
  0x90   : > { %v5630_v49 = vcombine.low %v2926_v18, %v2929_v59  ;;  %v2936_v50 = vsel %vm7134_vm7, %v2934_v1, %v2935_v8  ;;  %v5616_v12 = vrot.slane %v5600_v20, 9  ;;  %v2946_v63 = vrot.slane %v5544_v31, 5  ;;  %v7394_v7 = vld [vmem:[%s8734_s1 + $0x6] sm:$0x3]  ;;  %v5548_v10 = vld [vmem:[%s6882_s30 + $0xb0] sm:$0x1] }
  0x91   : > { %v5631_v4 = vcombine.low %v2933_v38, %v2936_v50  ;;  %v2949_v58 = vrot.slane %v5545_v60, 5  ;;  %v1513_v61 = vsel %vm794_vm0, %v6737_v54, 0  ;;  %v2940_v41 = vsel %vm7134_vm7, %v5615_v48, %v2939_v28  ;;  %v5601_v11 = vld [vmem:[%s6882_s30 + $0xa8] sm:$0xe]  ;;  %v5551_v25 = vld [vmem:[%s6882_s30 + $0xbc] sm:$0x1] }
  0x92   : > { %v2948_v6 = vrot.slane %v2946_v63, 4  ;;  %v2943_v17 = vsel %vm7134_vm7, %v2941_v51, %v2942_v62  ;;  %v2953_v8 = vrot.slane %v5547_v57, 5  ;;  %v2947_v23 = vsel %vm7134_vm7, %v5616_v12, %v2946_v63  ;;  %v5602_v31 = vld [vmem:[%s6882_s30 + $0xb4] sm:$0xe]  ;;  %v6738_v38 = vld [vmem:[%s6882_s30 + $0x24] sm:$0xf] }
  0x93   : > { %v2960_v21 = vrot.slane %v5550_v2, 5  ;;  %v7415_v1 = vld [vmem:[%s6882_s30 + $0x28] sm:$0xf]  ;;  %v5632_v60 = vcombine.low %v2940_v41, %v2943_v17  ;;  %v5617_v44 = vrot.slane %v5601_v11, 9  ;;  %v2956_v59 = vrot.slane %v5548_v10, 5 }
  0x94   : > { %v2950_v18 = vsel %vm7134_vm7, %v2948_v6, %v2949_v58  ;;  %v5364_v28 = vcombine.low %v6738_v38, %v7415_v1  ;;  %v6740_v47 = vld [vmem:[%s6882_s30 + $0x30] sm:$0xf]  ;;  %v2963_v51 = vrot.slane %v5551_v25, 5  ;;  %v5553_v62 = vld [vmem:[%s6882_s30 + $0xc4] sm:$0xf]  ;;  %v2348_v25 = vshrl.u32 %v7342_v40, 16 }
  0x95   : > { %6273 = vmatmul.mubr.msk.bf16.gmra.mrb[16].mxu0 %vm745_vm3, %v5630_v49  ;;  %v5633_v20 = vcombine.low %v2947_v23, %v2950_v18  ;;  %v5618_v49 = vrot.slane %v5602_v31, 9  ;;  %v2962_v50 = vrot.slane %v2960_v21, 4  ;;  %v2954_v57 = vsel %vm7134_vm7, %v5617_v44, %v2953_v8  ;;  %v5603_v12 = vld [vmem:[%s6882_s30 + $0xc0] sm:$0xe]  ;;  %v6742_v41 = vld [vmem:[%s6882_s30 + $0x3c] sm:$0xf] }
  0x96   : > { %6121 = vmatmul.mubr.msk.bf16.vlgmr.msra.gmra.mrb[0].mxu1 %vm745_vm3, %v5362_v45  ;;  %6276 = vmatprep.mubr.msk.bf16.mxu0 %vm745_vm3, %v5631_v4  ;;  %v2955_v45 = vrot.slane %v2953_v8, 4  ;;  %v2967_v63 = vrot.slane %v5553_v62, 5  ;;  %v5619_v6 = vrot.slane %v5603_v12, 9  ;;  %v7440_v17 = vld [vmem:[%s6882_s30 + $0x40] sm:$0xf]  ;;  %v5367_v18 = vcombine.low %v7047_v27, %v7050_v36  ;;  %v6694_v62 = vld [vmem:[%s6882_s30 + $0x24] sm:$0xff]  }
  0x97   : > { %6153 = vmatpush3.bf16.msra.mxu1 %v1513_v61  ;;  %6124 = vmatprep.mubr.msk.bf16.mxu1 %vm745_vm3, %v5363_v26  ;;  %v7420_v26 = vld [vmem:[%s6882_s30 + $0x34] sm:$0xf]  ;;  %v2961_v58 = vsel %vm7134_vm7, %v5618_v49, %v2960_v21  ;;  %v2964_v54 = vsel %vm7134_vm7, %v2962_v50, %v2963_v51  ;;  %v5554_v61 = vld [vmem:[%s6882_s30 + $0xc8] sm:$0x1]  ;;  %v5366_v10 = vcombine.low %v6742_v41, %v7440_v17  ;;  %v2344_v21 = vshll.u32 %v7342_v40, 16 }
  0x98   : > { %6651 = vmatprep.subr.msk.bf16.mxu1 %vm794_vm0, %v7394_v7  ;;  %v5365_v48 = vcombine.low %v6740_v47, %v7420_v26  ;;  %v2957_v4 = vsel %vm7134_vm7, %v2955_v45, %v2956_v59  ;;  %v5635_v11 = vcombine.low %v2961_v58, %v2964_v54  ;;  %v2969_v8 = vrot.slane %v2967_v63, 4  ;;  %v1251_v45 = vld [vmem:[%s6882_s30] sm:$0xe]  ;;  %v1252_v59 = vld [vmem:[%s6882_s30 + $0xc] sm:$0xe] }
  0x99   : > { %v5634_v2 = vcombine.low %v2954_v57, %v2957_v4  ;;  %v2970_v23 = vrot.slane %v5554_v61, 5  ;;  %v2968_v31 = vsel %vm7134_vm7, %v5619_v6, %v2967_v63  ;;  %v7455_v27 = vrot.slane %v2344_v21, 5  ;;  %v1255_v41 = vld [vmem:[%s6882_s30 + $0x30] sm:$0xe] }
  0x9a   : > { %v2350_v36 = vrot.slane %v2348_v25, 4  ;;  %v5369_v44 = vcombine.low %v7107_v19, %v7113_v35  ;;  %v2354_v47 = vshll.u32 %v7345_v55, 16  ;;  %v5393_v19 = vrot.slane %v1251_v45, 9 }
  0x9b   : > { %v2971_v38 = vsel %vm7134_vm7, %v2969_v8, %v2970_v23  ;;  %8756 = vst [vmem:[#allocation3_spill] sm:$0xff] %v7455_v27  ;;  %v5394_v35 = vrot.slane %v1252_v59, 9  ;;  %v1318_v4 = vrot.slane %v7379_v9, 5  ;;  %v1325_v12 = vrot.slane %v7415_v1, 5  ;;  %v1256_v8 = vld [vmem:[%s6882_s30 + $0x3c] sm:$0xe] }
  0x9c   : > { %v5636_v40 = vcombine.low %v2968_v31, %v2971_v38  ;;  %v2351_v49 = vor.u32 %v2350_v36, %v7455_v27  ;;  %v7475_v51 = vrot.slane %v2354_v47, 5  ;;  %v5370_v58 = vcombine.low %v7128_v0, %v7141_v29  ;;  %v1257_v31 = vld [vmem:[%s6882_s30 + $0x48] sm:$0xe]  ;;  %v6748_v59 = vld [vmem:[%s6882_s30 + $0x38] sm:$0x1] }
  0x9d   : > { %6277 = vmatmul.mubr.msk.bf16.gmra.mrb[20].mxu0 %vm745_vm3, %v5632_v60  ;;  %v5368_v60 = vcombine.low %v7076_v24, %v7082_v37  ;;  %v6745_v24 = vld [vmem:[%s6882_s30 + $0x14] sm:$0x1]  ;;  %v4159_v54 = vsel %vm794_vm0, %v7199_v22, 0  ;;  %v5371_v61 = vcombine.low %v7160_v53, %v7167_v16  ;;  %v5372_v6 = vcombine.low %v7186_v39, %v7194_v43  ;;  %v6746_v16 = vld [vmem:[%s6882_s30 + $0x20] sm:$0x1] }
  0x9e   : > { %6125 = vmatmul.mubr.msk.bf16.gmra.mrb[4].mxu1 %vm745_vm3, %v5364_v28  ;;  %6280 = vmatprep.mubr.msk.bf16.mxu0 %vm745_vm3, %v5633_v20  ;;  %v1311_v28 = vrot.slane %v7372_v34, 5  ;;  %v6692_v20 = vld [vmem:[%s6882_s30 + $0x18] sm:$0xff]   ;;  %v6744_v34 = vld [vmem:[%s6882_s30 + $0x8] sm:$0x1]  ;;  %v1314_v37 = vrot.slane %v6745_v24, 5  ;;  %8757 = vst [vmem:[#allocation4_spill] sm:$0xff] %v7475_v51  ;;  %v5373_v9 = vcombine.low %v7218_v5, %v7230_v30 }
  0x9f   : > { %6128 = vmatprep.mubr.msk.bf16.mxu1 %vm745_vm3, %v5365_v48  ;;  %v1304_v48 = vrot.slane %v7338_v15, 5  ;;  %v1307_v50 = vrot.slane %v6744_v34, 5  ;;  %v1253_v15 = vld [vmem:[%s6882_s30 + $0x18] sm:$0xe]  ;;  %v7480_v63 = vrot.slane %v2351_v49, 4  ;;  %v1321_v22 = vrot.slane %v6746_v16, 5 }
  0xa0   : > { %v1313_v55 = vrot.slane %v1311_v28, 4  ;;  %v5395_v1 = vrot.slane %v1253_v15, 9  ;;  %v7502_v29 = vsel %vm7134_vm7, %v5394_v35, %v1311_v28  ;;  %v1327_v25 = vrot.slane %v1325_v12, 4  ;;  %v5718_v24 = vld [vmem:[%s6882_s30 + $0x18] sm:$0xf] }
  0xa1   : > { %v1306_v57 = vrot.slane %v1304_v48, 4  ;;  %8758 = vst [vmem:[#allocation5_spill] sm:$0xff] %v7480_v63  ;;  %v7498_v0 = vsel %vm7134_vm7, %v5393_v19, %v1304_v48  ;;  %v1335_v47 = vrot.slane %v6748_v59, 5  ;;  %v7539_v49 = vsel %vm794_vm0, %v7394_v7, 0  ;;  %v5719_v7 = vld [vmem:[%s6882_s30 + $0x1c] sm:$0xf] }
  0xa2   : > { %v7506_v53 = vsel %vm7134_vm7, %v1313_v55, %v1314_v37  ;;  %v7543_v34 = vsel %vm7134_vm7, %v5395_v1, %v1318_v4  ;;  %v6698_v37 = vld [vmem:[%s6882_s30 + $0x3c] sm:$0xff]   ;;  %v5398_v35 = vrot.slane %v1256_v8, 9  ;;  %v6749_v55 = vld [vmem:[%s6882_s30 + $0x44] sm:$0x1]  ;;  %v3680_v8 = vshll.u32 %v5718_v24, 16 }
  0xa3   : > { %v7517_v23 = vsel %vm7134_vm7, %v1306_v57, %v1307_v50  ;;  %v1258_v50 = vld [vmem:[%s6882_s30 + $0x54] sm:$0xe]  ;;  %v1342_v15 = vrot.slane %v6749_v55, 5  ;;  %v5722_v39 = vld [vmem:[%s6882_s30 + $0x28] sm:$0xf] }
  0xa4   : > { %v6756_v5 = vld [vmem:[%s6882_s30 + $0x70] sm:$0xf] }
  0xa5   : > { %6281 = vmatmul.mubr.msk.bf16.gmra.mrb[24].mxu0 %vm745_vm3, %v5634_v2  ;;  %v1254_v2 = vld [vmem:[%s6882_s30 + $0x24] sm:$0xe]  ;;  %v1367_v30 = vrot.slane %v6756_v5, 5 }
  0xa6   : > { %6129 = vmatmul.mubr.msk.bf16.gmra.mrb[8].mxu1 %vm745_vm3, %v5366_v10  ;;  %6284 = vmatprep.mubr.msk.bf16.mxu0 %vm745_vm3, %v5635_v11  ;;  %v1332_v10 = vrot.slane %v7420_v26, 5  ;;  %v6696_v11 = vld [vmem:[%s6882_s30 + $0x30] sm:$0xff]   ;;  %v5396_v21 = vrot.slane %v1254_v2, 9 }
  0xa7   : > { %6132 = vmatprep.mubr.msk.bf16.mxu1 %vm745_vm3, %v5367_v18  ;;  %v7513_v26 = vld [vmem:[%s8734_s1 + $0x10] sm:$0x3]  ;;  %v1320_v18 = vrot.slane %v1318_v4, 4  ;;  %v1369_v48 = vrot.slane %v1367_v30, 4 }
  0xa8   : > { %v1334_v45 = vrot.slane %v1332_v10, 4  ;;  %v7550_v19 = vsel %vm7134_vm7, %v5396_v21, %v1325_v12  ;;  %v3690_v21 = vshrl.u32 %v5719_v7, 16 }
  0xa9   : > { %v7559_v4 = vsel %vm7134_vm7, %v1320_v18, %v1321_v22  ;;  %v3677_v22 = vshrl.u32 %v5718_v24, 16  ;;  %v3686_v18 = vshll.u32 %v5719_v7, 16  ;;  %v5721_v24 = vld [vmem:[%s6882_s30 + $0x24] sm:$0xf] }
  0xaa   : > { %v7572_v1 = vsel %vm7134_vm7, %v1334_v45, %v1335_v47 }
  0xab   : > { %v3679_v43 = vrot.slane %v3677_v22, 4  ;;  %v7614_v7 = vrot.slane %v3686_v18, 5  ;;  %v3704_v22 = vshll.u32 %v5721_v24, 16  ;;  %v3714_v18 = vshrl.u32 %v5722_v39, 16 }
  0xad   : > { %6285 = vmatmul.mubr.msk.bf16.gmra.mrb[28].mxu0 %vm745_vm3, %v5636_v40  ;;  %v6747_v40 = vld [vmem:[%s6882_s30 + $0x2c] sm:$0x1]  ;;  %v3706_v27 = vrot.slane %v3704_v22, 5 }
  0xae   : > { %6133 = vmatmul.mubr.msk.bf16.gmra.mrb[12].mxu1 %vm745_vm3, %v5368_v60  ;;  %6290 = vmatprep.mubr.msk.bf16.mxu0 %vm745_vm3, %v6692_v20  ;;  %v1328_v28 = vrot.slane %v6747_v40, 5  ;;  %v1339_v60 = vrot.slane %v7440_v17, 5  ;;  %v6752_v40 = vld [vmem:[%s6882_s30 + $0x50] sm:$0x1]  ;;  %v6757_v17 = vld [vmem:[%s6882_s30 + $0x74] sm:$0x1] }
  0xaf   : > { %6136 = vmatprep.mubr.msk.bf16.mxu1 %vm745_vm3, %v5369_v44  ;;  %v5397_v44 = vrot.slane %v1255_v41, 9  ;;  %v5400_v41 = vrot.slane %v1258_v50, 9  ;;  %v1259_v50 = vld [vmem:[%s6882_s30 + $0x60] sm:$0xe]  ;;  %v5723_v20 = vld [vmem:[%s6882_s30 + $0x2c] sm:$0x1] }
  0xb0   : > { %v1341_v12 = vrot.slane %v1339_v60, 4  ;;  %v7585_v45 = vsel %vm7134_vm7, %v5398_v35, %v1339_v60  ;;  %v6753_v35 = vld [vmem:[%s6882_s30 + $0x5c] sm:$0x1] }
  0xb1   : > { %v7568_v2 = vsel %vm7134_vm7, %v5397_v44, %v1332_v10  ;;  %v1356_v55 = vrot.slane %v6753_v35, 5  ;;  %v1260_v35 = vld [vmem:[%s6882_s30 + $0x6c] sm:$0xe] }
  0xb2   : > { %v7589_v59 = vsel %vm7134_vm7, %v1341_v12, %v1342_v15  ;;  %v6754_v15 = vld [vmem:[%s6882_s30 + $0x64] sm:$0xf]  ;;  %v3692_v12 = vrot.slane %v3690_v21, 4  ;;  %v5402_v5 = vrot.slane %v1260_v35, 9 }
  0xb3   : > { %v6704_v21 = vld [vmem:[%s6882_s30 + $0x60] sm:$0xff]  }
  0xb5   : > { %6291 = vmatmul.mubr.msk.bf16.vlgmr.msra.gmra.mrb[0].mxu0 %vm745_vm3, %v6694_v62  ;;  %v6750_v62 = vld [vmem:[%s6882_s30 + $0x4c] sm:$0xf] }
  0xb6   : > { %6137 = vmatmul.mubr.msk.bf16.gmra.mrb[16].mxu1 %vm745_vm3, %v5370_v58  ;;  %6323 = vmatpush3.bf16.msra.mxu0 %v4159_v54  ;;  %v1346_v57 = vrot.slane %v6750_v62, 5  ;;  %v7563_v58 = vsel %vm7134_vm7, %v1327_v25, %v1328_v28  ;;  %v5399_v54 = vrot.slane %v1257_v31, 9  ;;  %v1349_v28 = vrot.slane %v6752_v40, 5 }
  0xb7   : > { %6140 = vmatprep.mubr.msk.bf16.mxu1 %vm745_vm3, %v5371_v61  ;;  %6294 = vmatprep.mubr.msk.bf16.mxu0 %vm745_vm3, %v6696_v11  ;;  %v6700_v61 = vld [vmem:[%s6882_s30 + $0x48] sm:$0xff]   ;;  %v6751_v11 = vld [vmem:[%s6882_s30 + $0x58] sm:$0xf]  ;;  %v1360_v62 = vrot.slane %v6754_v15, 5  ;;  %v5725_v15 = vld [vmem:[%s6882_s30 + $0x34] sm:$0xf] }
  0xb8   : > { %6657 = vmatprep.subr.msk.bf16.mxu0 %vm794_vm0, %v7513_v26  ;;  %v1353_v16 = vrot.slane %v6751_v11, 5  ;;  %v1348_v31 = vrot.slane %v1346_v57, 4  ;;  %v7593_v47 = vsel %vm7134_vm7, %v5399_v54, %v1346_v57  ;;  %v5720_v57 = vld [vmem:[%s6882_s30 + $0x20] sm:$0x1]  ;;  %v5724_v54 = vld [vmem:[%s6882_s30 + $0x30] sm:$0xf] }
  0xb9   : > { %v5401_v11 = vrot.slane %v1259_v50, 9  ;;  %v3728_v50 = vshll.u32 %v5724_v54, 16  ;;  %v3696_v25 = vshll.u32 %v5720_v57, 16  ;;  %v3734_v36 = vshll.u32 %v5725_v15, 16 }
  0xba   : > { %v7604_v60 = vsel %vm7134_vm7, %v5400_v41, %v1353_v16  ;;  %v7620_v41 = vsel %vm7134_vm7, %v1348_v31, %v1349_v28  ;;  %v1362_v31 = vrot.slane %v1360_v62, 4  ;;  %v3725_v28 = vshrl.u32 %v5724_v54, 16 }
  0xbb   : > { %v7662_v35 = vrot.slane %v3734_v36, 5 }
  0xbd   : > { %6295 = vmatmul.mubr.msk.bf16.gmra.mrb[4].mxu0 %vm745_vm3, %v6698_v37  ;;  %v1355_v37 = vrot.slane %v1353_v16, 4  ;;  %v6755_v16 = vld [vmem:[%s6882_s30 + $0x68] sm:$0x1] }
  0xbe   : > { %6141 = vmatmul.mubr.msk.bf16.gmra.mrb[20].mxu1 %vm745_vm3, %v5372_v6  ;;  %6298 = vmatprep.mubr.msk.bf16.mxu0 %vm745_vm3, %v6700_v61  ;;  %v3682_v6 = vrot.slane %v3680_v8, 5  ;;  %v6702_v61 = vld [vmem:[%s6882_s30 + $0x54] sm:$0xff]   ;;  %v1363_v40 = vrot.slane %v6755_v16, 5  ;;  %v3710_v8 = vshll.u32 %v5722_v39, 16  ;;  %v3693_v16 = vor.u32 %v3692_v12, %v7614_v7 }
  0xbf   : > { %6144 = vmatprep.mubr.msk.bf16.mxu1 %vm745_vm3, %v5373_v9  ;;  %v3701_v9 = vshrl.u32 %v5721_v24, 16  ;;  %v7629_v44 = vsel %vm7134_vm7, %v1355_v37, %v1356_v55  ;;  %v1370_v24 = vrot.slane %v6757_v17, 5  ;;  %v3738_v39 = vshrl.u32 %v5725_v15, 16 }
  0xc0   : > { %v3683_v10 = vor.u32 %v3682_v6, %v3679_v43  ;;  %v7635_v37 = vrot.slane %v3710_v8, 5  ;;  %v3716_v55 = vrot.slane %v3714_v18, 4  ;;  %v8759_v43 = vcombine.low %v7239_v52, %v7250_v46  ;;  %v6758_v8 = vld [vmem:[%s6882_s30 + $0x7c] sm:$0xf]  ;;  %v7671_v18 = vld [vmem:[%s6882_s30 + $0x38] sm:$0x1] }
  0xc1   : > { %v3703_v38 = vrot.slane %v3701_v9, 4  ;;  %v7644_v17 = vsel %vm7134_vm7, %v5401_v11, %v1360_v62  ;;  %v7648_v57 = vsel %vm7134_vm7, %v1362_v31, %v1363_v40  ;;  %v3727_v6 = vrot.slane %v3725_v28, 4  ;;  %8761 = vst [vmem:[#allocation6_spill] sm:$0xff] %v7671_v18 }
  0xc2   : > { %v3730_v12 = vrot.slane %v3728_v50, 5  ;;  %v8760_v52 = vcombine.low %v7271_v33, %v7276_v56  ;;  %v3684_v46 = vrot.slane %v3683_v10, 4  ;;  %v3694_v54 = vrot.slane %v3693_v16, 4  ;;  %v6706_v33 = vld [vmem:[%s6882_s30 + $0x6c] sm:$0xff]   ;;  %v1262_v16 = vld [vmem:[%s6882_s30 + $0x84] sm:$0xe] }
  0xc3   : > { %v3720_v62 = vshll.u32 %v5723_v20, 16  ;;  %v7656_v11 = vsel %vm7134_vm7, %v5402_v5, %v1367_v30  ;;  %v7660_v40 = vsel %vm7134_vm7, %v1369_v48, %v1370_v24  ;;  %v3740_v9 = vrot.slane %v3738_v39, 4  ;;  %v6707_v48 = vld [vmem:[%s6882_s30 + $0x78] sm:$0xff]  }
  0xc4   : > { %v3707_v10 = vor.u32 %v3706_v27, %v3703_v38  ;;  %v3717_v20 = vor.u32 %v3716_v55, %v7635_v37  ;;  %v1374_v30 = vrot.slane %v6758_v8, 5  ;;  %v3731_v38 = vor.u32 %v3730_v12, %v3727_v6  ;;  %v5727_v5 = vld [vmem:[%s6882_s30 + $0x3c] sm:$0xf] }
  0xc5   : > { %6299 = vmatmul.mubr.msk.bf16.gmra.mrb[8].mxu0 %vm745_vm3, %v6702_v61  ;;  %v3698_v61 = vrot.slane %v3696_v25, 5  ;;  %v1261_v25 = vld [vmem:[%s6882_s30 + $0x78] sm:$0xe]  ;;  %v7687_v50 = vrot.slane %v3720_v62, 5  ;;  %v3741_v39 = vor.u32 %v3740_v9, %v7662_v35  ;;  %v3744_v55 = vshll.u32 %v7671_v18, 16 }
  0xc6   : > { %6145 = vmatmul.mubr.msk.bf16.gmra.mrb[24].mxu1 %vm745_vm3, %v8759_v43  ;;  %6302 = vmatprep.mubr.msk.bf16.mxu0 %vm745_vm3, %v6704_v21  ;;  %v3689_v21 = vsel %vm6908_vm4, %v3684_v46, %v7614_v7  ;;  %v5403_v24 = vrot.slane %v1261_v25, 9  ;;  %v6759_v43 = vld [vmem:[%s6882_s30 + $0x88] sm:$0xf]  ;;  %v7695_v7 = vld [vmem:[%s6882_s30 + $0x40] sm:$0xf]  ;;  %v3708_v12 = vrot.slane %v3707_v10, 4  ;;  %v8763_v62 = vcombine.low %v7291_v14, %v7300_v42 }
  0xc7   : > { %6148 = vmatprep.mubr.msk.bf16.mxu1 %vm745_vm3, %v8760_v52  ;;  %v3699_v31 = vsel %vm6908_vm4, %v3694_v54, %v3698_v61  ;;  %v1381_v6 = vrot.slane %v6759_v43, 5  ;;  %8762 = vst [vmem:[#allocation7_spill] sm:$0xff] %v7695_v7  ;;  %v3718_v52 = vrot.slane %v3717_v20, 4  ;;  %v1376_v46 = vrot.slane %v1374_v30, 4  ;;  %v6760_v54 = vld [vmem:[%s6882_s30 + $0x80] sm:$0x1] }
  0xc8   : > { %v1377_v61 = vrot.slane %v6760_v54, 5  ;;  %v3732_v9 = vrot.slane %v3731_v38, 4  ;;  %v5404_v25 = vrot.slane %v1262_v16, 9  ;;  %v3749_v8 = vshrl.u32 %v5727_v5, 16  ;;  %v6708_v10 = vld [vmem:[%s6882_s30 + $0x84] sm:$0xff]  }
  0xc9   : > { %v3752_v43 = vshll.u32 %v5727_v5, 16  ;;  %v7709_v20 = vcombine.low %v3689_v21, %v3699_v31  ;;  %v7713_v14 = vsel %vm794_vm0, %v7513_v26, 0  ;;  %v3762_v38 = vshrl.u32 %v7695_v7, 16  ;;  %v6709_v21 = vld [vmem:[%s6882_s30 + $0x90] sm:$0xff]   ;;  %v6765_v18 = vld [vmem:[%s6882_s30 + $0xa0] sm:$0xf] }
  0xca   : > { %v3742_v16 = vrot.slane %v3741_v39, 4  ;;  %v3746_v5 = vrot.slane %v3744_v55, 5  ;;  %v1383_v54 = vrot.slane %v1381_v6, 4  ;;  %v3713_v31 = vsel %vm6908_vm4, %v3708_v12, %v7635_v37 }
  0xcb   : > { %v3723_v26 = vsel %vm6908_vm4, %v3718_v52, %v7687_v50  ;;  %v7728_v39 = vsel %vm7134_vm7, %v5403_v24, %v1374_v30  ;;  %v7732_v55 = vsel %vm7134_vm7, %v1376_v46, %v1377_v61  ;;  %v3737_v37 = vsel %vm6908_vm4, %v3732_v9, %v7662_v35  ;;  %v5733_v30 = vld [vmem:[%s6882_s30 + $0x54] sm:$0xf]  ;;  %v7749_v24 = vld [vmem:[%s6882_s30 + $0x58] sm:$0xf]  ;;  %v7754_v61 = vld [vmem:[%s6882_s30 + $0x90] sm:$0xe] }
  0xcc   : > { %v7745_v12 = vsel %vm7134_vm7, %v5404_v25, %v1381_v6  ;;  %v3751_v50 = vrot.slane %v3749_v8, 4  ;;  %v3754_v52 = vrot.slane %v3752_v43, 5  ;;  %v3764_v46 = vrot.slane %v3762_v38, 4 }
  0xcd   : > { %6303 = vmatmul.mubr.msk.bf16.gmra.mrb[12].mxu0 %vm745_vm3, %v6706_v33  ;;  %v8764_v33 = vcombine.low %v7498_v0, %v7517_v23  ;;  %v6761_v0 = vld [vmem:[%s6882_s30 + $0x8c] sm:$0x1]  ;;  %v3747_v36 = vsel %vm6908_vm4, %v3742_v16, %v3746_v5  ;;  %v3797_v25 = vshrl.u32 %v5733_v30, 16  ;;  %v3800_v8 = vshll.u32 %v5733_v30, 16 }
  0xce   : > { %6149 = vmatmul.mubr.msk.bf16.gmra.mrb[28].mxu1 %vm745_vm3, %v8763_v62  ;;  %6306 = vmatprep.mubr.msk.bf16.mxu0 %vm745_vm3, %v6707_v48  ;;  %v3758_v48 = vshll.u32 %v7695_v7, 16  ;;  %v1384_v23 = vrot.slane %v6761_v0, 5  ;;  %v5730_v62 = vld [vmem:[%s6882_s30 + $0x48] sm:$0xf]  ;;  %v7738_v0 = vld [vmem:[%s6882_s30 + $0x4c] sm:$0xf]  ;;  %v8766_v38 = vcombine.low %v7502_v29, %v7506_v53  ;;  %v7772_v16 = vcombine.low %v3713_v31, %v3723_v26 }
  0xcf   : > { %6154 = vmatprep.mubr.msk.bf16.mxu1 %vm745_vm3, %v8764_v33  ;;  %v7735_v33 = vld [vmem:[%s6882_s30 + $0x44] sm:$0x1]  ;;  %v3773_v27 = vshrl.u32 %v5730_v62, 16  ;;  %v3776_v15 = vshll.u32 %v5730_v62, 16  ;;  %v3782_v6 = vshll.u32 %v7738_v0, 16  ;;  %v3786_v9 = vshrl.u32 %v7738_v0, 16 }
  0xd0   : > { %8765 = vst [vmem:[#allocation8_spill] sm:$0xff] %v7735_v33  ;;  %v7751_v28 = vrot.slane %v3758_v48, 5  ;;  %v7760_v35 = vsel %vm7134_vm7, %v1383_v54, %v1384_v23  ;;  %v3806_v43 = vshll.u32 %v7749_v24, 16  ;;  %v3810_v48 = vshrl.u32 %v7749_v24, 16  ;;  %v5736_v31 = vld [vmem:[%s6882_s30 + $0x60] sm:$0xf] }
  0xd1   : > { %v3768_v5 = vshll.u32 %v7735_v33, 16  ;;  %v5405_v54 = vrot.slane %v7754_v61, 9  ;;  %v8767_v23 = vcombine.low %v7543_v34, %v7559_v4  ;;  %v7783_v29 = vcombine.low %v3737_v37, %v3747_v36  ;;  %v6710_v26 = vld [vmem:[%s6882_s30 + $0x9c] sm:$0xff]   ;;  %v6711_v30 = vld [vmem:[%s6882_s30 + $0xa8] sm:$0xff]  }
  0xd2   : > { %v3755_v53 = vor.u32 %v3754_v52, %v3751_v50  ;;  %v3775_v62 = vrot.slane %v3773_v27, 4  ;;  %v7794_v34 = vrot.slane %v3782_v6, 5  ;;  %v3788_v4 = vrot.slane %v3786_v9, 4  ;;  %v6762_v36 = vld [vmem:[%s8734_s1 + $0x8] sm:$0x3] }
  0xd3   : > { %v3799_v27 = vrot.slane %v3797_v25, 4  ;;  %v3802_v37 = vrot.slane %v3800_v8, 5  ;;  %v7803_v50 = vrot.slane %v3806_v43, 5  ;;  %v3812_v52 = vrot.slane %v3810_v48, 4  ;;  %v6763_v6 = vld [vmem:[%s6882_s30 + $0x94] sm:$0xf] }
  0xd4   : > { %v7809_v9 = vld [vmem:[%s6882_s30 + $0x64] sm:$0xf]  ;;  %v3821_v61 = vshrl.u32 %v5736_v31, 16  ;;  %v7811_v22 = vrot.slane %v3755_v53, 4  ;;  %v1395_v25 = vrot.slane %v6765_v18, 5  ;;  %v3789_v43 = vor.u32 %v3788_v4, %v7794_v34 }
  0xd5   : > { %6307 = vmatmul.mubr.msk.bf16.gmra.mrb[16].mxu0 %vm745_vm3, %v6708_v10  ;;  %8768 = vst [vmem:[#allocation9_spill] sm:$0xff] %v7809_v9  ;;  %v3824_v10 = vshll.u32 %v5736_v31, 16  ;;  %v3803_v31 = vor.u32 %v3802_v37, %v3799_v27  ;;  %v3813_v53 = vor.u32 %v3812_v52, %v7803_v50  ;;  %v8769_v18 = vcombine.low %v7550_v19, %v7563_v58  ;;  %v6712_v37 = vld [vmem:[%s6882_s30 + $0xb4] sm:$0xff]  }
  0xd6   : > { %6155 = vmatmul.mubr.msk.bf16.vlgmr.msra.gmra.mrb[0].mxu1 %vm745_vm3, %v8766_v38  ;;  %6310 = vmatprep.mubr.msk.bf16.mxu0 %vm745_vm3, %v6709_v21  ;;  %v3778_v21 = vrot.slane %v3776_v15, 5  ;;  %v7792_v38 = vld [vmem:[%s6882_s30 + $0x50] sm:$0x1]  ;;  %v7801_v15 = vld [vmem:[%s6882_s30 + $0x5c] sm:$0x1]  ;;  %v8770_v27 = vcombine.low %v7568_v2, %v7572_v1  ;;  %v1397_v52 = vrot.slane %v1395_v25, 4 }
  0xd7   : > { %6187 = vmatpush3.bf16.msra.mxu1 %v7539_v49  ;;  %6158 = vmatprep.mubr.msk.bf16.mxu1 %vm745_vm3, %v8767_v23  ;;  %v3765_v49 = vor.u32 %v3764_v46, %v7751_v28  ;;  %v7805_v46 = vrot.slane %v3768_v5, 5  ;;  %v1388_v23 = vrot.slane %v6763_v6, 5  ;;  %v3792_v48 = vshll.u32 %v7792_v38, 16  ;;  %v1264_v5 = vld [vmem:[%s6882_s30 + $0x9c] sm:$0xe] }
  0xd8   : > { %6653 = vmatprep.subr.msk.bf16.mxu1 %vm794_vm0, %v6762_v36  ;;  %v6764_v36 = vld [vmem:[%s6882_s30 + $0x98] sm:$0x1]  ;;  %v3779_v7 = vor.u32 %v3778_v21, %v3775_v62  ;;  %v3816_v6 = vshll.u32 %v7801_v15, 16  ;;  %v3834_v62 = vshrl.u32 %v7809_v9, 16  ;;  %v3826_v4 = vrot.slane %v3824_v10, 5 }
  0xd9   : > { %v1391_v33 = vrot.slane %v6764_v36, 5  ;;  %v3766_v8 = vrot.slane %v3765_v49, 4  ;;  %v3830_v36 = vshll.u32 %v7809_v9, 16  ;;  %v7830_v21 = vsel %vm7134_vm7, %v5405_v54, %v1388_v23  ;;  %v7841_v2 = vld [vmem:[%s6882_s30 + $0x68] sm:$0x1] }
  0xda   : > { %v3823_v49 = vrot.slane %v3821_v61, 4  ;;  %v3780_v19 = vrot.slane %v3779_v7, 4  ;;  %v5406_v58 = vrot.slane %v1264_v5, 9  ;;  %v3790_v3 = vrot.slane %v3789_v43, 4  ;;  %8771 = vst [vmem:[#allocation10_spill] sm:$0xff] %v7841_v2  ;;  %v6713_v5 = vld [vmem:[%s6882_s30 + $0xc0] sm:$0xff]  }
  0xdb   : > { %v3794_v54 = vrot.slane %v3792_v48, 5  ;;  %v3818_v63 = vrot.slane %v3816_v6, 5  ;;  %v1402_v61 = vrot.slane %v7276_v56, 5  ;;  %v3804_v10 = vrot.slane %v3803_v31, 4  ;;  %v1266_v31 = vld [vmem:[%s6882_s30 + $0xb4] sm:$0xe] }
  0xdc   : > { %v3814_v51 = vrot.slane %v3813_v53, 4  ;;  %v7843_v1 = vrot.slane %v3830_v36, 5  ;;  %v3836_v7 = vrot.slane %v3834_v62, 4  ;;  %v3761_v43 = vsel %vm6908_vm4, %v7811_v22, %v7751_v28  ;;  %v6767_v62 = vld [vmem:[%s6882_s30 + $0xb0] sm:$0x1] }
  0xdd   : > { %6311 = vmatmul.mubr.msk.bf16.gmra.mrb[20].mxu0 %vm745_vm3, %v6710_v26  ;;  %v1390_v26 = vrot.slane %v1388_v23, 4  ;;  %v1265_v23 = vld [vmem:[%s6882_s30 + $0xa8] sm:$0xe]  ;;  %v3771_v48 = vsel %vm6908_vm4, %v3766_v8, %v7805_v46  ;;  %v3827_v6 = vor.u32 %v3826_v4, %v3823_v49  ;;  %v3785_v53 = vsel %vm6908_vm4, %v3780_v19, %v7794_v34  ;;  %v5739_v46 = vld [vmem:[%s6882_s30 + $0x6c] sm:$0xf] }
  0xde   : > { %6159 = vmatmul.mubr.msk.bf16.gmra.mrb[4].mxu1 %vm745_vm3, %v8769_v18  ;;  %6314 = vmatprep.mubr.msk.bf16.mxu0 %vm745_vm3, %v6711_v30  ;;  %v6766_v18 = vld [vmem:[%s6882_s30 + $0xa4] sm:$0x1]  ;;  %v7863_v36 = vsel %vm7134_vm7, %v5406_v58, %v1395_v25  ;;  %v5407_v28 = vrot.slane %v1265_v23, 9  ;;  %v1404_v8 = vrot.slane %v1402_v61, 4  ;;  %v3840_v49 = vshll.u32 %v7841_v2, 16 }
  0xdf   : > { %6162 = vmatprep.mubr.msk.bf16.mxu1 %vm745_vm3, %v8770_v27  ;;  %v1398_v30 = vrot.slane %v6766_v18, 5  ;;  %v7855_v56 = vsel %vm7134_vm7, %v1390_v26, %v1391_v33  ;;  %v3795_v33 = vsel %vm6908_vm4, %v3790_v3, %v3794_v54  ;;  %v1405_v26 = vrot.slane %v6767_v62, 5  ;;  %v5742_v18 = vld [vmem:[%s6882_s30 + $0x78] sm:$0xf]  ;;  %v7918_v54 = vld [vmem:[%s6882_s30 + $0xbc] sm:$0x1] }
  0xe0   : > { %v3809_v34 = vsel %vm6908_vm4, %v3804_v10, %v7803_v50  ;;  %v3819_v25 = vsel %vm6908_vm4, %v3814_v51, %v3818_v63  ;;  %v3837_v4 = vor.u32 %v3836_v7, %v7843_v1  ;;  %v5408_v27 = vrot.slane %v1266_v31, 9  ;;  %v7892_v51 = vld [vmem:[%s6882_s30 + $0x70] sm:$0xf]  ;;  %v7922_v10 = vld [vmem:[%s6882_s30 + $0x7c] sm:$0xf] }
  0xe1   : > { %v7867_v22 = vsel %vm7134_vm7, %v1397_v52, %v1398_v30  ;;  %v8773_v3 = vcombine.low %v7585_v45, %v7589_v59  ;;  %v7888_v19 = vrot.slane %v3827_v6, 4  ;;  %v1409_v50 = vrot.slane %v7300_v42, 5  ;;  %8774 = vst [vmem:[#allocation12_spill] sm:$0xff] %v7892_v51  ;;  %8776 = vst [vmem:[#allocation13_spill] sm:$0xff] %v7922_v10  ;;  %v5745_v7 = vld [vmem:[%s6882_s30 + $0x84] sm:$0xf] }
  0xe2   : > { %8772 = vst [vmem:[#allocation11_spill] sm:$0xff] %v7867_v22  ;;  %v3845_v63 = vshrl.u32 %v5739_v46, 16  ;;  %v8775_v45 = vcombine.low %v7593_v47, %v7620_v41  ;;  %v7900_v58 = vcombine.low %v3785_v53, %v3795_v33  ;;  %v7906_v42 = vsel %vm7134_vm7, %v5407_v28, %v1402_v61  ;;  %v6714_v61 = vld [vmem:[%s6882_s30 + $0xcc] sm:$0xff]   ;;  %v7934_v31 = vld [vmem:[%s6882_s30 + $0x88] sm:$0xf] }
  0xe3   : > { %v7909_v30 = vcombine.low %v3809_v34, %v3819_v25  ;;  %v7913_v47 = vsel %vm7134_vm7, %v1404_v8, %v1405_v26  ;;  %v7915_v41 = vrot.slane %v3840_v49, 5  ;;  %v3854_v6 = vshll.u32 %v7892_v51, 16  ;;  %8777 = vst [vmem:[#allocation14_spill] sm:$0xff] %v7934_v31  ;;  %v5748_v62 = vld [vmem:[%s6882_s30 + $0x90] sm:$0xf] }
  0xe4   : > { %v7940_v28 = vrot.slane %v1409_v50, 4  ;;  %v7942_v33 = vrot.slane %v3845_v63, 4  ;;  %v3858_v8 = vshrl.u32 %v7892_v51, 16  ;;  %v3869_v26 = vshrl.u32 %v5742_v18, 16  ;;  %v7949_v25 = vld [vmem:[%s6882_s30 + $0x94] sm:$0xf] }
  0xe5   : > { %6315 = vmatmul.mubr.msk.bf16.gmra.mrb[24].mxu0 %vm745_vm3, %v6712_v37  ;;  %v7886_v37 = vcombine.low %v3761_v43, %v3771_v48  ;;  %v7930_v43 = vsel %vm7134_vm7, %v5408_v27, %v1409_v50  ;;  %v3848_v48 = vshll.u32 %v5739_v46, 16  ;;  %v3872_v49 = vshll.u32 %v5742_v18, 16  ;;  %8778 = vst [vmem:[#allocation15_spill] sm:$0xff] %v7949_v25  ;;  %v7987_v2 = vld [vmem:[%s6882_s30 + $0x8c] sm:$0x1] }
  0xe6   : > { %6163 = vmatmul.mubr.msk.bf16.gmra.mrb[8].mxu1 %vm745_vm3, %v8773_v3  ;;  %6318 = vmatprep.mubr.msk.bf16.mxu0 %vm745_vm3, %v6713_v5  ;;  %v7926_v5 = vrot.slane %v3837_v4, 4  ;;  %v3878_v46 = vshll.u32 %v7922_v10, 16  ;;  %v3882_v34 = vshrl.u32 %v7922_v10, 16  ;;  %v3893_v4 = vshrl.u32 %v5745_v7, 16 }
  0xe7   : > { %6166 = vmatprep.mubr.msk.bf16.mxu1 %vm745_vm3, %v8775_v45  ;;  %v3896_v27 = vshll.u32 %v5745_v7, 16  ;;  %v3902_v3 = vshll.u32 %v7934_v31, 16  ;;  %v3906_v50 = vshrl.u32 %v7934_v31, 16  ;;  %v7959_v45 = vld [vmem:[%s6882_s30 + $0x74] sm:$0x1]  ;;  %v3850_v18 = vrot.slane %v3848_v48, 5 }
  0xe8   : > { %v3917_v52 = vshrl.u32 %v5748_v62, 16  ;;  %v3920_v53 = vshll.u32 %v5748_v62, 16  ;;  %v8779_v7 = vcombine.low %v7604_v60, %v7629_v44  ;;  %v3860_v59 = vrot.slane %v3858_v8, 4  ;;  %v5751_v48 = vld [vmem:[%s6882_s30 + $0x9c] sm:$0xf] }
  0xe9   : > { %v3926_v63 = vshll.u32 %v7949_v25, 16  ;;  %v3930_v23 = vshrl.u32 %v7949_v25, 16  ;;  %v8780_v62 = vcombine.low %v7644_v17, %v7648_v57  ;;  %v7977_v44 = vld [vmem:[%s6882_s30 + $0x80] sm:$0x1]  ;;  %v3871_v60 = vrot.slane %v3869_v26, 4 }
  0xea   : > { %8781 = vst [vmem:[#allocation16_spill] sm:$0xff] %v7977_v44  ;;  %v3895_v31 = vrot.slane %v3893_v4, 4  ;;  %v3898_v8 = vrot.slane %v3896_v27, 5  ;;  %v7981_v10 = vrot.slane %v3902_v3, 5  ;;  %v3908_v51 = vrot.slane %v3906_v50, 4 }
  0xeb   : > { %v7984_v25 = vld [vmem:[%s6882_s30 + $0xa0] sm:$0xf]  ;;  %v3919_v17 = vrot.slane %v3917_v52, 4  ;;  %v3922_v57 = vrot.slane %v3920_v53, 5  ;;  %v3944_v9 = vshll.u32 %v5751_v48, 16  ;;  %v3851_v26 = vor.u32 %v3850_v18, %v7942_v33 }
  0xec   : > { %v3888_v27 = vshll.u32 %v7977_v44, 16  ;;  %v7996_v3 = vld [vmem:[%s6882_s30 + $0x98] sm:$0x1]  ;;  %v3950_v50 = vshll.u32 %v7984_v25, 16  ;;  %v3954_v52 = vshrl.u32 %v7984_v25, 16  ;;  %v3899_v22 = vor.u32 %v3898_v8, %v3895_v31 }
  0xed   : > { %6319 = vmatmul.mubr.msk.bf16.gmra.mrb[28].mxu0 %vm745_vm3, %v6714_v61  ;;  %v7967_v61 = vrot.slane %v3854_v6, 5  ;;  %v3884_v6 = vrot.slane %v3882_v34, 4  ;;  %v3932_v34 = vrot.slane %v3930_v23, 4  ;;  %v3912_v33 = vshll.u32 %v7987_v2, 16 }
  0xee   : > { %6167 = vmatmul.mubr.msk.bf16.gmra.mrb[12].mxu1 %vm745_vm3, %v8779_v7  ;;  %6324 = vmatprep.mubr.msk.bf16.mxu0 %vm745_vm3, %v7709_v20  ;;  %v3874_v7 = vrot.slane %v3872_v49, 5  ;;  %v7979_v20 = vrot.slane %v3878_v46, 5  ;;  %v3864_v49 = vshll.u32 %v7959_v45, 16  ;;  %v7991_v46 = vrot.slane %v3926_v63, 5 }
  0xef   : > { %6170 = vmatprep.mubr.msk.bf16.mxu1 %vm745_vm3, %v8780_v62  ;;  %v3941_v62 = vshrl.u32 %v5751_v48, 16  ;;  %v3861_v4 = vor.u32 %v3860_v59, %v7967_v61  ;;  %v3909_v23 = vor.u32 %v3908_v51, %v7981_v10  ;;  %v3923_v59 = vor.u32 %v3922_v57, %v3919_v17  ;;  %v8029_v57 = vld [vmem:[%s6882_s30 + $0xa4] sm:$0x1] }
  0xf0   : > { %v3875_v53 = vor.u32 %v3874_v7, %v3871_v60  ;;  %v3885_v48 = vor.u32 %v3884_v6, %v7979_v20  ;;  %v3946_v18 = vrot.slane %v3944_v9, 5  ;;  %v8782_v44 = vcombine.low %v7656_v11, %v7660_v40 }
  0xf1   : > { %v3943_v63 = vrot.slane %v3941_v62, 4  ;;  %v8783_v31 = vrot.slane %v7918_v54, 5  ;;  %v3866_v51 = vrot.slane %v3864_v49, 5  ;;  %v3933_v60 = vor.u32 %v3932_v34, %v7991_v46  ;;  %v8032_v34 = vld [vmem:[%s6882_s30 + $0xac] sm:$0xf] }
  0xf2   : > { %v3936_v9 = vshll.u32 %v7996_v3, 16  ;;  %v8784_v11 = vcombine.low %v7728_v39, %v7732_v55  ;;  %v3852_v40 = vrot.slane %v3851_v26, 4  ;;  %v8025_v54 = vrot.slane %v3950_v50, 5 }
  0xf3   : > { %v3876_v7 = vrot.slane %v3875_v53, 4  ;;  %v3886_v6 = vrot.slane %v3885_v48, 4  ;;  %v3890_v8 = vrot.slane %v3888_v27, 5  ;;  %v3914_v17 = vrot.slane %v3912_v33, 5  ;;  %v8042_v48 = vld [vmem:[%s6882_s30 + $0xb0] sm:$0x1] }
  0xf4   : > { %v3900_v39 = vrot.slane %v3899_v22, 4  ;;  %v3910_v55 = vrot.slane %v3909_v23, 4  ;;  %v3924_v62 = vrot.slane %v3923_v59, 4  ;;  %v3947_v49 = vor.u32 %v3946_v18, %v3943_v63 }
  0xf5   : > { %6325 = vmatmul.mubr.msk.bf16.vlgmr.msra.gmra.mrb[0].mxu0 %vm745_vm3, %v7772_v16  ;;  %v8015_v16 = vsel %vm7134_vm7, %v7940_v28, %v8783_v31  ;;  %v3956_v28 = vrot.slane %v3954_v52, 4  ;;  %v3938_v26 = vrot.slane %v3936_v9, 5  ;;  %v3857_v52 = vsel %vm6908_vm4, %v3852_v40, %v7967_v61 }
  0xf6   : > { %6171 = vmatmul.mubr.msk.bf16.gmra.mrb[16].mxu1 %vm745_vm3, %v8782_v44  ;;  %6357 = vmatpush3.bf16.msra.mxu0 %v7713_v14  ;;  %v3862_v14 = vrot.slane %v3861_v4, 4  ;;  %v5754_v44 = vld [vmem:[%s6882_s30 + $0xa8] sm:$0xf]  ;;  %v3960_v22 = vshll.u32 %v8029_v57, 16  ;;  %v3881_v33 = vsel %vm6908_vm4, %v3876_v7, %v7979_v20  ;;  %v3891_v23 = vsel %vm6908_vm4, %v3886_v6, %v3890_v8 }
  0xf7   : > { %6174 = vmatprep.mubr.msk.bf16.mxu1 %vm745_vm3, %v8784_v11  ;;  %6328 = vmatprep.mubr.msk.bf16.mxu0 %vm745_vm3, %v7783_v29  ;;  %v3934_v29 = vrot.slane %v3933_v60, 4  ;;  %v3965_v4 = vshrl.u32 %v5754_v44, 16  ;;  %v3968_v50 = vshll.u32 %v5754_v44, 16  ;;  %v3957_v53 = vor.u32 %v3956_v28, %v8025_v54  ;;  %v5803_v11 = vld [vmem:[%s6882_s30 + $0x48] sm:$0xe] }
  0xf8   : > { %v3867_v27 = vsel %vm6908_vm4, %v3862_v14, %v3866_v51  ;;  %v3974_v59 = vshll.u32 %v8032_v34, 16  ;;  %v3978_v61 = vshrl.u32 %v8032_v34, 16  ;;  %v3905_v63 = vsel %vm6908_vm4, %v3900_v39, %v7981_v10  ;;  %v8107_v39 = vld [vmem:[%s6882_s30 + $0xb8] sm:$0xf] }
  0xf9   : > { %v3915_v18 = vsel %vm6908_vm4, %v3910_v55, %v3914_v17  ;;  %v3929_v20 = vsel %vm6908_vm4, %v3924_v62, %v7991_v46  ;;  %v3948_v31 = vrot.slane %v3947_v49, 4  ;;  %v8785_v51 = vcombine.low %v7745_v12, %v7760_v35 }
  0xfa   : > { %v3967_v10 = vrot.slane %v3965_v4, 4  ;;  %v3970_v60 = vrot.slane %v3968_v50, 5  ;;  %v3984_v9 = vshll.u32 %v8042_v48, 16  ;;  %v8786_v46 = vcombine.low %v7830_v21, %v7855_v56  ;;  %v5757_v21 = vld [vmem:[%s6882_s30 + $0xb4] sm:$0xf] }
  0xfb   : > { %v5424_v12 = vcombine.low %v7906_v42, %v7913_v47  ;;  %v8787_v35 = vsel %vm6908_vm4, %v7926_v5, %v7915_v41  ;;  %v3958_v14 = vrot.slane %v3957_v53, 4  ;;  %v3962_v28 = vrot.slane %v3960_v22, 5  ;;  %v5805_v4 = vld [vmem:[%s6882_s30 + $0x60] sm:$0xe]  ;;  %v5806_v53 = vld [vmem:[%s6882_s30 + $0x6c] sm:$0xe] }
  0xfc   : > { %v5425_v56 = vcombine.low %v7930_v43, %v8015_v16  ;;  %v8090_v44 = vcombine.low %v3857_v52, %v3867_v27  ;;  %v8092_v42 = vrot.slane %v3974_v59, 5  ;;  %v3980_v47 = vrot.slane %v3978_v61, 4  ;;  %v8796_v16 = vld [vmem:[#allocation4_spill] sm:$0xff] }
  0xfd   : > { %6329 = vmatmul.mubr.msk.bf16.gmra.mrb[4].mxu0 %vm745_vm3, %v7886_v37  ;;  %v3939_v37 = vsel %vm6908_vm4, %v3934_v29, %v3938_v26  ;;  %v8094_v41 = vcombine.low %v3881_v33, %v3891_v23  ;;  %v8096_v5 = vcombine.low %v3905_v63, %v3915_v18  ;;  %v3953_v6 = vsel %vm6908_vm4, %v3948_v31, %v8025_v54  ;;  %v8789_v23 = vld [vmem:[#allocation11_spill] sm:$0xff]  ;;  %v5760_v63 = vld [vmem:[%s6882_s30 + $0xc0] sm:$0xf]  ;;  %v8791_v18 = vld [vmem:[#allocation9_spill] sm:$0xff] }
  0xfe   : > { %6175 = vmatmul.mubr.msk.bf16.gmra.mrb[20].mxu1 %vm745_vm3, %v8785_v51  ;;  %6332 = vmatprep.mubr.msk.bf16.mxu0 %vm745_vm3, %v7900_v58  ;;  %v8788_v58 = vsel %vm6908_vm4, %v7888_v19, %v7843_v1  ;;  %v8098_v7 = vcombine.low %v3929_v20, %v3939_v37  ;;  %v5819_v1 = vrot.slane %v5803_v11, 9  ;;  %v5804_v19 = vld [vmem:[%s6882_s30 + $0x54] sm:$0xe]  ;;  %v3971_v8 = vor.u32 %v3970_v60, %v3967_v10  ;;  %v8792_v31 = vld [vmem:[#allocation10_spill] sm:$0xff] }
  0xff   : > { %6178 = vmatprep.mubr.msk.bf16.mxu1 %vm745_vm3, %v8786_v46  ;;  %v5773_v40 = vcombine.low %v8788_v58, %v8787_v35  ;;  %v8104_v17 = vrot.slane %v3984_v9, 5  ;;  %v3989_v55 = vshrl.u32 %v5757_v21, 16  ;;  %v3963_v62 = vsel %vm6908_vm4, %v3958_v14, %v3962_v28  ;;  %v8793_v9 = vld [vmem:[#allocation12_spill] sm:$0xff]  ;;  %v8156_v35 = vld [vmem:[%s6882_s30 + $0xbc] sm:$0x1] }
 0x100   : > { %v3992_v49 = vshll.u32 %v5757_v21, 16  ;;  %v4448_v29 = vrot.slane %v7738_v0, 5  ;;  %v4451_v26 = vrot.slane %v7792_v38, 5  ;;  %v3981_v50 = vor.u32 %v3980_v47, %v8092_v42  ;;  %v8159_v58 = vld [vmem:[%s6882_s30 + $0xc4] sm:$0xf] }
 0x101   : > { %v5820_v52 = vrot.slane %v5804_v19, 9  ;;  %v4455_v54 = vrot.slane %v7749_v24, 5  ;;  %v4458_v27 = vrot.slane %v7801_v15, 5  ;;  %v3998_v22 = vshll.u32 %v8107_v39, 16  ;;  %v5807_v19 = vld [vmem:[%s6882_s30 + $0x78] sm:$0xe] }
 0x102   : > { %v4002_v33 = vshrl.u32 %v8107_v39, 16  ;;  %v8124_v0 = vsel %vm7134_vm7, %v5819_v1, %v4448_v29  ;;  %v4450_v38 = vrot.slane %v4448_v29, 4  ;;  %v8790_v59 = vcombine.low %v7863_v36, %v8789_v23  ;;  %v8794_v23 = vld [vmem:[#allocation13_spill] sm:$0xff] }
 0x103   : > { %v8131_v24 = vcombine.low %v3953_v6, %v3963_v62  ;;  %v8135_v15 = vsel %vm7134_vm7, %v5820_v52, %v4455_v54  ;;  %v5821_v61 = vrot.slane %v5805_v4, 9  ;;  %v4462_v20 = vrot.slane %v8791_v18, 5  ;;  %v6715_v6 = vld [vmem:[%s6882_s30 + $0xc] sm:$0xff]  }
 0x104   : > { %v8141_v36 = vsel %vm7134_vm7, %v4450_v38, %v4451_v26  ;;  %v4465_v51 = vrot.slane %v8792_v31, 5  ;;  %v5822_v37 = vrot.slane %v5806_v53, 9  ;;  %v4469_v11 = vrot.slane %v8793_v9, 5 }
 0x105   : > { %6333 = vmatmul.mubr.msk.bf16.gmra.mrb[8].mxu0 %vm745_vm3, %v7909_v30  ;;  %v4457_v30 = vrot.slane %v4455_v54, 4  ;;  %v5836_v10 = vcombine.low %v8124_v0, %v8141_v36  ;;  %v4472_v46 = vrot.slane %v7959_v45, 5  ;;  %v8165_v14 = vsel %vm7134_vm7, %v5821_v61, %v4462_v20 }
 0x106   : > { %6179 = vmatmul.mubr.msk.bf16.gmra.mrb[24].mxu1 %vm745_vm3, %v8790_v59  ;;  %6336 = vmatprep.mubr.msk.bf16.mxu0 %vm745_vm3, %v5773_v40  ;;  %v4464_v28 = vrot.slane %v4462_v20, 4  ;;  %v8167_v21 = vrot.slane %v3989_v55, 4  ;;  %v4013_v47 = vshrl.u32 %v5760_v63, 16  ;;  %v8171_v45 = vsel %vm7134_vm7, %v5822_v37, %v4469_v11  ;;  %v5534_v55 = vld [vmem:[%s6882_s30 + $0x78] sm:$0xf]  ;;  %v8795_v59 = vld [vmem:[#allocation16_spill] sm:$0xff] }
 0x107   : > { %6182 = vmatprep.mubr.msk.bf16.mxu1 %vm745_vm3, %v5424_v12  ;;  %v8149_v60 = vsel %vm7134_vm7, %v4457_v30, %v4458_v27  ;;  %v8153_v12 = vrot.slane %v3971_v8, 4  ;;  %v4471_v1 = vrot.slane %v4469_v11, 4  ;;  %v8175_v8 = vrot.slane %v3981_v50, 4 }
 0x108   : > { %v5837_v40 = vcombine.low %v8135_v15, %v8149_v60  ;;  %v8177_v62 = vrot.slane %v3992_v49, 5  ;;  %v4016_v29 = vshll.u32 %v5760_v63, 16  ;;  %v8181_v26 = vsel %vm7134_vm7, %v4464_v28, %v4465_v51  ;;  %v8798_v28 = vld [vmem:[#allocation14_spill] sm:$0xff] }
 0x109   : > { %v8184_v4 = vrot.slane %v3998_v22, 5  ;;  %v8186_v52 = vrot.slane %v4002_v33, 4  ;;  %v5838_v54 = vcombine.low %v8165_v14, %v8181_v26  ;;  %v8192_v27 = vsel %vm7134_vm7, %v4471_v1, %v4472_v46  ;;  %v5808_v33 = vld [vmem:[%s6882_s30 + $0x84] sm:$0xe]  ;;  %v6716_v1 = vld [vmem:[%s6882_s30 + $0x18] sm:$0xff]  }
 0x10a   : > { %v4008_v49 = vshll.u32 %v8156_v35, 16  ;;  %v4022_v50 = vshll.u32 %v8159_v58, 16  ;;  %v5839_v53 = vcombine.low %v8171_v45, %v8192_v27  ;;  %v5823_v22 = vrot.slane %v5807_v19, 9  ;;  %v6778_v60 = vld [vmem:[%s6882_s30 + $0xa0] sm:$0xf] }
 0x10b   : > { %v4015_v38 = vrot.slane %v4013_v47, 4  ;;  %v4479_v30 = vrot.slane %v8795_v59, 5  ;;  %v2335_v61 = vshrl.u32 %v5534_v55, 16  ;;  %v4018_v63 = vrot.slane %v4016_v29, 5  ;;  %v5763_v29 = vld [vmem:[%s6882_s30 + $0xcc] sm:$0xf] }
 0x10c   : > { %v4026_v18 = vshrl.u32 %v8159_v58, 16  ;;  %v2338_v43 = vshll.u32 %v5534_v55, 16  ;;  %v5824_v37 = vrot.slane %v5808_v33, 9  ;;  %v3977_v9 = vsel %vm6908_vm4, %v8153_v12, %v8092_v42  ;;  %v8235_v55 = vld [vmem:[%s6882_s30 + $0xd0] sm:$0xf] }
 0x10d   : > { %6337 = vmatmul.mubr.msk.bf16.gmra.mrb[12].mxu0 %vm745_vm3, %v8090_v44  ;;  %v4476_v44 = vrot.slane %v8794_v23, 5  ;;  %v2337_v51 = vrot.slane %v2335_v61, 4  ;;  %v3995_v11 = vor.u32 %v8177_v62, %v8167_v21  ;;  %v4483_v47 = vrot.slane %v8798_v28, 5  ;;  %v6717_v21 = vld [vmem:[%s6882_s30 + $0x24] sm:$0xff]   ;;  %v6782_v27 = vld [vmem:[%s6882_s30 + $0xac] sm:$0xf] }
 0x10e   : > { %6183 = vmatmul.mubr.msk.bf16.gmra.mrb[28].mxu1 %vm745_vm3, %v5425_v56  ;;  %6340 = vmatprep.mubr.msk.bf16.mxu0 %vm745_vm3, %v8094_v41  ;;  %v8797_v56 = vld [vmem:[#allocation5_spill] sm:$0xff]  ;;  %v2340_v46 = vrot.slane %v2338_v43, 5  ;;  %v3987_v19 = vsel %vm6908_vm4, %v8175_v8, %v8104_v17  ;;  %v4486_v12 = vrot.slane %v7987_v2, 5  ;;  %v8243_v62 = vrot.slane %v4022_v50, 5  ;;  %v5809_v8 = vld [vmem:[%s6882_s30 + $0x90] sm:$0xe] }
 0x10f   : > { %6188 = vmatprep.mubr.msk.bf16.mxu1 %vm745_vm3, %v6715_v6  ;;  %v2357_v41 = vsel %vm6908_vm4, %v8797_v56, %v8796_v16  ;;  %v8217_v20 = vsel %vm7134_vm7, %v5823_v22, %v4476_v44  ;;  %v4478_v31 = vrot.slane %v4476_v44, 4  ;;  %v4005_v6 = vor.u32 %v8186_v52, %v8184_v4  ;;  %v8249_v52 = vld [vmem:[%s6882_s30 + $0xc8] sm:$0x1]  ;;  %v8800_v16 = vld [vmem:[#allocation2_spill] sm:$0xff] }
 0x110   : > { %v4028_v22 = vrot.slane %v4026_v18, 4  ;;  %v2341_v17 = vor.u32 %v2340_v46, %v2337_v51  ;;  %v4010_v23 = vrot.slane %v4008_v49, 5  ;;  %v4019_v44 = vor.u32 %v4018_v63, %v4015_v38  ;;  %v8801_v51 = vld [vmem:[#allocation3_spill] sm:$0xff] }
 0x111   : > { %v8239_v42 = vsel %vm7134_vm7, %v4478_v31, %v4479_v30  ;;  %v8253_v59 = vsel %vm7134_vm7, %v5824_v37, %v4483_v47  ;;  %v4485_v30 = vrot.slane %v4483_v47, 4  ;;  %v4037_v2 = vshrl.u32 %v5763_v29, 16 }
 0x112   : > { %v5840_v33 = vcombine.low %v8217_v20, %v8239_v42  ;;  %v4040_v50 = vshll.u32 %v5763_v29, 16  ;;  %v4046_v61 = vshll.u32 %v8235_v55, 16  ;;  %v2342_v18 = vrot.slane %v2341_v17, 4  ;;  %v6718_v29 = vld [vmem:[%s6882_s30 + $0x30] sm:$0xff]  }
 0x113   : > { %v4050_v49 = vshrl.u32 %v8235_v55, 16  ;;  %v8264_v38 = vsel %vm7134_vm7, %v4485_v30, %v4486_v12  ;;  %v5825_v63 = vrot.slane %v5809_v8, 9  ;;  %v4029_v56 = vor.u32 %v4028_v22, %v8243_v62 }
 0x114   : > { %v4032_v31 = vshll.u32 %v8249_v52, 16  ;;  %v5841_v37 = vcombine.low %v8253_v59, %v8264_v38  ;;  %v5779_v46 = vcombine.low %v3977_v9, %v3987_v19  ;;  %v3996_v28 = vrot.slane %v3995_v11, 4  ;;  %v5810_v11 = vld [vmem:[%s6882_s30 + $0x9c] sm:$0xe] }
 0x115   : > { %6341 = vmatmul.mubr.msk.bf16.gmra.mrb[16].mxu0 %vm745_vm3, %v8096_v5  ;;  %v8799_v5 = vld [vmem:[#allocation15_spill] sm:$0xff]  ;;  %v4006_v47 = vrot.slane %v4005_v6, 4  ;;  %v4020_v12 = vrot.slane %v4019_v44, 4  ;;  %v4493_v8 = vrot.slane %v7996_v3, 5  ;;  %v4039_v30 = vrot.slane %v4037_v2, 4  ;;  %v6719_v19 = vld [vmem:[%s6882_s30 + $0x3c] sm:$0xff]  }
 0x116   : > { %6189 = vmatmul.mubr.msk.bf16.vlgmr.msra.gmra.mrb[0].mxu1 %vm745_vm3, %v6716_v1  ;;  %6344 = vmatprep.mubr.msk.bf16.mxu0 %vm745_vm3, %v8098_v7  ;;  %v4490_v43 = vrot.slane %v8799_v5, 5  ;;  %v2347_v7 = vsel %vm6908_vm4, %v2342_v18, %v8801_v51  ;;  %v4042_v18 = vrot.slane %v4040_v50, 5  ;;  %v8287_v5 = vrot.slane %v4046_v61, 5 }
 0x117   : > { %6391 = vmatpush3.bf16.msra.mxu1 %v8800_v16  ;;  %6192 = vmatprep.mubr.msk.bf16.mxu1 %vm745_vm3, %v6717_v21  ;;  %v8276_v1 = vcombine.low %v2347_v7, %v2357_v41  ;;  %v8280_v21 = vld [vmem:[%s6882_s30 + $0xd4] sm:$0x1]  ;;  %v4052_v9 = vrot.slane %v4050_v49, 4  ;;  %v4030_v41 = vrot.slane %v4029_v56, 4  ;;  %v4034_v6 = vrot.slane %v4032_v31, 5 }
 0x118   : > { %v8284_v22 = vsel %vm7134_vm7, %v5825_v63, %v4490_v43  ;;  %v4492_v17 = vrot.slane %v4490_v43, 4  ;;  %v4001_v63 = vsel %vm6908_vm4, %v3996_v28, %v8184_v4  ;;  %v4011_v2 = vsel %vm6908_vm4, %v4006_v47, %v4010_v23  ;;  %v6769_v16 = vld [vmem:[%s6882_s30 + $0x1c] sm:$0xf]  ;;  %v5811_v28 = vld [vmem:[%s6882_s30 + $0xa8] sm:$0xe] }
 0x119   : > { %v4056_v50 = vshll.u32 %v8280_v21, 16  ;;  %v5826_v61 = vrot.slane %v5810_v11, 9  ;;  %v4497_v49 = vrot.slane %v7984_v25, 5  ;;  %v4025_v4 = vsel %vm6908_vm4, %v4020_v12, %v8243_v62  ;;  %v5799_v62 = vld [vmem:[%s6882_s30 + $0x18] sm:$0xe]  ;;  %v6720_v47 = vld [vmem:[%s6882_s30 + $0x48] sm:$0xff]  }
 0x11a   : > { %v8293_v44 = vsel %vm7134_vm7, %v4492_v17, %v4493_v8  ;;  %v4053_v43 = vor.u32 %v4052_v9, %v8287_v5  ;;  %v4500_v23 = vrot.slane %v8029_v57, 5  ;;  %v4035_v25 = vsel %vm6908_vm4, %v4030_v41, %v4034_v6  ;;  %v6770_v11 = vld [vmem:[%s6882_s30 + $0x20] sm:$0x1] }
 0x11b   : > { %v5842_v3 = vcombine.low %v8284_v22, %v8293_v44  ;;  %v4420_v56 = vrot.slane %v6769_v16, 5  ;;  %v8319_v31 = vsel %vm7134_vm7, %v5826_v61, %v4497_v49  ;;  %v4499_v51 = vrot.slane %v4497_v49, 4  ;;  %v5812_v49 = vld [vmem:[%s6882_s30 + $0xb4] sm:$0xe] }
 0x11c   : > { %v5780_v7 = vcombine.low %v4001_v63, %v4011_v2  ;;  %v4054_v17 = vrot.slane %v4053_v43, 4  ;;  %v5827_v41 = vrot.slane %v5811_v28, 9  ;;  %v4504_v6 = vrot.slane %v8032_v34, 5  ;;  %v5800_v2 = vld [vmem:[%s6882_s30 + $0x24] sm:$0xe] }
 0x11d   : > { %6345 = vmatmul.mubr.msk.bf16.gmra.mrb[20].mxu0 %vm745_vm3, %v8131_v24  ;;  %v4043_v24 = vor.u32 %v4042_v18, %v4039_v30  ;;  %v8324_v57 = vsel %vm7134_vm7, %v4499_v51, %v4500_v23  ;;  %v6721_v30 = vld [vmem:[%s6882_s30 + $0x54] sm:$0xff]   ;;  %v5815_v18 = vrot.slane %v5799_v62, 9  ;;  %v4422_v9 = vrot.slane %v4420_v56, 4  ;;  %v6773_v28 = vld [vmem:[%s6882_s30 + $0x2c] sm:$0x1] }
 0x11e   : > { %6193 = vmatmul.mubr.msk.bf16.gmra.mrb[4].mxu1 %vm745_vm3, %v6718_v29  ;;  %6348 = vmatprep.mubr.msk.bf16.mxu0 %vm745_vm3, %v5779_v46  ;;  %v4058_v46 = vrot.slane %v4056_v50, 5  ;;  %v5781_v29 = vcombine.low %v4025_v4, %v4035_v25  ;;  %v5843_v8 = vcombine.low %v8319_v31, %v8324_v57  ;;  %v4507_v63 = vrot.slane %v8042_v48, 5  ;;  %v6771_v50 = vld [vmem:[%s6882_s30 + $0x28] sm:$0xf]  ;;  %v5801_v25 = vld [vmem:[%s6882_s30 + $0x30] sm:$0xe] }
 0x11f   : > { %6196 = vmatprep.mubr.msk.bf16.mxu1 %vm745_vm3, %v6719_v19  ;;  %v4044_v12 = vrot.slane %v4043_v24, 4  ;;  %v4423_v19 = vrot.slane %v6770_v11, 5  ;;  %v4427_v61 = vrot.slane %v6771_v50, 5  ;;  %v8347_v48 = vsel %vm7134_vm7, %v5827_v41, %v4504_v6  ;;  %v6723_v11 = vld [vmem:[%s6882_s30 + $0x6c] sm:$0xff]   ;;  %v8802_v41 = vld [vmem:[#allocation6_spill] sm:$0xff] }
 0x120   : > { %v4059_v34 = vsel %vm6908_vm4, %v4054_v17, %v4058_v46  ;;  %v4506_v24 = vrot.slane %v4504_v6, 4  ;;  %v4421_v43 = vsel %vm7134_vm7, %v5815_v18, %v4420_v56  ;;  %v5816_v51 = vrot.slane %v5800_v2, 9  ;;  %v5813_v50 = vld [vmem:[%s6882_s30 + $0xc0] sm:$0xe]  ;;  %v6787_v31 = vld [vmem:[%s6882_s30 + $0xc8] sm:$0x1] }
 0x121   : > { %v4049_v4 = vsel %vm6908_vm4, %v4044_v12, %v8287_v5  ;;  %v4424_v23 = vsel %vm7134_vm7, %v4422_v9, %v4423_v19  ;;  %v6772_v5 = vld [vmem:[%s6882_s30 + $0x34] sm:$0xf]  ;;  %v6722_v12 = vld [vmem:[%s6882_s30 + $0x60] sm:$0xff]   ;;  %v5817_v18 = vrot.slane %v5801_v25, 9  ;;  %v4514_v9 = vrot.slane %v8156_v35, 5 }
 0x122   : > { %v4434_v16 = vrot.slane %v6772_v5, 5  ;;  %v8358_v62 = vsel %vm7134_vm7, %v4506_v24, %v4507_v63  ;;  %v5782_v46 = vcombine.low %v4049_v4, %v4059_v34  ;;  %v5832_v17 = vcombine.low %v4421_v43, %v4424_v23  ;;  %v5802_v24 = vld [vmem:[%s6882_s30 + $0x3c] sm:$0xe] }
 0x123   : > { %v5844_v56 = vcombine.low %v8347_v48, %v8358_v62  ;;  %v4437_v6 = vrot.slane %v8802_v41, 5  ;;  %v4428_v35 = vsel %vm7134_vm7, %v5816_v51, %v4427_v61  ;;  %v5829_v5 = vrot.slane %v5813_v50, 9 }
 0x124   : > { %v4436_v19 = vrot.slane %v4434_v16, 4  ;;  %v4435_v23 = vsel %vm7134_vm7, %v5817_v18, %v4434_v16  ;;  %v4521_v51 = vrot.slane %v8249_v52, 5  ;;  %v2498_v57 = vshll.u32 %v6787_v31, 16 }
 0x125   : > { %6349 = vmatmul.mubr.msk.bf16.gmra.mrb[24].mxu0 %vm745_vm3, %v5780_v7  ;;  %v5828_v7 = vrot.slane %v5812_v49, 9 }
 0x126   : > { %6197 = vmatmul.mubr.msk.bf16.gmra.mrb[8].mxu1 %vm745_vm3, %v6720_v47  ;;  %6352 = vmatprep.mubr.msk.bf16.mxu0 %vm745_vm3, %v5781_v29  ;;  %v4430_v47 = vrot.slane %v6773_v28, 5  ;;  %v4511_v29 = vrot.slane %v8107_v39, 5  ;;  %v8803_v39 = vld [vmem:[#allocation7_spill] sm:$0xff]  ;;  %v4438_v25 = vsel %vm7134_vm7, %v4436_v19, %v4437_v6  ;;  %v5818_v28 = vrot.slane %v5802_v24, 9 }
 0x127   : > { %6200 = vmatprep.mubr.msk.bf16.mxu1 %vm745_vm3, %v6721_v30  ;;  %v4429_v30 = vrot.slane %v4427_v61, 4  ;;  %v4441_v49 = vrot.slane %v8803_v39, 5  ;;  %v4518_v61 = vrot.slane %v8159_v58, 5  ;;  %v6774_v39 = vld [vmem:[%s6882_s30 + $0x70] sm:$0xf]  ;;  %v4525_v24 = vrot.slane %v8235_v55, 5 }
 0x128   : > { %v8370_v63 = vsel %vm7134_vm7, %v5828_v7, %v4511_v29  ;;  %v4513_v2 = vrot.slane %v4511_v29, 4  ;;  %v5531_v7 = vld [vmem:[%s6882_s30 + $0x6c] sm:$0xf]  ;;  %v8804_v29 = vld [vmem:[#allocation8_spill] sm:$0xff] }
 0x129   : > { %v4431_v34 = vsel %vm7134_vm7, %v4429_v30, %v4430_v47  ;;  %v4443_v47 = vrot.slane %v4441_v49, 4  ;;  %v6724_v30 = vld [vmem:[%s6882_s30 + $0x78] sm:$0xff]   ;;  %v8401_v16 = vsel %vm7134_vm7, %v5829_v5, %v4518_v61  ;;  %v4520_v18 = vrot.slane %v4518_v61, 4 }
 0x12a   : > { %v8377_v4 = vsel %vm7134_vm7, %v4513_v2, %v4514_v9  ;;  %v5834_v9 = vcombine.low %v4435_v23, %v4438_v25  ;;  %v2311_v19 = vshrl.u32 %v5531_v7, 16  ;;  %v2314_v41 = vshll.u32 %v5531_v7, 16 }
 0x12b   : > { %v5845_v43 = vcombine.low %v8370_v63, %v8377_v4  ;;  %v8406_v58 = vsel %vm7134_vm7, %v4520_v18, %v4521_v51  ;;  %v4442_v6 = vsel %vm7134_vm7, %v5818_v28, %v4441_v49  ;;  %v4528_v49 = vrot.slane %v8280_v21, 5  ;;  %v6726_v51 = vld [vmem:[%s6882_s30 + $0x90] sm:$0xff]   ;;  %v6727_v21 = vld [vmem:[%s6882_s30 + $0x9c] sm:$0xff]  }
 0x12c   : > { %v5846_v50 = vcombine.low %v8401_v16, %v8406_v58  ;;  %v2313_v23 = vrot.slane %v2311_v19, 4  ;;  %v2316_v25 = vrot.slane %v2314_v41, 5  ;;  %v4527_v7 = vrot.slane %v4525_v24, 4 }
 0x12d   : > { %6353 = vmatmul.mubr.msk.bf16.gmra.mrb[28].mxu0 %vm745_vm3, %v5782_v46  ;;  %v5833_v46 = vcombine.low %v4428_v35, %v4431_v34  ;;  %v2320_v35 = vshll.u32 %v6774_v39, 16  ;;  %v2324_v34 = vshrl.u32 %v6774_v39, 16 }
 0x12e   : > { %6201 = vmatmul.mubr.msk.bf16.gmra.mrb[12].mxu1 %vm745_vm3, %v6722_v12  ;;  %6358 = vmatprep.mubr.msk.bf16.mxu0 %vm745_vm3, %v5832_v17  ;;  %v4444_v12 = vrot.slane %v8804_v29, 5  ;;  %v5814_v17 = vld [vmem:[%s6882_s30 + $0xcc] sm:$0xe]  ;;  %v8428_v55 = vsel %vm7134_vm7, %v4527_v7, %v4528_v49 }
 0x12f   : > { %6204 = vmatprep.mubr.msk.bf16.mxu1 %vm745_vm3, %v6723_v11  ;;  %v6725_v11 = vld [vmem:[%s6882_s30 + $0x84] sm:$0xff]   ;;  %v5830_v52 = vrot.slane %v5814_v17, 9  ;;  %v2326_v28 = vrot.slane %v2324_v34, 4  ;;  %v6775_v17 = vld [vmem:[%s6882_s30 + $0x74] sm:$0x1] }
 0x130   : > { %v4445_v2 = vsel %vm7134_vm7, %v4443_v47, %v4444_v12  ;;  %v5537_v47 = vld [vmem:[%s6882_s30 + $0x84] sm:$0xf]  ;;  %v2317_v12 = vor.u32 %v2316_v25, %v2313_v23  ;;  %v6729_v34 = vld [vmem:[%s6882_s30 + $0xb4] sm:$0xff]  }
 0x131   : > { %v8423_v5 = vsel %vm7134_vm7, %v5830_v52, %v4525_v24  ;;  %v5835_v61 = vcombine.low %v4442_v6, %v4445_v2  ;;  %v2362_v18 = vshll.u32 %v5537_v47, 16  ;;  %v5540_v6 = vld [vmem:[%s6882_s30 + $0x90] sm:$0xf]  ;;  %v6728_v2 = vld [vmem:[%s6882_s30 + $0xa8] sm:$0xff]  }
 0x132   : > { %v5847_v29 = vcombine.low %v8423_v5, %v8428_v55  ;;  %v2318_v52 = vrot.slane %v2317_v12, 4  ;;  %v2383_v23 = vshrl.u32 %v5540_v6, 16  ;;  %v2386_v25 = vshll.u32 %v5540_v6, 16 }
 0x133   : > { %v2416_v12 = vshll.u32 %v6778_v60, 16 }
 0x134   : > { %v2388_v14 = vrot.slane %v2386_v25, 5  ;;  %v6781_v25 = vld [vmem:[%s6882_s30 + $0xa4] sm:$0x1] }
 0x135   : > { %6359 = vmatmul.mubr.msk.bf16.vlgmr.msra.gmra.mrb[0].mxu0 %vm745_vm3, %v5833_v46  ;;  %v2322_v46 = vrot.slane %v2320_v35, 5  ;;  %v5543_v35 = vld [vmem:[%s6882_s30 + $0x9c] sm:$0xf]  ;;  %v8470_v6 = vrot.slane %v2416_v12, 5 }
 0x136   : > { %6205 = vmatmul.mubr.msk.bf16.gmra.mrb[16].mxu1 %vm745_vm3, %v6724_v30  ;;  %6362 = vmatprep.mubr.msk.bf16.mxu0 %vm745_vm3, %v5834_v9  ;;  %v2330_v30 = vshll.u32 %v6775_v17, 16  ;;  %v2359_v9 = vshrl.u32 %v5537_v47, 16  ;;  %v2410_v47 = vshll.u32 %v5543_v35, 16  ;;  %v6779_v17 = vld [vmem:[%s6882_s30 + $0x8c] sm:$0x1] }
 0x137   : > { %6208 = vmatprep.mubr.msk.bf16.mxu1 %vm745_vm3, %v6725_v11  ;;  %v2327_v13 = vor.u32 %v2326_v28, %v2322_v46  ;;  %v6776_v11 = vld [vmem:[%s6882_s30 + $0x88] sm:$0xf]  ;;  %v2323_v7 = vsel %vm6908_vm4, %v2318_v52, %v2322_v46 }
 0x138   : > { %v2368_v19 = vshll.u32 %v6776_v11, 16  ;;  %v2372_v41 = vshrl.u32 %v6776_v11, 16  ;;  %v2332_v0 = vrot.slane %v2330_v30, 5  ;;  %v2361_v36 = vrot.slane %v2359_v9, 4 }
 0x139   : > { %v2328_v39 = vrot.slane %v2327_v13, 4  ;;  %v2378_v30 = vshll.u32 %v6779_v17, 16  ;;  %v2385_v9 = vrot.slane %v2383_v23, 4  ;;  %v2412_v11 = vrot.slane %v2410_v47, 5 }
 0x13a   : > { %v8447_v24 = vrot.slane %v2368_v19, 5  ;;  %v2374_v49 = vrot.slane %v2372_v41, 4  ;;  %v6730_v19 = vld [vmem:[%s6882_s30 + $0xc0] sm:$0xff]  }
 0x13b   : > { %v2333_v46 = vsel %vm6908_vm4, %v2328_v39, %v2332_v0  ;;  %v5546_v39 = vld [vmem:[%s6882_s30 + $0xa8] sm:$0xf] }
 0x13c   : > { %v2375_v13 = vor.u32 %v2374_v49, %v8447_v24  ;;  %v5564_v41 = vcombine.low %v2323_v7, %v2333_v46  ;;  %v2426_v7 = vshll.u32 %v6781_v25, 16  ;;  %v2434_v45 = vshll.u32 %v5546_v39, 16 }
 0x13d   : > { %6363 = vmatmul.mubr.msk.bf16.gmra.mrb[4].mxu0 %vm745_vm3, %v5835_v61  ;;  %v6777_v61 = vld [vmem:[%s6882_s30 + $0x94] sm:$0xf] }
 0x13e   : > { %6209 = vmatmul.mubr.msk.bf16.gmra.mrb[20].mxu1 %vm745_vm3, %v6726_v51  ;;  %6366 = vmatprep.mubr.msk.bf16.mxu0 %vm745_vm3, %v5836_v10  ;;  %v2364_v10 = vrot.slane %v2362_v18, 5  ;;  %v2392_v51 = vshll.u32 %v6777_v61, 16  ;;  %v2396_v28 = vshrl.u32 %v6777_v61, 16  ;;  %v2376_v0 = vrot.slane %v2375_v13, 4 }
 0x13f   : > { %6212 = vmatprep.mubr.msk.bf16.mxu1 %vm745_vm3, %v6727_v21  ;;  %v2407_v21 = vshrl.u32 %v5543_v35, 16  ;;  %v6780_v35 = vld [vmem:[%s6882_s30 + $0x98] sm:$0x1]  ;;  %v2431_v61 = vshrl.u32 %v5546_v39, 16  ;;  %v5552_v39 = vld [vmem:[%s6882_s30 + $0xc0] sm:$0xf] }
 0x140   : > { %v2365_v15 = vor.u32 %v2364_v10, %v2361_v36  ;;  %v8467_v26 = vrot.slane %v2392_v51, 5  ;;  %v2380_v36 = vrot.slane %v2378_v30, 5  ;;  %v2389_v10 = vor.u32 %v2388_v14, %v2385_v9  ;;  %v5549_v51 = vld [vmem:[%s6882_s30 + $0xb4] sm:$0xf] }
 0x141   : > { %v2409_v18 = vrot.slane %v2407_v21, 4  ;;  %v2444_v21 = vshrl.u32 %v6782_v27, 16  ;;  %v2455_v20 = vshrl.u32 %v5549_v51, 16  ;;  %v2458_v42 = vshll.u32 %v5549_v51, 16 }
 0x142   : > { %v2366_v52 = vrot.slane %v2365_v15, 4  ;;  %v2381_v46 = vsel %vm6908_vm4, %v2376_v0, %v2380_v36  ;;  %v2390_v15 = vrot.slane %v2389_v10, 4  ;;  %v2428_v30 = vrot.slane %v2426_v7, 5 }
 0x143   : > { %v2413_v23 = vor.u32 %v2412_v11, %v2409_v18  ;;  %v2433_v9 = vrot.slane %v2431_v61, 4  ;;  %v2446_v11 = vrot.slane %v2444_v21, 4  ;;  %v6786_v61 = vld [vmem:[%s6882_s30 + $0xbc] sm:$0x1] }
 0x144   : > { %v2371_v47 = vsel %vm6908_vm4, %v2366_v52, %v8447_v24  ;;  %v2395_v0 = vsel %vm6908_vm4, %v2390_v15, %v8467_v26  ;;  %v2474_v22 = vshll.u32 %v6786_v61, 16 }
 0x145   : > { %6367 = vmatmul.mubr.msk.bf16.gmra.mrb[8].mxu0 %vm745_vm3, %v5837_v40  ;;  %v2420_v40 = vshrl.u32 %v6778_v60, 16  ;;  %v2414_v17 = vrot.slane %v2413_v23, 4  ;;  %v5566_v24 = vcombine.low %v2371_v47, %v2381_v46 }
 0x146   : > { %6213 = vmatmul.mubr.msk.bf16.gmra.mrb[24].mxu1 %vm745_vm3, %v6728_v2  ;;  %6370 = vmatprep.mubr.msk.bf16.mxu0 %vm745_vm3, %v5838_v54  ;;  %v2398_v54 = vrot.slane %v2396_v28, 4 }
 0x147   : > { %6216 = vmatprep.mubr.msk.bf16.mxu1 %vm745_vm3, %v6729_v34  ;;  %v2422_v2 = vrot.slane %v2420_v40, 4  ;;  %v2402_v34 = vshll.u32 %v6780_v35, 16  ;;  %v2419_v10 = vsel %vm6908_vm4, %v2414_v17, %v8470_v6  ;;  %v2500_v17 = vrot.slane %v2498_v57, 5 }
 0x148   : > { %v2399_v49 = vor.u32 %v2398_v54, %v8467_v26  ;;  %v2436_v54 = vrot.slane %v2434_v45, 5  ;;  %v6784_v26 = vld [vmem:[%s6882_s30 + $0xb0] sm:$0x1] }
 0x149   : > { %v2423_v28 = vor.u32 %v2422_v2, %v8470_v6  ;;  %v2404_v60 = vrot.slane %v2402_v34, 5  ;;  %v2450_v35 = vshll.u32 %v6784_v26, 16  ;;  %v2479_v34 = vshrl.u32 %v5552_v39, 16 }
 0x14a   : > { %v2400_v13 = vrot.slane %v2399_v49, 4  ;;  %v2437_v38 = vor.u32 %v2436_v54, %v2433_v9  ;;  %v2482_v6 = vshll.u32 %v5552_v39, 16  ;;  %v6785_v49 = vld [vmem:[%s6882_s30 + $0xc4] sm:$0xf] }
 0x14b   : > { %v2424_v14 = vrot.slane %v2423_v28, 4  ;;  %v2488_v23 = vshll.u32 %v6785_v49, 16  ;;  %v2492_v25 = vshrl.u32 %v6785_v49, 16  ;;  %v2452_v45 = vrot.slane %v2450_v35, 5 }
 0x14c   : > { %v2405_v36 = vsel %vm6908_vm4, %v2400_v13, %v2404_v60  ;;  %v2438_v51 = vrot.slane %v2437_v38, 4  ;;  %v2476_v60 = vrot.slane %v2474_v22, 5 }
 0x14d   : > { %6371 = vmatmul.mubr.msk.bf16.gmra.mrb[12].mxu0 %vm745_vm3, %v5839_v53  ;;  %v2440_v53 = vshll.u32 %v6782_v27, 16  ;;  %v2429_v59 = vsel %vm6908_vm4, %v2424_v14, %v2428_v30  ;;  %v5567_v44 = vcombine.low %v2395_v0, %v2405_v36  ;;  %v2481_v27 = vrot.slane %v2479_v34, 4 }
 0x14e   : > { %6217 = vmatmul.mubr.msk.bf16.gmra.mrb[28].mxu1 %vm745_vm3, %v6730_v19  ;;  %6374 = vmatprep.mubr.msk.bf16.mxu0 %vm745_vm3, %v5840_v33  ;;  %v6783_v33 = vld [vmem:[%s6882_s30 + $0xb8] sm:$0xf]  ;;  %v2457_v19 = vrot.slane %v2455_v20, 4  ;;  %v2490_v21 = vrot.slane %v2488_v23, 5  ;;  %v2494_v47 = vrot.slane %v2492_v25, 4 }
 0x14f   : > { %6238 = vmatprep.mubr.msk.bf16.mxu1 %vm745_vm3, %v5564_v41  ;;  %v2464_v12 = vshll.u32 %v6783_v33, 16  ;;  %v2468_v40 = vshrl.u32 %v6783_v33, 16  ;;  %v2442_v18 = vrot.slane %v2440_v53, 5  ;;  %v2460_v41 = vrot.slane %v2458_v42, 5 }
 0x150   : > { %v2484_v53 = vrot.slane %v2482_v6, 5 }
 0x151   : > { %v2466_v52 = vrot.slane %v2464_v12, 5  ;;  %v2470_v2 = vrot.slane %v2468_v40, 4  ;;  %v2443_v20 = vsel %vm6908_vm4, %v2438_v51, %v2442_v18  ;;  %v2495_v12 = vor.u32 %v2494_v47, %v2490_v21 }
 0x152   : > { %v2485_v33 = vor.u32 %v2484_v53, %v2481_v27 }
 0x153   : > { %v2471_v7 = vor.u32 %v2470_v2, %v2466_v52  ;;  %v2496_v13 = vrot.slane %v2495_v12, 4 }
 0x154   : > { %v2486_v40 = vrot.slane %v2485_v33, 4 }
 0x155   : > { %6375 = vmatmul.mubr.msk.bf16.gmra.mrb[16].mxu0 %vm745_vm3, %v5841_v37  ;;  %v2447_v37 = vor.u32 %v2446_v11, %v2442_v18  ;;  %v2472_v15 = vrot.slane %v2471_v7, 4  ;;  %v2501_v9 = vsel %vm6908_vm4, %v2496_v13, %v2500_v17 }
 0x156   : > { %6239 = vmatmul.mubr.msk.bf16.vlgmr.msra.gmra.mrb[16].mxu1 %vm745_vm3, %v8276_v1  ;;  %6378 = vmatprep.mubr.msk.bf16.mxu0 %vm745_vm3, %v5842_v3  ;;  %v2461_v1 = vor.u32 %v2460_v41, %v2457_v19  ;;  %v5568_v3 = vcombine.low %v2419_v10, %v2429_v59  ;;  %v2491_v30 = vsel %vm6908_vm4, %v2486_v40, %v2490_v21 }
 0x157   : > { %6242 = vmatprep.mubr.msk.bf16.mxu1 %vm745_vm3, %v5566_v24  ;;  %v2448_v28 = vrot.slane %v2447_v37, 4  ;;  %v2477_v48 = vsel %vm6908_vm4, %v2472_v15, %v2476_v60  ;;  %v5571_v14 = vcombine.low %v2491_v30, %v2501_v9 }
 0x158   : > { %v2462_v46 = vrot.slane %v2461_v1, 4 }
 0x159   : > { %v2453_v42 = vsel %vm6908_vm4, %v2448_v28, %v2452_v45 }
 0x15a   : > { %v5569_v62 = vcombine.low %v2443_v20, %v2453_v42 }
 0x15d   : > { %6379 = vmatmul.mubr.msk.bf16.gmra.mrb[20].mxu0 %vm745_vm3, %v5843_v8  ;;  %v2467_v8 = vsel %vm6908_vm4, %v2462_v46, %v2466_v52 }
 0x15e   : > { %6243 = vmatmul.mubr.msk.bf16.gmra.mrb[20].mxu1 %vm745_vm3, %v5567_v44  ;;  %6382 = vmatprep.mubr.msk.bf16.mxu0 %vm745_vm3, %v5844_v56  ;;  %v5570_v56 = vcombine.low %v2467_v8, %v2477_v48 }
 0x15f   : > { %6246 = vmatprep.mubr.msk.bf16.mxu1 %vm745_vm3, %v5568_v3 }
 0x165   : > { %6383 = vmatmul.mubr.msk.bf16.gmra.mrb[24].mxu0 %vm745_vm3, %v5845_v43 }
 0x166   : > { %6247 = vmatmul.mubr.msk.bf16.gmra.mrb[24].mxu1 %vm745_vm3, %v5569_v62  ;;  %6386 = vmatprep.mubr.msk.bf16.mxu0 %vm745_vm3, %v5846_v50 }
 0x167   : > { %6250 = vmatprep.mubr.msk.bf16.mxu1 %vm745_vm3, %v5570_v56 }
 0x16d   : > { %6387 = vmatmul.mubr.msk.bf16.gmra.mrb[28].mxu0 %vm745_vm3, %v5847_v29 }
 0x16e   : > { %6251 = vmatmul.mubr.msk.bf16.gmra.mrb[28].mxu1 %vm745_vm3, %v5571_v14 }
 0x1e9   : > { %v6190_v63 = vpop.f32.mrb[0].mxu1 }
 0x1ea   : > { %v1911_v4 = vpop.f32.mrb[1].mxu1 }
 0x1eb   : > { %v6191_v43 = vpop.f32.mrb[2].mxu1 }
 0x1ec   : > { %v1914_v16 = vpop.f32.mrb[3].mxu1 }
 0x1f1   : > { %v6194_v58 = vpop.f32.mrb[4].mxu1 }
 0x1f2   : > { %v1927_v50 = vpop.f32.mrb[5].mxu1 }
 0x1f3   : > { %v6195_v54 = vpop.f32.mrb[6].mxu1 }
 0x1f4   : > { %v1930_v18 = vpop.f32.mrb[7].mxu1 }
 0x1f9   : > { %v8558_v11 = vpop.f32.mrb[8].mxu1 }
 0x1fa   : > { %v8560_v32 = vpop.f32.mrb[9].mxu1 }
 0x1fb   : > { %v8562_v24 = vpop.f32.mrb[10].mxu1 }
 0x1fc   : > { %v8564_v5 = vpop.f32.mrb[11].mxu1 }
 0x201   : > { %v8566_v55 = vpop.f32.mrb[12].mxu1 }
 0x202   : > { %v8568_v29 = vpop.f32.mrb[13].mxu1 }
 0x203   : > { %v8570_v19 = vpop.f32.mrb[14].mxu1 }
 0x204   : > { %v8572_v41 = vpop.f32.mrb[15].mxu1 }
 0x208   : > { %v6360_v52 = vpop.f32.mrb[0].mxu0 }
 0x209   : > { %v6392_v2 = vadd.f32 %v6360_v52, %v6190_v63  ;;  %v4665_v39 = vpop.f32.mrb[1].mxu0 }
 0x20a   : > { %v6393_v0 = vadd.f32 %v4665_v39, %v1911_v4  ;;  %v6361_v36 = vpop.f32.mrb[2].mxu0 }
 0x20b   : > { %v5901_v10 = vpack.c.bf16 %v6392_v2, %v6392_v2  ;;  %v6394_v59 = vadd.f32 %v6361_v36, %v6191_v43  ;;  %v4668_v38 = vpop.f32.mrb[3].mxu0  ;;  %v5059_v34 = vmul.f32 %v6392_v2, %v6392_v2  ;;  %v4989_v22 = vsel %vm4985_vm9, %v6392_v2, 0.0 }
 0x20c   : > { %v5899_v37 = vpack.c.bf16 %v6393_v0, %v6393_v0  ;;  %v5057_v26 = vmul.f32 %v6393_v0, %v6393_v0  ;;  %v6395_v35 = vadd.f32 %v4668_v38, %v1914_v16  ;;  %v4986_v49 = vsel %vm4985_vm9, %v6393_v0, 0.0 }
 0x20d   : > { %4955 = vst.msk [vmem:[%s8578_s26 + $0x8] sm:$0xf] %vm4952_vm8, %v5901_v10  ;;  %v5902_v6 = vpack.c.bf16 %v6394_v59, %v6394_v59  ;;  %v5060_v7 = vmul.f32 %v6394_v59, %v6394_v59  ;;  %v5092_v21 = vsel %vm4985_vm9, %v5059_v34, 0.0  ;;  %v4991_v15 = vsel %vm4985_vm9, %v6394_v59, 0.0 }
 0x20e   : > { %4953 = vst.msk [vmem:[%s8578_s26] sm:$0xf] %vm4952_vm8, %v5899_v37  ;;  %v5900_v23 = vpack.c.bf16 %v6395_v35, %v6395_v35  ;;  %v4987_v25 = vsel %vm4985_vm9, %v6395_v35, 0.0  ;;  %v5058_v1 = vmul.f32 %v6395_v35, %v6395_v35  ;;  %v5089_v44 = vsel %vm4985_vm9, %v5057_v26, 0.0 }
 0x20f   : > { %4956 = vst.msk [vmem:[%s8578_s26 + $0xc] sm:$0xf] %vm4952_vm8, %v5902_v6  ;;  %v4988_v61 = vadd.f32 %v4987_v25, %v4986_v49  ;;  %v5094_v60 = vsel %vm4985_vm9, %v5060_v7, 0.0 }
 0x210   : > { %4954 = vst.msk [vmem:[%s8578_s26 + $0x4] sm:$0xf] %vm4952_vm8, %v5900_v23  ;;  %v5090_v3 = vsel %vm4985_vm9, %v5058_v1, 0.0  ;;  %v6364_v51 = vpop.f32.mrb[4].mxu0 }
 0x211   : > { %v4990_v28 = vadd.f32 %v4989_v22, %v4988_v61  ;;  %v5091_v45 = vadd.f32 %v5090_v3, %v5089_v44  ;;  %v6396_v27 = vadd.f32 %v6364_v51, %v6194_v58  ;;  %v4681_v53 = vpop.f32.mrb[5].mxu0 }
 0x212   : > { %v6397_v47 = vadd.f32 %v4681_v53, %v1927_v50  ;;  %v6365_v46 = vpop.f32.mrb[6].mxu0 }
 0x213   : > { %v5093_v20 = vadd.f32 %v5092_v21, %v5091_v45  ;;  %v5905_v42 = vpack.c.bf16 %v6396_v27, %v6396_v27  ;;  %v4684_v33 = vpop.f32.mrb[7].mxu0  ;;  %v4992_v31 = vadd.f32 %v4991_v15, %v4990_v28  ;;  %v6398_v62 = vadd.f32 %v6365_v46, %v6195_v54 }
 0x214   : > { %v5903_v12 = vpack.c.bf16 %v6397_v47, %v6397_v47  ;;  %v4993_v57 = vsel %vm4985_vm9, %v6397_v47, 0.0  ;;  %v5061_v8 = vmul.f32 %v6397_v47, %v6397_v47  ;;  %v6399_v56 = vadd.f32 %v4684_v33, %v1930_v18 }
 0x215   : > { %4959 = vst.msk [vmem:[%s8578_s26 + $0x18] sm:$0xf] %vm4952_vm8, %v5905_v42  ;;  %v5095_v48 = vadd.f32 %v5094_v60, %v5093_v20  ;;  %v4994_v40 = vadd.f32 %v4993_v57, %v4992_v31  ;;  %v5063_v17 = vmul.f32 %v6396_v27, %v6396_v27  ;;  %v5906_v9 = vpack.c.bf16 %v6398_v62, %v6398_v62 }
 0x216   : > { %4957 = vst.msk [vmem:[%s8578_s26 + $0x10] sm:$0xf] %vm4952_vm8, %v5903_v12  ;;  %v5096_v13 = vsel %vm4985_vm9, %v5061_v8, 0.0  ;;  %v5904_v14 = vpack.c.bf16 %v6399_v56, %v6399_v56  ;;  %v4995_v63 = vsel %vm4985_vm9, %v6399_v56, 0.0  ;;  %v5062_v4 = vmul.f32 %v6399_v56, %v6399_v56 }
 0x217   : > { %v5097_v30 = vadd.f32 %v5096_v13, %v5095_v48  ;;  %4960 = vst.msk [vmem:[%s8578_s26 + $0x1c] sm:$0xf] %vm4952_vm8, %v5906_v9  ;;  %v4996_v16 = vadd.f32 %v4995_v63, %v4994_v40  ;;  %v4997_v54 = vsel %vm4985_vm9, %v6396_v27, 0.0  ;;  %v5064_v18 = vmul.f32 %v6398_v62, %v6398_v62 }
 0x218   : > { %v6368_v43 = vpop.f32.mrb[8].mxu0  ;;  %4958 = vst.msk [vmem:[%s8578_s26 + $0x14] sm:$0xf] %vm4952_vm8, %v5904_v14  ;;  %v5098_v52 = vsel %vm4985_vm9, %v5062_v4, 0.0  ;;  %v5100_v0 = vsel %vm4985_vm9, %v5063_v17, 0.0 }
 0x219   : > { %v6400_v58 = vadd.f32 %v6368_v43, %v8558_v11  ;;  %v4697_v50 = vpop.f32.mrb[9].mxu0  ;;  %v4998_v36 = vadd.f32 %v4997_v54, %v4996_v16  ;;  %v5099_v10 = vadd.f32 %v5098_v52, %v5097_v30  ;;  %v4999_v11 = vsel %vm4985_vm9, %v6398_v62, 0.0 }
 0x21a   : > { %v6401_v2 = vadd.f32 %v4697_v50, %v8560_v32  ;;  %v6369_v39 = vpop.f32.mrb[10].mxu0  ;;  %v5102_v23 = vsel %vm4985_vm9, %v5064_v18, 0.0 }
 0x21b   : > { %v5909_v59 = vpack.c.bf16 %v6400_v58, %v6400_v58  ;;  %v4700_v38 = vpop.f32.mrb[11].mxu0  ;;  %v5101_v34 = vadd.f32 %v5100_v0, %v5099_v10  ;;  %v5000_v6 = vadd.f32 %v4999_v11, %v4998_v36  ;;  %v6402_v32 = vadd.f32 %v6369_v39, %v8562_v24 }
 0x21c   : > { %v5907_v37 = vpack.c.bf16 %v6401_v2, %v6401_v2  ;;  %v5001_v26 = vsel %vm4985_vm9, %v6401_v2, 0.0  ;;  %v5065_v35 = vmul.f32 %v6401_v2, %v6401_v2  ;;  %v6403_v49 = vadd.f32 %v4700_v38, %v8564_v5 }
 0x21d   : > { %4963 = vst.msk [vmem:[%s8578_s26 + $0x28] sm:$0xf] %vm4952_vm8, %v5909_v59  ;;  %v5067_v1 = vmul.f32 %v6400_v58, %v6400_v58  ;;  %v5002_v7 = vadd.f32 %v5001_v26, %v5000_v6  ;;  %v5103_v61 = vadd.f32 %v5102_v23, %v5101_v34  ;;  %v5910_v22 = vpack.c.bf16 %v6402_v32, %v6402_v32 }
 0x21e   : > { %4961 = vst.msk [vmem:[%s8578_s26 + $0x20] sm:$0xf] %vm4952_vm8, %v5907_v37  ;;  %v5104_v25 = vsel %vm4985_vm9, %v5065_v35, 0.0  ;;  %v5908_v44 = vpack.c.bf16 %v6403_v49, %v6403_v49  ;;  %v5003_v3 = vsel %vm4985_vm9, %v6403_v49, 0.0  ;;  %v5066_v51 = vmul.f32 %v6403_v49, %v6403_v49 }
 0x21f   : > { %v5105_v45 = vadd.f32 %v5104_v25, %v5103_v61  ;;  %4964 = vst.msk [vmem:[%s8578_s26 + $0x2c] sm:$0xf] %vm4952_vm8, %v5910_v22  ;;  %v5004_v24 = vadd.f32 %v5003_v3, %v5002_v7  ;;  %v5005_v53 = vsel %vm4985_vm9, %v6400_v58, 0.0  ;;  %v5068_v21 = vmul.f32 %v6402_v32, %v6402_v32 }
 0x220   : > { %v6372_v28 = vpop.f32.mrb[12].mxu0  ;;  %4962 = vst.msk [vmem:[%s8578_s26 + $0x24] sm:$0xf] %vm4952_vm8, %v5908_v44  ;;  %v5106_v47 = vsel %vm4985_vm9, %v5066_v51, 0.0  ;;  %v5108_v60 = vsel %vm4985_vm9, %v5067_v1, 0.0 }
 0x221   : > { %v6404_v5 = vadd.f32 %v6372_v28, %v8566_v55  ;;  %v4713_v27 = vpop.f32.mrb[13].mxu0  ;;  %v5006_v20 = vadd.f32 %v5005_v53, %v5004_v24  ;;  %v5107_v42 = vadd.f32 %v5106_v47, %v5105_v45  ;;  %v5007_v55 = vsel %vm4985_vm9, %v6402_v32, 0.0 }
 0x222   : > { %v6405_v46 = vadd.f32 %v4713_v27, %v8568_v29  ;;  %v6373_v15 = vpop.f32.mrb[14].mxu0  ;;  %v5110_v40 = vsel %vm4985_vm9, %v5068_v21, 0.0 }
 0x223   : > { %v5913_v33 = vpack.c.bf16 %v6404_v5, %v6404_v5  ;;  %v4716_v12 = vpop.f32.mrb[15].mxu0  ;;  %v5109_v48 = vadd.f32 %v5108_v60, %v5107_v42  ;;  %v5008_v62 = vadd.f32 %v5007_v55, %v5006_v20  ;;  %v6406_v29 = vadd.f32 %v6373_v15, %v8570_v19 }
 0x224   : > { %v5911_v31 = vpack.c.bf16 %v6405_v46, %v6405_v46  ;;  %v5009_v57 = vsel %vm4985_vm9, %v6405_v46, 0.0  ;;  %v5069_v8 = vmul.f32 %v6405_v46, %v6405_v46  ;;  %v6407_v56 = vadd.f32 %v4716_v12, %v8572_v41 }
 0x225   : > { %4967 = vst.msk [vmem:[%s8578_s26 + $0x38] sm:$0xf] %vm4952_vm8, %v5913_v33  ;;  %v5010_v17 = vadd.f32 %v5009_v57, %v5008_v62  ;;  %v5111_v30 = vadd.f32 %v5110_v40, %v5109_v48  ;;  %v5914_v9 = vpack.c.bf16 %v6406_v29, %v6406_v29  ;;  %v5071_v14 = vmul.f32 %v6404_v5, %v6404_v5 }
 0x226   : > { %4965 = vst.msk [vmem:[%s8578_s26 + $0x30] sm:$0xf] %vm4952_vm8, %v5911_v31  ;;  %v5112_v13 = vsel %vm4985_vm9, %v5069_v8, 0.0  ;;  %v5912_v63 = vpack.c.bf16 %v6407_v56, %v6407_v56  ;;  %v5011_v4 = vsel %vm4985_vm9, %v6407_v56, 0.0  ;;  %v5070_v43 = vmul.f32 %v6407_v56, %v6407_v56 }
 0x227   : > { %v5113_v58 = vadd.f32 %v5112_v13, %v5111_v30  ;;  %4968 = vst.msk [vmem:[%s8578_s26 + $0x3c] sm:$0xf] %vm4952_vm8, %v5914_v9  ;;  %v5012_v19 = vadd.f32 %v5011_v4, %v5010_v17  ;;  %v5013_v54 = vsel %vm4985_vm9, %v6404_v5, 0.0  ;;  %v5072_v18 = vmul.f32 %v6406_v29, %v6406_v29 }
 0x228   : > { %v6376_v16 = vpop.f32.mrb[16].mxu0  ;;  %4966 = vst.msk [vmem:[%s8578_s26 + $0x34] sm:$0xf] %vm4952_vm8, %v5912_v63  ;;  %v5114_v52 = vsel %vm4985_vm9, %v5070_v43, 0.0  ;;  %v5116_v37 = vsel %vm4985_vm9, %v5071_v14, 0.0  ;;  %v5015_v26 = vsel %vm4985_vm9, %v6406_v29, 0.0 }
 0x229   : > { %v6240_v41 = vpop.f32.mrb[16].mxu1  ;;  %v4729_v50 = vpop.f32.mrb[17].mxu0  ;;  %v5014_v36 = vadd.f32 %v5013_v54, %v5012_v19  ;;  %v5115_v10 = vadd.f32 %v5114_v52, %v5113_v58  ;;  %v5118_v1 = vsel %vm4985_vm9, %v5072_v18, 0.0 }
 0x22a   : > { %v6408_v2 = vadd.f32 %v6376_v16, %v6240_v41  ;;  %v2701_v39 = vpop.f32.mrb[17].mxu1  ;;  %v6377_v0 = vpop.f32.mrb[18].mxu0 }
 0x22b   : > { %v6409_v59 = vadd.f32 %v4729_v50, %v2701_v39  ;;  %v6241_v38 = vpop.f32.mrb[18].mxu1  ;;  %v4732_v11 = vpop.f32.mrb[19].mxu0  ;;  %v5117_v32 = vadd.f32 %v5116_v37, %v5115_v10  ;;  %v5016_v23 = vadd.f32 %v5015_v26, %v5014_v36 }
 0x22c   : > { %v5917_v35 = vpack.c.bf16 %v6408_v2, %v6408_v2  ;;  %v6410_v34 = vadd.f32 %v6377_v0, %v6241_v38  ;;  %v2704_v6 = vpop.f32.mrb[19].mxu1  ;;  %v5075_v22 = vmul.f32 %v6408_v2, %v6408_v2  ;;  %v5021_v42 = vsel %vm4985_vm9, %v6408_v2, 0.0 }
 0x22d   : > { %v5915_v49 = vpack.c.bf16 %v6409_v59, %v6409_v59  ;;  %v5017_v25 = vsel %vm4985_vm9, %v6409_v59, 0.0  ;;  %v5073_v7 = vmul.f32 %v6409_v59, %v6409_v59  ;;  %v5119_v3 = vadd.f32 %v5118_v1, %v5117_v32 }
 0x22e   : > { %4971 = vst.msk [vmem:[%s8578_s26 + $0x48] sm:$0xf] %vm4952_vm8, %v5917_v35  ;;  %v5918_v61 = vpack.c.bf16 %v6410_v34, %v6410_v34  ;;  %v5018_v44 = vadd.f32 %v5017_v25, %v5016_v23  ;;  %v6411_v51 = vadd.f32 %v4732_v11, %v2704_v6  ;;  %v5124_v33 = vsel %vm4985_vm9, %v5075_v22, 0.0 }
 0x22f   : > { %4969 = vst.msk [vmem:[%s8578_s26 + $0x40] sm:$0xf] %vm4952_vm8, %v5915_v49  ;;  %v5120_v28 = vsel %vm4985_vm9, %v5073_v7, 0.0  ;;  %v5076_v57 = vmul.f32 %v6410_v34, %v6410_v34  ;;  %v5023_v56 = vsel %vm4985_vm9, %v6410_v34, 0.0 }
 0x230   : > { %4972 = vst.msk [vmem:[%s8578_s26 + $0x4c] sm:$0xf] %vm4952_vm8, %v5918_v61  ;;  %v6380_v45 = vpop.f32.mrb[20].mxu0  ;;  %v5121_v24 = vadd.f32 %v5120_v28, %v5119_v3  ;;  %v5916_v5 = vpack.c.bf16 %v6411_v51, %v6411_v51  ;;  %v5019_v27 = vsel %vm4985_vm9, %v6411_v51, 0.0  ;;  %v5074_v46 = vmul.f32 %v6411_v51, %v6411_v51 }
 0x231   : > { %v6244_v53 = vpop.f32.mrb[20].mxu1  ;;  %v4745_v21 = vpop.f32.mrb[21].mxu0  ;;  %v5020_v47 = vadd.f32 %v5019_v27, %v5018_v44  ;;  %v5126_v16 = vsel %vm4985_vm9, %v5076_v57, 0.0 }
 0x232   : > { %v6412_v15 = vadd.f32 %v6380_v45, %v6244_v53  ;;  %v2717_v60 = vpop.f32.mrb[21].mxu1  ;;  %v6381_v20 = vpop.f32.mrb[22].mxu0  ;;  %4970 = vst.msk [vmem:[%s8578_s26 + $0x44] sm:$0xf] %vm4952_vm8, %v5916_v5  ;;  %v5122_v48 = vsel %vm4985_vm9, %v5074_v46, 0.0 }
 0x233   : > { %v6413_v12 = vadd.f32 %v4745_v21, %v2717_v60  ;;  %v6245_v55 = vpop.f32.mrb[22].mxu1  ;;  %v4748_v31 = vpop.f32.mrb[23].mxu0  ;;  %v5022_v8 = vadd.f32 %v5021_v42, %v5020_v47  ;;  %v5123_v40 = vadd.f32 %v5122_v48, %v5121_v24 }
 0x234   : > { %v5921_v62 = vpack.c.bf16 %v6412_v15, %v6412_v15  ;;  %v2720_v29 = vpop.f32.mrb[23].mxu1  ;;  %v6414_v14 = vadd.f32 %v6381_v20, %v6245_v55  ;;  %v5079_v43 = vmul.f32 %v6412_v15, %v6412_v15  ;;  %v5029_v11 = vsel %vm4985_vm9, %v6412_v15, 0.0 }
 0x235   : > { %v5919_v13 = vpack.c.bf16 %v6413_v12, %v6413_v12  ;;  %v5025_v17 = vsel %vm4985_vm9, %v6413_v12, 0.0  ;;  %v5024_v30 = vadd.f32 %v5023_v56, %v5022_v8  ;;  %v5077_v9 = vmul.f32 %v6413_v12, %v6413_v12 }
 0x236   : > { %4975 = vst.msk [vmem:[%s8578_s26 + $0x58] sm:$0xf] %vm4952_vm8, %v5921_v62  ;;  %v6415_v63 = vadd.f32 %v4748_v31, %v2720_v29  ;;  %v5125_v4 = vadd.f32 %v5124_v33, %v5123_v40  ;;  %v5922_v41 = vpack.c.bf16 %v6414_v14, %v6414_v14  ;;  %v5132_v37 = vsel %vm4985_vm9, %v5079_v43, 0.0 }
 0x237   : > { %4973 = vst.msk [vmem:[%s8578_s26 + $0x50] sm:$0xf] %vm4952_vm8, %v5919_v13  ;;  %v5026_v58 = vadd.f32 %v5025_v17, %v5024_v30  ;;  %v5128_v19 = vsel %vm4985_vm9, %v5077_v9, 0.0  ;;  %v5080_v32 = vmul.f32 %v6414_v14, %v6414_v14  ;;  %v5031_v7 = vsel %vm4985_vm9, %v6414_v14, 0.0 }
 0x238   : > { %v6384_v50 = vpop.f32.mrb[24].mxu0  ;;  %v5127_v54 = vadd.f32 %v5126_v16, %v5125_v4  ;;  %v5920_v18 = vpack.c.bf16 %v6415_v63, %v6415_v63  ;;  %v5027_v52 = vsel %vm4985_vm9, %v6415_v63, 0.0  ;;  %4976 = vst.msk [vmem:[%s8578_s26 + $0x5c] sm:$0xf] %vm4952_vm8, %v5922_v41  ;;  %v5078_v36 = vmul.f32 %v6415_v63, %v6415_v63 }
 0x239   : > { %v6248_v2 = vpop.f32.mrb[24].mxu1  ;;  %v4761_v39 = vpop.f32.mrb[25].mxu0  ;;  %v5028_v0 = vadd.f32 %v5027_v52, %v5026_v58  ;;  %v5134_v27 = vsel %vm4985_vm9, %v5080_v32, 0.0 }
 0x23a   : > { %v6416_v10 = vadd.f32 %v6384_v50, %v6248_v2  ;;  %v2733_v59 = vpop.f32.mrb[25].mxu1  ;;  %v6385_v38 = vpop.f32.mrb[26].mxu0  ;;  %v5129_v26 = vadd.f32 %v5128_v19, %v5127_v54  ;;  %4974 = vst.msk [vmem:[%s8578_s26 + $0x54] sm:$0xf] %vm4952_vm8, %v5920_v18  ;;  %v5130_v23 = vsel %vm4985_vm9, %v5078_v36, 0.0 }
 0x23b   : > { %v6417_v35 = vadd.f32 %v4761_v39, %v2733_v59  ;;  %v6249_v34 = vpop.f32.mrb[26].mxu1  ;;  %v4764_v6 = vpop.f32.mrb[27].mxu0  ;;  %v5030_v49 = vadd.f32 %v5029_v11, %v5028_v0 }
 0x23c   : > { %v5925_v25 = vpack.c.bf16 %v6416_v10, %v6416_v10  ;;  %v2736_v1 = vpop.f32.mrb[27].mxu1  ;;  %v5131_v61 = vadd.f32 %v5130_v23, %v5129_v26  ;;  %v6418_v28 = vadd.f32 %v6385_v38, %v6249_v34  ;;  %v5083_v5 = vmul.f32 %v6416_v10, %v6416_v10 }
 0x23d   : > { %v5923_v22 = vpack.c.bf16 %v6417_v35, %v6417_v35  ;;  %v5033_v44 = vsel %vm4985_vm9, %v6417_v35, 0.0  ;;  %v5032_v3 = vadd.f32 %v5031_v7, %v5030_v49  ;;  %v5081_v51 = vmul.f32 %v6417_v35, %v6417_v35 }
 0x23e   : > { %4979 = vst.msk [vmem:[%s8578_s26 + $0x68] sm:$0xf] %vm4952_vm8, %v5925_v25  ;;  %v6419_v45 = vadd.f32 %v4764_v6, %v2736_v1  ;;  %v5133_v24 = vadd.f32 %v5132_v37, %v5131_v61  ;;  %v5926_v47 = vpack.c.bf16 %v6418_v28, %v6418_v28  ;;  %v5037_v48 = vsel %vm4985_vm9, %v6416_v10, 0.0 }
 0x23f   : > { %4977 = vst.msk [vmem:[%s8578_s26 + $0x60] sm:$0xf] %vm4952_vm8, %v5923_v22  ;;  %v5034_v53 = vadd.f32 %v5033_v44, %v5032_v3  ;;  %v5136_v21 = vsel %vm4985_vm9, %v5081_v51, 0.0  ;;  %v5140_v62 = vsel %vm4985_vm9, %v5083_v5, 0.0  ;;  %v5084_v17 = vmul.f32 %v6418_v28, %v6418_v28 }
 0x240   : > { %v6388_v46 = vpop.f32.mrb[28].mxu0  ;;  %v5135_v15 = vadd.f32 %v5134_v27, %v5133_v24  ;;  %v5924_v60 = vpack.c.bf16 %v6419_v45, %v6419_v45  ;;  %v5035_v20 = vsel %vm4985_vm9, %v6419_v45, 0.0  ;;  %4980 = vst.msk [vmem:[%s8578_s26 + $0x6c] sm:$0xf] %vm4952_vm8, %v5926_v47  ;;  %v5082_v55 = vmul.f32 %v6419_v45, %v6419_v45 }
 0x241   : > { %v6252_v42 = vpop.f32.mrb[28].mxu1  ;;  %v4777_v33 = vpop.f32.mrb[29].mxu0  ;;  %v5036_v12 = vadd.f32 %v5035_v20, %v5034_v53  ;;  %v5039_v4 = vsel %vm4985_vm9, %v6418_v28, 0.0  ;;  %v5142_v52 = vsel %vm4985_vm9, %v5084_v17, 0.0 }
 0x242   : > { %v6420_v31 = vadd.f32 %v6388_v46, %v6252_v42  ;;  %v2749_v57 = vpop.f32.mrb[29].mxu1  ;;  %v6389_v8 = vpop.f32.mrb[30].mxu0  ;;  %v5137_v29 = vadd.f32 %v5136_v21, %v5135_v15  ;;  %4978 = vst.msk [vmem:[%s8578_s26 + $0x64] sm:$0xf] %vm4952_vm8, %v5924_v60  ;;  %v5138_v9 = vsel %vm4985_vm9, %v5082_v55, 0.0 }
 0x243   : > { %v6421_v56 = vadd.f32 %v4777_v33, %v2749_v57  ;;  %v6253_v40 = vpop.f32.mrb[30].mxu1  ;;  %v4780_v13 = vpop.f32.mrb[31].mxu0  ;;  %v5038_v30 = vadd.f32 %v5037_v48, %v5036_v12 }
 0x244   : > { %v5929_v14 = vpack.c.bf16 %v6420_v31, %v6420_v31  ;;  %v2752_v63 = vpop.f32.mrb[31].mxu1  ;;  %v5139_v43 = vadd.f32 %v5138_v9, %v5137_v29  ;;  %v6422_v50 = vadd.f32 %v6389_v8, %v6253_v40  ;;  %v5087_v38 = vmul.f32 %v6420_v31, %v6420_v31 }
 0x245   : > { %v5927_v16 = vpack.c.bf16 %v6421_v56, %v6421_v56  ;;  %v5041_v58 = vsel %vm4985_vm9, %v6421_v56, 0.0  ;;  %v5040_v19 = vadd.f32 %v5039_v4, %v5038_v30  ;;  %v5085_v41 = vmul.f32 %v6421_v56, %v6421_v56 }
 0x246   : > { %4983 = vst.msk [vmem:[%s8578_s26 + $0x78] sm:$0xf] %vm4952_vm8, %v5929_v14  ;;  %v6423_v54 = vadd.f32 %v4780_v13, %v2752_v63  ;;  %v5141_v18 = vadd.f32 %v5140_v62, %v5139_v43  ;;  %v5930_v0 = vpack.c.bf16 %v6422_v50, %v6422_v50  ;;  %v5045_v26 = vsel %vm4985_vm9, %v6420_v31, 0.0 }
 0x247   : > { %4981 = vst.msk [vmem:[%s8578_s26 + $0x70] sm:$0xf] %vm4952_vm8, %v5927_v16  ;;  %v5042_v2 = vadd.f32 %v5041_v58, %v5040_v19  ;;  %v5144_v39 = vsel %vm4985_vm9, %v5085_v41, 0.0  ;;  %v5088_v34 = vmul.f32 %v6422_v50, %v6422_v50  ;;  %v5047_v49 = vsel %vm4985_vm9, %v6422_v50, 0.0 }
 0x248   : > { %v5143_v36 = vadd.f32 %v5142_v52, %v5141_v18  ;;  %v5928_v10 = vpack.c.bf16 %v6423_v54, %v6423_v54  ;;  %v5043_v59 = vsel %vm4985_vm9, %v6423_v54, 0.0  ;;  %4984 = vst.msk [vmem:[%s8578_s26 + $0x7c] sm:$0xf] %vm4952_vm8, %v5930_v0  ;;  %v5086_v37 = vmul.f32 %v6423_v54, %v6423_v54 }
 0x249   : > { %v5044_v11 = vadd.f32 %v5043_v59, %v5042_v2  ;;  %v5148_v25 = vsel %vm4985_vm9, %v5087_v38, 0.0  ;;  %v5150_v61 = vsel %vm4985_vm9, %v5088_v34, 0.0 }
 0x24a   : > { %v5145_v35 = vadd.f32 %v5144_v39, %v5143_v36  ;;  %4982 = vst.msk [vmem:[%s8578_s26 + $0x74] sm:$0xf] %vm4952_vm8, %v5928_v10  ;;  %v5146_v32 = vsel %vm4985_vm9, %v5086_v37, 0.0 }
 0x24b   : > { %v5046_v6 = vadd.f32 %v5045_v26, %v5044_v11 }
 0x24c   : > { %v5147_v23 = vadd.f32 %v5146_v32, %v5145_v35 }
 0x24d   : > { %v5048_v1 = vadd.f32 %v5047_v49, %v5046_v6 }
 0x24e   : > { %v5149_v7 = vadd.f32 %v5148_v25, %v5147_v23 }
 0x24f   : > { %v5049_v22 = vrot.slane %v5048_v1, 4 }
 0x250   : > { %v5151_v44 = vadd.f32 %v5150_v61, %v5149_v7 }
 0x251   : > { %v5050_v3 = vadd.f32 %v5049_v22, %v5048_v1 }
 0x252   : > { %v5152_v51 = vrot.slane %v5151_v44, 4 }
 0x253   : > { %v5051_v28 = vrot.slane %v5050_v3, 2 }
 0x254   : > { %v5153_v45 = vadd.f32 %v5152_v51, %v5151_v44 }
 0x255   : > { %v5052_v24 = vadd.f32 %v5051_v28, %v5050_v3 }
 0x256   : > { %v5154_v5 = vrot.slane %v5153_v45, 2 }
 0x257   : > { %v5053_v27 = vrot.slane %v5052_v24, 1 }
 0x258   : > { %v5155_v53 = vadd.f32 %v5154_v5, %v5153_v45 }
 0x259   : > { %v5054_v21 = vadd.f32 %v5053_v27, %v5052_v24 }
 0x25a   : > { %v5156_v47 = vrot.slane %v5155_v53, 1 }
 0x25b   : > { %5056 = vst.msk [vmem:[%s247_s29] sm:$0x1] %vm5055_vm10, %v5054_v21 }
 0x25c   : > { %v5157_v46 = vadd.f32 %v5156_v47, %v5155_v53 }
 0x25e   : > { %5158 = vst.msk [vmem:[%s253_s6] sm:$0x1] %vm5055_vm10, %v5157_v46 }
 0x25f PF: > { %s15_s17 = sadd.s32 1, %s6810_s17   ;;  %s8805_s15 = smov %s6806_s16 }
 0x260   : > { %p12_p5 = scmp.ge.s32.totalorder %s15_s17, 4   ;;  %s8806_s16 = smov %s8808_s18 }
 0x262   :  { %14 = sbr.rel (!%p12_p5) target bundleno = 2 (0x2), region = 93 }

</bundles_post_ra>
